<compile_context>
chip_gen: v7x
topology: tpu7x:2x2x1
jax: 0.10.0
libtpu: 0.0.40
codegen_flags: <defaults>
</compile_context>

<pallas_src>
import functools

import jax
import jax.numpy as jnp
from jax import lax
from jax.experimental import pallas as pl
from jax.experimental.pallas import tpu as pltpu

EPS = 1e-5
_LANE = 128
_VMEM_LIMIT = 32 * 1024 * 1024  # within default scoped limits on v6e/v7x, raises v5e's 16 MiB


# ------------------------------- helpers -------------------------------------
def _round_up(x, m):
    return (x + m - 1) // m * m


def _pick_h_tile(ho, wo, target_rows=256):
    """Output-row-strip height: th | ho, (th*wo) % 8 == 0, th*wo <= target (best effort)."""
    best = None
    for th in range(1, ho + 1):
        if ho % th:
            continue
        rows = th * wo
        if rows % 8 == 0 and rows <= target_rows:
            best = th
    if best is None:
        for th in range(1, ho + 1):
            if ho % th == 0 and (th * wo) % 8 == 0:
                best = th
                break
    return best if best is not None else ho  # full extent is always legal


def _pick_row_tile(total, target=2048):
    """Largest divisor of `total` that is a multiple of 8 and <= target; else `total`."""
    best = None
    for d in range(8, min(total, target) + 1, 8):
        if total % d == 0:
            best = d
    return best if best is not None else total


# ----------------------------- Pallas kernels --------------------------------
def _conv3x3_stats_kernel(x_ref, w_ref, y_ref, s_ref, *, wo, stride):
    """3x3 conv (padding already applied) + per-tile BN partial sums.

    x_ref : (1, Hp, Wp, Cp)     bf16  whole padded image (block reused across row strips)
    w_ref : (9, Cp, Coutp)      bf16  resident weights, one (Cp, Coutp) slab per tap
    y_ref : (1, TH*Wo, Coutp)   f32   pre-BN conv output for this row strip
    s_ref : (1, 1, 2, Coutp)    f32   [sum, sum_of_squares] over this strip's rows
    """
    rows, coutp = y_ref.shape[1], y_ref.shape[2]
    cp = x_ref.shape[3]
    th = rows // wo
    row0 = pl.program_id(1) * th * stride

    acc = jnp.zeros((rows, coutp), jnp.float32)
    for t in range(9):  # unrolled 3x3 taps -> 9 MXU matmuls into an f32 accumulator
        di, dj = t // 3, t % 3
        if stride == 1:
            xs = x_ref[0, pl.ds(row0 + di, th), pl.ds(dj, wo), :]
        else:
            xs = x_ref[0, pl.ds(row0 + di, th, stride), pl.ds(dj, wo, stride), :]
        acc = acc + jnp.dot(xs.reshape(rows, cp), w_ref[t],
                            preferred_element_type=jnp.float32)

    y_ref[0] = acc
    # sum and sum-of-squares in the same pass (single sweep over acc).
    ssum = jnp.sum(acc, axis=0, keepdims=True)
    ssq = jnp.sum(acc * acc, axis=0, keepdims=True)
    s_ref[0, 0] = jnp.concatenate([ssum, ssq], axis=0)


def _bn_relu_kernel(y_ref, scale_ref, shift_ref, o_ref):
    """Elementwise BN finalize + ReLU: out = max(y*scale + shift, 0)."""
    o_ref[...] = jnp.maximum(
        y_ref[...] * scale_ref[...] + shift_ref[...], 0.0
    ).astype(o_ref.dtype)


# ------------------------------- conv wrapper ---------------------------------
def conv3x3_bn_relu_nhwc(x, w_oihw, gamma, beta, *, stride=1, out_dtype=jnp.bfloat16):
    """Fused conv3x3(pad=1) + BatchNorm(train) + ReLU on a channel-padded NHWC input.

    x       : (N, H, W, Cp) with Cp % 128 == 0 and x[..., cin:] == 0
    w_oihw  : (cout, cin, 3, 3)
    returns : (N, Ho, Wo, Coutp) `out_dtype`, Coutp = round_up(cout, 128);
              channels >= cout are exactly zero.
    """
    n, h, w, cp = x.shape
    cout, cin, kh, kw = w_oihw.shape
    assert kh == 3 and kw == 3 and cp % _LANE == 0 and cin <= cp
    coutp = _round_up(cout, _LANE)

    ho = (h - 1) // stride + 1
    wo = (w - 1) // stride + 1
    th = _pick_h_tile(ho, wo)
    n_tiles = ho // th

    # Weights: OIHW -> (tap, Cin, Cout), zero-pad channels to lane multiples, bf16 for MXU.
    wt = jnp.transpose(w_oihw, (2, 3, 1, 0))                                 # (3,3,cin,cout)
    wt = jnp.pad(wt, ((0, 0), (0, 0), (0, cp - cin), (0, coutp - cout)))
    wt = wt.reshape(9, cp, coutp).astype(jnp.bfloat16)

    # Spatial zero-pad only (channels already lane-padded); kernel reads shifted windows.
    xp = jnp.pad(x.astype(jnp.bfloat16), ((0, 0), (1, 1), (1, 1), (0, 0)))
    hp, wp = h + 2, w + 2

    # ---- pass 1: conv + per-tile partial BN statistics --------------------------------
    y, stats = pl.pallas_call(
        functools.partial(_conv3x3_stats_kernel, wo=wo, stride=stride),
        grid=(n, n_tiles),
        in_specs=[
            pl.BlockSpec((1, hp, wp, cp), lambda b, i: (b, 0, 0, 0)),   # image, reused over i
            pl.BlockSpec((9, cp, coutp), lambda b, i: (0, 0, 0)),       # resident weights
        ],
        out_specs=[
            pl.BlockSpec((1, th * wo, coutp), lambda b, i: (b, i, 0)),
            pl.BlockSpec((1, 1, 2, coutp), lambda b, i: (b, i, 0, 0)),
        ],
        out_shape=[
            jax.ShapeDtypeStruct((n, ho * wo, coutp), jnp.float32),
            jax.ShapeDtypeStruct((n, n_tiles, 2, coutp), jnp.float32),
        ],
        compiler_params=pltpu.CompilerParams(
            dimension_semantics=("parallel", "parallel"),
            vmem_limit_bytes=_VMEM_LIMIT,
        ),
    )(xp, wt)

    # ---- fold per-tile partials into per-channel scale/shift (tiny) --------------------
    count = jnp.float32(n * ho * wo)
    s = jnp.sum(stats, axis=(0, 1))                       # (2, coutp)
    mean = s[0] / count
    var = jnp.maximum(s[1] / count - mean * mean, 0.0)    # biased variance (BN training)
    # TODO(synk): E[y^2]-E[y]^2 in f32 can lose precision for extremely large N*H*W.
    g = jnp.pad(gamma.astype(jnp.float32), (0, coutp - cout))
    b = jnp.pad(beta.astype(jnp.float32), (0, coutp - cout))
    scale = g * lax.rsqrt(var + EPS)
    shift = b - mean * scale

    # ---- pass 2: lane-dense elementwise normalize + affine + ReLU ----------------------
    r = n * ho * wo
    tm = _pick_row_tile(r)
    out = pl.pallas_call(
        _bn_relu_kernel,
        grid=(r // tm,),
        in_specs=[
            pl.BlockSpec((tm, coutp), lambda i: (i, 0)),
            pl.BlockSpec((1, coutp), lambda i: (0, 0)),
            pl.BlockSpec((1, coutp), lambda i: (0, 0)),
        ],
        out_specs=pl.BlockSpec((tm, coutp), lambda i: (i, 0)),
        out_shape=jax.ShapeDtypeStruct((r, coutp), out_dtype),
        compiler_params=pltpu.CompilerParams(
            dimension_semantics=("parallel",),
            vmem_limit_bytes=_VMEM_LIMIT,
        ),
    )(y.reshape(r, coutp), scale.reshape(1, coutp), shift.reshape(1, coutp))
    return out.reshape(n, ho, wo, coutp)


# ------------------------------- block forward --------------------------------
def plain_block_forward(x_nchw, params, stride=1):
    """PlainBlock.forward. NCHW in/out; NHWC (channel-padded, bf16) internally.

    NOTE: self.downsample is constructed but never used in PlainBlock.forward -> omitted.
    """
    n, cin, h, w = x_nchw.shape
    cinp = _round_up(cin, _LANE)
    planes = params["w2"].shape[0]

    x = jnp.transpose(x_nchw, (0, 2, 3, 1))                        # NCHW -> NHWC (once)
    x = jnp.pad(x, ((0, 0), (0, 0), (0, 0), (0, cinp - cin)))      # lane-dense channels

    y = conv3x3_bn_relu_nhwc(x, params["w1"], params["g1"], params["b1"],
                             stride=stride, out_dtype=jnp.bfloat16)   # conv1+bn1+relu
    y = conv3x3_bn_relu_nhwc(y, params["w2"], params["g2"], params["b2"],
                             stride=1, out_dtype=jnp.float32)         # conv2+bn2+relu

    y = y[..., :planes]                                            # drop channel padding
    return jnp.transpose(y, (0, 3, 1, 2))                          # NHWC -> NCHW (once)


def init_params(key, inplanes, planes):
    k1, k2 = jax.random.split(key)
    return dict(
        w1=jax.random.normal(k1, (planes, inplanes, 3, 3), jnp.float32) * 0.1,
        w2=jax.random.normal(k2, (planes, planes, 3, 3), jnp.float32) * 0.1,
        g1=jnp.ones((planes,), jnp.float32),
        b1=jnp.zeros((planes,), jnp.float32),
        g2=jnp.ones((planes,), jnp.float32),
        b2=jnp.zeros((planes,), jnp.float32),
    )


# ------------------------------- reference ------------------------------------
def _ref_conv_bn_relu(x_nchw, w, g, b, stride):
    y = lax.conv_general_dilated(
        x_nchw, w, (stride, stride), ((1, 1), (1, 1)),
        dimension_numbers=("NCHW", "OIHW", "NCHW"))
    mean = jnp.mean(y, axis=(0, 2, 3), keepdims=True)
    var = jnp.mean(jnp.square(y - mean), axis=(0, 2, 3), keepdims=True)
    y = (y - mean) * lax.rsqrt(var + EPS)
    y = y * g.reshape(1, -1, 1, 1) + b.reshape(1, -1, 1, 1)
    return jnp.maximum(y, 0.0)


def _ref_plain_block(x_nchw, params, stride=1):
    y = _ref_conv_bn_relu(x_nchw, params["w1"], params["g1"], params["b1"], stride)
    return _ref_conv_bn_relu(y, params["w2"], params["g2"], params["b2"], 1)


# --------------------------------- main ---------------------------------------
if __name__ == "__main__":
    key = jax.random.PRNGKey(0)
    kx, kp = jax.random.split(key)

    batch, inplanes, planes, spatial, stride = 2, 4, 8, 16, 1
    x = jax.random.normal(kx, (batch, inplanes, spatial, spatial), jnp.float32)
    params = init_params(kp, inplanes, planes)

    fwd = jax.jit(functools.partial(plain_block_forward, stride=stride))
    out = jax.block_until_ready(fwd(x, params))

    ref = _ref_plain_block(x, params, stride=stride)
    assert out.shape == ref.shape
    # Tolerance accounts for bf16 MXU inputs / bf16 inter-conv activation vs all-f32 ref.
    assert jnp.allclose(out, ref, rtol=3e-2, atol=3e-2), (
        f"mismatch vs JAX reference, max abs err = {jnp.max(jnp.abs(out - ref))}")
    print("KERNEL_OK")
</pallas_src>

<mosaic_0001>
module attributes {stable_mosaic.version = 11 : i64} {
  func.func @_conv3x3_stats_kernel(%arg0: i32, %arg1: i32, %arg2: memref<1x18x18x128xbf16, #tpu.memory_space<vmem>>, %arg3: memref<9x128x128xbf16, #tpu.memory_space<vmem>>, %arg4: memref<1x256x128xf32, #tpu.memory_space<vmem>>, %arg5: memref<1x1x2x128xf32, #tpu.memory_space<vmem>>) attributes {dimension_semantics = [#tpu.dimension_semantics<parallel>, #tpu.dimension_semantics<parallel>], iteration_bounds = array<i64: 2, 1>, scalar_prefetch = 0 : i64, scratch_operands = 0 : i64, tpu.core_type = #tpu.core_type<tc>, window_params = [{transform_indices = @transform_0, window_bounds = array<i64: 1, 18, 18, 128>}, {pipeline_mode = #tpu.pipeline_mode<synchronous>, transform_indices = @transform_1, window_bounds = array<i64: 9, 128, 128>}, {transform_indices = @transform_2, window_bounds = array<i64: 1, 256, 128>}, {transform_indices = @transform_3, window_bounds = array<i64: 1, 1, 2, 128>}]} {
    %c16_i32 = arith.constant 16 : i32
    %0 = arith.muli %arg1, %c16_i32 : i32
    %c1_i32 = arith.constant 1 : i32
    %1 = arith.muli %0, %c1_i32 : i32
    %cst = arith.constant 0.000000e+00 : f32
    %2 = vector.broadcast %cst : f32 to vector<256x128xf32>
    %c0_i32 = arith.constant 0 : i32
    %3 = arith.addi %1, %c0_i32 : i32
    %c0 = arith.constant 0 : index
    %4 = arith.index_cast %3 : i32 to index
    %c0_0 = arith.constant 0 : index
    %c0_1 = arith.constant 0 : index
    %5 = vector.load %arg2[%c0, %4, %c0_0, %c0_1] : memref<1x18x18x128xbf16, #tpu.memory_space<vmem>>, vector<1x16x16x128xbf16>
    %6 = vector.shape_cast %5 : vector<1x16x16x128xbf16> to vector<16x16x128xbf16>
    %7 = vector.shape_cast %6 : vector<16x16x128xbf16> to vector<256x128xbf16>
    %c0_2 = arith.constant 0 : index
    %c0_3 = arith.constant 0 : index
    %c0_4 = arith.constant 0 : index
    %8 = vector.load %arg3[%c0_2, %c0_3, %c0_4] : memref<9x128x128xbf16, #tpu.memory_space<vmem>>, vector<1x128x128xbf16>
    %9 = vector.shape_cast %8 : vector<1x128x128xbf16> to vector<128x128xbf16>
    %cst_5 = arith.constant dense<0.000000e+00> : vector<256x128xf32>
    %10 = tpu.matmul %7, %9, %cst_5 {dimension_numbers = #tpu.dot_dimension_numbers<[1], [0], [0], [1], [0, 0, 1, 1], [], []>} : vector<256x128xbf16>, vector<128x128xbf16>, vector<256x128xf32> -> vector<256x128xf32>
    %11 = arith.addf %2, %10 : vector<256x128xf32>
    %c0_i32_6 = arith.constant 0 : i32
    %12 = arith.addi %1, %c0_i32_6 : i32
    %c0_7 = arith.constant 0 : index
    %13 = arith.index_cast %12 : i32 to index
    %c1 = arith.constant 1 : index
    %c0_8 = arith.constant 0 : index
    %14 = vector.load %arg2[%c0_7, %13, %c1, %c0_8] : memref<1x18x18x128xbf16, #tpu.memory_space<vmem>>, vector<1x16x16x128xbf16>
    %15 = vector.shape_cast %14 : vector<1x16x16x128xbf16> to vector<16x16x128xbf16>
    %16 = vector.shape_cast %15 : vector<16x16x128xbf16> to vector<256x128xbf16>
    %c1_9 = arith.constant 1 : index
    %c0_10 = arith.constant 0 : index
    %c0_11 = arith.constant 0 : index
    %17 = vector.load %arg3[%c1_9, %c0_10, %c0_11] : memref<9x128x128xbf16, #tpu.memory_space<vmem>>, vector<1x128x128xbf16>
    %18 = vector.shape_cast %17 : vector<1x128x128xbf16> to vector<128x128xbf16>
    %cst_12 = arith.constant dense<0.000000e+00> : vector<256x128xf32>
    %19 = tpu.matmul %16, %18, %cst_12 {dimension_numbers = #tpu.dot_dimension_numbers<[1], [0], [0], [1], [0, 0, 1, 1], [], []>} : vector<256x128xbf16>, vector<128x128xbf16>, vector<256x128xf32> -> vector<256x128xf32>
    %20 = arith.addf %11, %19 : vector<256x128xf32>
    %c0_i32_13 = arith.constant 0 : i32
    %21 = arith.addi %1, %c0_i32_13 : i32
    %c0_14 = arith.constant 0 : index
    %22 = arith.index_cast %21 : i32 to index
    %c2 = arith.constant 2 : index
    %c0_15 = arith.constant 0 : index
    %23 = vector.load %arg2[%c0_14, %22, %c2, %c0_15] : memref<1x18x18x128xbf16, #tpu.memory_space<vmem>>, vector<1x16x16x128xbf16>
    %24 = vector.shape_cast %23 : vector<1x16x16x128xbf16> to vector<16x16x128xbf16>
    %25 = vector.shape_cast %24 : vector<16x16x128xbf16> to vector<256x128xbf16>
    %c2_16 = arith.constant 2 : index
    %c0_17 = arith.constant 0 : index
    %c0_18 = arith.constant 0 : index
    %26 = vector.load %arg3[%c2_16, %c0_17, %c0_18] : memref<9x128x128xbf16, #tpu.memory_space<vmem>>, vector<1x128x128xbf16>
    %27 = vector.shape_cast %26 : vector<1x128x128xbf16> to vector<128x128xbf16>
    %cst_19 = arith.constant dense<0.000000e+00> : vector<256x128xf32>
    %28 = tpu.matmul %25, %27, %cst_19 {dimension_numbers = #tpu.dot_dimension_numbers<[1], [0], [0], [1], [0, 0, 1, 1], [], []>} : vector<256x128xbf16>, vector<128x128xbf16>, vector<256x128xf32> -> vector<256x128xf32>
    %29 = arith.addf %20, %28 : vector<256x128xf32>
    %c1_i32_20 = arith.constant 1 : i32
    %30 = arith.addi %1, %c1_i32_20 : i32
    %c0_21 = arith.constant 0 : index
    %31 = arith.index_cast %30 : i32 to index
    %c0_22 = arith.constant 0 : index
    %c0_23 = arith.constant 0 : index
    %32 = vector.load %arg2[%c0_21, %31, %c0_22, %c0_23] : memref<1x18x18x128xbf16, #tpu.memory_space<vmem>>, vector<1x16x16x128xbf16>
    %33 = vector.shape_cast %32 : vector<1x16x16x128xbf16> to vector<16x16x128xbf16>
    %34 = vector.shape_cast %33 : vector<16x16x128xbf16> to vector<256x128xbf16>
    %c3 = arith.constant 3 : index
    %c0_24 = arith.constant 0 : index
    %c0_25 = arith.constant 0 : index
    %35 = vector.load %arg3[%c3, %c0_24, %c0_25] : memref<9x128x128xbf16, #tpu.memory_space<vmem>>, vector<1x128x128xbf16>
    %36 = vector.shape_cast %35 : vector<1x128x128xbf16> to vector<128x128xbf16>
    %cst_26 = arith.constant dense<0.000000e+00> : vector<256x128xf32>
    %37 = tpu.matmul %34, %36, %cst_26 {dimension_numbers = #tpu.dot_dimension_numbers<[1], [0], [0], [1], [0, 0, 1, 1], [], []>} : vector<256x128xbf16>, vector<128x128xbf16>, vector<256x128xf32> -> vector<256x128xf32>
    %38 = arith.addf %29, %37 : vector<256x128xf32>
    %c1_i32_27 = arith.constant 1 : i32
    %39 = arith.addi %1, %c1_i32_27 : i32
    %c0_28 = arith.constant 0 : index
    %40 = arith.index_cast %39 : i32 to index
    %c1_29 = arith.constant 1 : index
    %c0_30 = arith.constant 0 : index
    %41 = vector.load %arg2[%c0_28, %40, %c1_29, %c0_30] : memref<1x18x18x128xbf16, #tpu.memory_space<vmem>>, vector<1x16x16x128xbf16>
    %42 = vector.shape_cast %41 : vector<1x16x16x128xbf16> to vector<16x16x128xbf16>
    %43 = vector.shape_cast %42 : vector<16x16x128xbf16> to vector<256x128xbf16>
    %c4 = arith.constant 4 : index
    %c0_31 = arith.constant 0 : index
    %c0_32 = arith.constant 0 : index
    %44 = vector.load %arg3[%c4, %c0_31, %c0_32] : memref<9x128x128xbf16, #tpu.memory_space<vmem>>, vector<1x128x128xbf16>
    %45 = vector.shape_cast %44 : vector<1x128x128xbf16> to vector<128x128xbf16>
    %cst_33 = arith.constant dense<0.000000e+00> : vector<256x128xf32>
    %46 = tpu.matmul %43, %45, %cst_33 {dimension_numbers = #tpu.dot_dimension_numbers<[1], [0], [0], [1], [0, 0, 1, 1], [], []>} : vector<256x128xbf16>, vector<128x128xbf16>, vector<256x128xf32> -> vector<256x128xf32>
    %47 = arith.addf %38, %46 : vector<256x128xf32>
    %c1_i32_34 = arith.constant 1 : i32
    %48 = arith.addi %1, %c1_i32_34 : i32
    %c0_35 = arith.constant 0 : index
    %49 = arith.index_cast %48 : i32 to index
    %c2_36 = arith.constant 2 : index
    %c0_37 = arith.constant 0 : index
    %50 = vector.load %arg2[%c0_35, %49, %c2_36, %c0_37] : memref<1x18x18x128xbf16, #tpu.memory_space<vmem>>, vector<1x16x16x128xbf16>
    %51 = vector.shape_cast %50 : vector<1x16x16x128xbf16> to vector<16x16x128xbf16>
    %52 = vector.shape_cast %51 : vector<16x16x128xbf16> to vector<256x128xbf16>
    %c5 = arith.constant 5 : index
    %c0_38 = arith.constant 0 : index
    %c0_39 = arith.constant 0 : index
    %53 = vector.load %arg3[%c5, %c0_38, %c0_39] : memref<9x128x128xbf16, #tpu.memory_space<vmem>>, vector<1x128x128xbf16>
    %54 = vector.shape_cast %53 : vector<1x128x128xbf16> to vector<128x128xbf16>
    %cst_40 = arith.constant dense<0.000000e+00> : vector<256x128xf32>
    %55 = tpu.matmul %52, %54, %cst_40 {dimension_numbers = #tpu.dot_dimension_numbers<[1], [0], [0], [1], [0, 0, 1, 1], [], []>} : vector<256x128xbf16>, vector<128x128xbf16>, vector<256x128xf32> -> vector<256x128xf32>
    %56 = arith.addf %47, %55 : vector<256x128xf32>
    %c2_i32 = arith.constant 2 : i32
    %57 = arith.addi %1, %c2_i32 : i32
    %c0_41 = arith.constant 0 : index
    %58 = arith.index_cast %57 : i32 to index
    %c0_42 = arith.constant 0 : index
    %c0_43 = arith.constant 0 : index
    %59 = vector.load %arg2[%c0_41, %58, %c0_42, %c0_43] : memref<1x18x18x128xbf16, #tpu.memory_space<vmem>>, vector<1x16x16x128xbf16>
    %60 = vector.shape_cast %59 : vector<1x16x16x128xbf16> to vector<16x16x128xbf16>
    %61 = vector.shape_cast %60 : vector<16x16x128xbf16> to vector<256x128xbf16>
    %c6 = arith.constant 6 : index
    %c0_44 = arith.constant 0 : index
    %c0_45 = arith.constant 0 : index
    %62 = vector.load %arg3[%c6, %c0_44, %c0_45] : memref<9x128x128xbf16, #tpu.memory_space<vmem>>, vector<1x128x128xbf16>
    %63 = vector.shape_cast %62 : vector<1x128x128xbf16> to vector<128x128xbf16>
    %cst_46 = arith.constant dense<0.000000e+00> : vector<256x128xf32>
    %64 = tpu.matmul %61, %63, %cst_46 {dimension_numbers = #tpu.dot_dimension_numbers<[1], [0], [0], [1], [0, 0, 1, 1], [], []>} : vector<256x128xbf16>, vector<128x128xbf16>, vector<256x128xf32> -> vector<256x128xf32>
    %65 = arith.addf %56, %64 : vector<256x128xf32>
    %c2_i32_47 = arith.constant 2 : i32
    %66 = arith.addi %1, %c2_i32_47 : i32
    %c0_48 = arith.constant 0 : index
    %67 = arith.index_cast %66 : i32 to index
    %c1_49 = arith.constant 1 : index
    %c0_50 = arith.constant 0 : index
    %68 = vector.load %arg2[%c0_48, %67, %c1_49, %c0_50] : memref<1x18x18x128xbf16, #tpu.memory_space<vmem>>, vector<1x16x16x128xbf16>
    %69 = vector.shape_cast %68 : vector<1x16x16x128xbf16> to vector<16x16x128xbf16>
    %70 = vector.shape_cast %69 : vector<16x16x128xbf16> to vector<256x128xbf16>
    %c7 = arith.constant 7 : index
    %c0_51 = arith.constant 0 : index
    %c0_52 = arith.constant 0 : index
    %71 = vector.load %arg3[%c7, %c0_51, %c0_52] : memref<9x128x128xbf16, #tpu.memory_space<vmem>>, vector<1x128x128xbf16>
    %72 = vector.shape_cast %71 : vector<1x128x128xbf16> to vector<128x128xbf16>
    %cst_53 = arith.constant dense<0.000000e+00> : vector<256x128xf32>
    %73 = tpu.matmul %70, %72, %cst_53 {dimension_numbers = #tpu.dot_dimension_numbers<[1], [0], [0], [1], [0, 0, 1, 1], [], []>} : vector<256x128xbf16>, vector<128x128xbf16>, vector<256x128xf32> -> vector<256x128xf32>
    %74 = arith.addf %65, %73 : vector<256x128xf32>
    %c2_i32_54 = arith.constant 2 : i32
    %75 = arith.addi %1, %c2_i32_54 : i32
    %c0_55 = arith.constant 0 : index
    %76 = arith.index_cast %75 : i32 to index
    %c2_56 = arith.constant 2 : index
    %c0_57 = arith.constant 0 : index
    %77 = vector.load %arg2[%c0_55, %76, %c2_56, %c0_57] : memref<1x18x18x128xbf16, #tpu.memory_space<vmem>>, vector<1x16x16x128xbf16>
    %78 = vector.shape_cast %77 : vector<1x16x16x128xbf16> to vector<16x16x128xbf16>
    %79 = vector.shape_cast %78 : vector<16x16x128xbf16> to vector<256x128xbf16>
    %c8 = arith.constant 8 : index
    %c0_58 = arith.constant 0 : index
    %c0_59 = arith.constant 0 : index
    %80 = vector.load %arg3[%c8, %c0_58, %c0_59] : memref<9x128x128xbf16, #tpu.memory_space<vmem>>, vector<1x128x128xbf16>
    %81 = vector.shape_cast %80 : vector<1x128x128xbf16> to vector<128x128xbf16>
    %cst_60 = arith.constant dense<0.000000e+00> : vector<256x128xf32>
    %82 = tpu.matmul %79, %81, %cst_60 {dimension_numbers = #tpu.dot_dimension_numbers<[1], [0], [0], [1], [0, 0, 1, 1], [], []>} : vector<256x128xbf16>, vector<128x128xbf16>, vector<256x128xf32> -> vector<256x128xf32>
    %83 = arith.addf %74, %82 : vector<256x128xf32>
    %c0_61 = arith.constant 0 : index
    %c0_62 = arith.constant 0 : index
    %c0_63 = arith.constant 0 : index
    %84 = vector.load %arg4[%c0_61, %c0_62, %c0_63] : memref<1x256x128xf32, #tpu.memory_space<vmem>>, vector<1x256x128xf32>
    %85 = vector.shape_cast %84 : vector<1x256x128xf32> to vector<256x128xf32>
    %86 = vector.shape_cast %83 : vector<256x128xf32> to vector<1x256x128xf32>
    tpu.vector_store %arg4[%c0_61, %c0_62, %c0_63], %86 {strides = array<i32>} : memref<1x256x128xf32, #tpu.memory_space<vmem>>, vector<1x256x128xf32>,
    %cst_64 = arith.constant dense<0.000000e+00> : vector<128xf32>
    %87 = vector.multi_reduction <add>, %83, %cst_64 [0] : vector<256x128xf32> to vector<128xf32>
    %88 = vector.shape_cast %87 : vector<128xf32> to vector<1x128xf32>
    %89 = arith.mulf %83, %83 : vector<256x128xf32>
    %cst_65 = arith.constant dense<0.000000e+00> : vector<128xf32>
    %90 = vector.multi_reduction <add>, %89, %cst_65 [0] : vector<256x128xf32> to vector<128xf32>
    %91 = vector.shape_cast %90 : vector<128xf32> to vector<1x128xf32>
    %92 = tpu.concatenate %88, %91 in 0 : vector<1x128xf32>, vector<1x128xf32> -> vector<2x128xf32>
    %c0_66 = arith.constant 0 : index
    %c0_67 = arith.constant 0 : index
    %c0_68 = arith.constant 0 : index
    %c0_69 = arith.constant 0 : index
    %93 = vector.load %arg5[%c0_66, %c0_67, %c0_68, %c0_69] : memref<1x1x2x128xf32, #tpu.memory_space<vmem>>, vector<1x1x2x128xf32>
    %94 = vector.shape_cast %93 : vector<1x1x2x128xf32> to vector<2x128xf32>
    %95 = vector.shape_cast %92 : vector<2x128xf32> to vector<1x1x2x128xf32>
    tpu.vector_store %arg5[%c0_66, %c0_67, %c0_68, %c0_69], %95 {strides = array<i32>} : memref<1x1x2x128xf32, #tpu.memory_space<vmem>>, vector<1x1x2x128xf32>,
    return
  }
  func.func @transform_0(%arg0: i32, %arg1: i32) -> (i32, i32, i32, i32) {
    %c0_i32 = arith.constant 0 : i32
    %c0_i32_0 = arith.constant 0 : i32
    %c0_i32_1 = arith.constant 0 : i32
    %c0_i32_2 = arith.constant 0 : i32
    return %arg0, %c0_i32, %c0_i32_0, %c0_i32_1 : i32, i32, i32, i32
  }
  func.func @transform_1(%arg0: i32, %arg1: i32) -> (i32, i32, i32) {
    %c0_i32 = arith.constant 0 : i32
    %c0_i32_0 = arith.constant 0 : i32
    %c0_i32_1 = arith.constant 0 : i32
    %c0_i32_2 = arith.constant 0 : i32
    return %c0_i32, %c0_i32_0, %c0_i32_1 : i32, i32, i32
  }
  func.func @transform_2(%arg0: i32, %arg1: i32) -> (i32, i32, i32) {
    %c0_i32 = arith.constant 0 : i32
    %c0_i32_0 = arith.constant 0 : i32
    return %arg0, %arg1, %c0_i32 : i32, i32, i32
  }
  func.func @transform_3(%arg0: i32, %arg1: i32) -> (i32, i32, i32, i32) {
    %c0_i32 = arith.constant 0 : i32
    %c0_i32_0 = arith.constant 0 : i32
    %c0_i32_1 = arith.constant 0 : i32
    return %arg0, %arg1, %c0_i32, %c0_i32_0 : i32, i32, i32, i32
  }
}

module attributes {stable_mosaic.version = 11 : i64} {
  func.func @_bn_relu_kernel(%arg0: i32, %arg1: memref<512x128xf32, #tpu.memory_space<vmem>>, %arg2: memref<1x128xf32, #tpu.memory_space<vmem>>, %arg3: memref<1x128xf32, #tpu.memory_space<vmem>>, %arg4: memref<512x128xbf16, #tpu.memory_space<vmem>>) attributes {dimension_semantics = [#tpu.dimension_semantics<parallel>], iteration_bounds = array<i64: 1>, scalar_prefetch = 0 : i64, scratch_operands = 0 : i64, tpu.core_type = #tpu.core_type<tc>, window_params = [{transform_indices = @transform_0, window_bounds = array<i64: 512, 128>}, {pipeline_mode = #tpu.pipeline_mode<synchronous>, transform_indices = @transform_1, window_bounds = array<i64: 1, 128>}, {pipeline_mode = #tpu.pipeline_mode<synchronous>, transform_indices = @transform_2, window_bounds = array<i64: 1, 128>}, {transform_indices = @transform_3, window_bounds = array<i64: 512, 128>}]} {
    %c0 = arith.constant 0 : index
    %c0_0 = arith.constant 0 : index
    %0 = vector.load %arg1[%c0, %c0_0] : memref<512x128xf32, #tpu.memory_space<vmem>>, vector<512x128xf32>
    %c0_1 = arith.constant 0 : index
    %c0_2 = arith.constant 0 : index
    %1 = vector.load %arg2[%c0_1, %c0_2] : memref<1x128xf32, #tpu.memory_space<vmem>>, vector<1x128xf32>
    %2 = vector.broadcast %1 : vector<1x128xf32> to vector<512x128xf32>
    %3 = arith.mulf %0, %2 : vector<512x128xf32>
    %c0_3 = arith.constant 0 : index
    %c0_4 = arith.constant 0 : index
    %4 = vector.load %arg3[%c0_3, %c0_4] : memref<1x128xf32, #tpu.memory_space<vmem>>, vector<1x128xf32>
    %5 = vector.broadcast %4 : vector<1x128xf32> to vector<512x128xf32>
    %6 = arith.addf %3, %5 : vector<512x128xf32>
    %cst = arith.constant 0.000000e+00 : f32
    %7 = vector.broadcast %cst : f32 to vector<512x128xf32>
    %8 = arith.maximumf %6, %7 : vector<512x128xf32>
    %9 = arith.truncf %8 : vector<512x128xf32> to vector<512x128xbf16>
    %c0_5 = arith.constant 0 : index
    %c0_6 = arith.constant 0 : index
    %10 = vector.load %arg4[%c0_5, %c0_6] : memref<512x128xbf16, #tpu.memory_space<vmem>>, vector<512x128xbf16>
    tpu.vector_store %arg4[%c0_5, %c0_6], %9 {strides = array<i32>} : memref<512x128xbf16, #tpu.memory_space<vmem>>, vector<512x128xbf16>,
    return
  }
  func.func @transform_0(%arg0: i32) -> (i32, i32) {
    %c0_i32 = arith.constant 0 : i32
    %c0_i32_0 = arith.constant 0 : i32
    return %arg0, %c0_i32 : i32, i32
  }
  func.func @transform_1(%arg0: i32) -> (i32, i32) {
    %c0_i32 = arith.constant 0 : i32
    %c0_i32_0 = arith.constant 0 : i32
    %c0_i32_1 = arith.constant 0 : i32
    return %c0_i32, %c0_i32_0 : i32, i32
  }
  func.func @transform_2(%arg0: i32) -> (i32, i32) {
    %c0_i32 = arith.constant 0 : i32
    %c0_i32_0 = arith.constant 0 : i32
    %c0_i32_1 = arith.constant 0 : i32
    return %c0_i32, %c0_i32_0 : i32, i32
  }
  func.func @transform_3(%arg0: i32) -> (i32, i32) {
    %c0_i32 = arith.constant 0 : i32
    %c0_i32_0 = arith.constant 0 : i32
    return %arg0, %c0_i32 : i32, i32
  }
}

module attributes {stable_mosaic.version = 11 : i64} {
  func.func @_bn_relu_kernel(%arg0: i32, %arg1: memref<512x128xf32, #tpu.memory_space<vmem>>, %arg2: memref<1x128xf32, #tpu.memory_space<vmem>>, %arg3: memref<1x128xf32, #tpu.memory_space<vmem>>, %arg4: memref<512x128xf32, #tpu.memory_space<vmem>>) attributes {dimension_semantics = [#tpu.dimension_semantics<parallel>], iteration_bounds = array<i64: 1>, scalar_prefetch = 0 : i64, scratch_operands = 0 : i64, tpu.core_type = #tpu.core_type<tc>, window_params = [{transform_indices = @transform_0, window_bounds = array<i64: 512, 128>}, {pipeline_mode = #tpu.pipeline_mode<synchronous>, transform_indices = @transform_1, window_bounds = array<i64: 1, 128>}, {pipeline_mode = #tpu.pipeline_mode<synchronous>, transform_indices = @transform_2, window_bounds = array<i64: 1, 128>}, {transform_indices = @transform_3, window_bounds = array<i64: 512, 128>}]} {
    %c0 = arith.constant 0 : index
    %c0_0 = arith.constant 0 : index
    %0 = vector.load %arg1[%c0, %c0_0] : memref<512x128xf32, #tpu.memory_space<vmem>>, vector<512x128xf32>
    %c0_1 = arith.constant 0 : index
    %c0_2 = arith.constant 0 : index
    %1 = vector.load %arg2[%c0_1, %c0_2] : memref<1x128xf32, #tpu.memory_space<vmem>>, vector<1x128xf32>
    %2 = vector.broadcast %1 : vector<1x128xf32> to vector<512x128xf32>
    %3 = arith.mulf %0, %2 : vector<512x128xf32>
    %c0_3 = arith.constant 0 : index
    %c0_4 = arith.constant 0 : index
    %4 = vector.load %arg3[%c0_3, %c0_4] : memref<1x128xf32, #tpu.memory_space<vmem>>, vector<1x128xf32>
    %5 = vector.broadcast %4 : vector<1x128xf32> to vector<512x128xf32>
    %6 = arith.addf %3, %5 : vector<512x128xf32>
    %cst = arith.constant 0.000000e+00 : f32
    %7 = vector.broadcast %cst : f32 to vector<512x128xf32>
    %8 = arith.maximumf %6, %7 : vector<512x128xf32>
    %c0_5 = arith.constant 0 : index
    %c0_6 = arith.constant 0 : index
    %9 = vector.load %arg4[%c0_5, %c0_6] : memref<512x128xf32, #tpu.memory_space<vmem>>, vector<512x128xf32>
    tpu.vector_store %arg4[%c0_5, %c0_6], %8 {strides = array<i32>} : memref<512x128xf32, #tpu.memory_space<vmem>>, vector<512x128xf32>,
    return
  }
  func.func @transform_0(%arg0: i32) -> (i32, i32) {
    %c0_i32 = arith.constant 0 : i32
    %c0_i32_0 = arith.constant 0 : i32
    return %arg0, %c0_i32 : i32, i32
  }
  func.func @transform_1(%arg0: i32) -> (i32, i32) {
    %c0_i32 = arith.constant 0 : i32
    %c0_i32_0 = arith.constant 0 : i32
    %c0_i32_1 = arith.constant 0 : i32
    return %c0_i32, %c0_i32_0 : i32, i32
  }
  func.func @transform_2(%arg0: i32) -> (i32, i32) {
    %c0_i32 = arith.constant 0 : i32
    %c0_i32_0 = arith.constant 0 : i32
    %c0_i32_1 = arith.constant 0 : i32
    return %c0_i32, %c0_i32_0 : i32, i32
  }
  func.func @transform_3(%arg0: i32) -> (i32, i32) {
    %c0_i32 = arith.constant 0 : i32
    %c0_i32_0 = arith.constant 0 : i32
    return %arg0, %c0_i32 : i32, i32
  }
}

</mosaic_0001>

<bundles_post_ra>
// kernel: plain_block_forward.7
= control target key start
LH: loop header
LB: loop body
LE: loop exit
PB: predicated region body
PF: predicated region fallthrough
CT: control target
= control target key end

     0   :  { %s896_s0 = inlined_call_operand.vmem [shape: f32[512,128], index: 0, kind: input, shape index: {}]   ;;  %s897_s1 = inlined_call_operand.vmem [shape: f32[1,128], index: 1, kind: input, shape index: {}]   ;;  %s898_s2 = inlined_call_operand.vmem [shape: f32[1,128], index: 2, kind: input, shape index: {}]   ;;  %s899_s3 = inlined_call_operand.vmem [shape: f32[512,128], index: 3, kind: output, shape index: {}]  }
   0x1   :  { %v14_v0 = vld [vmem:[%s896_s0] sm:$0xff]  ;;  %v15_v4 = vld [vmem:[%s896_s0 + $0x8] sm:$0xff]  ;;  %v16_v5 = vld [vmem:[%s896_s0 + $0x10] sm:$0xff] }
   0x2   :  { %v380_v1 = vld [vmem:[%s897_s1] ss:$0 sm:$0xff]  ;;  %v17_v6 = vld [vmem:[%s896_s0 + $0x18] sm:$0xff]  ;;  %v19_v11 = vld [vmem:[%s896_s0 + $0x28] sm:$0xff] }
   0x3   :  { %v385_v2 = vld [vmem:[%s898_s2] ss:$0 sm:$0xff]  ;;  %v85_v3 = vmul.f32 %v380_v1, %v14_v0  ;;  %v86_v7 = vmul.f32 %v380_v1, %v15_v4  ;;  %v87_v8 = vmul.f32 %v380_v1, %v16_v5  ;;  %v88_v9 = vmul.f32 %v380_v1, %v17_v6  ;;  %v20_v12 = vld [vmem:[%s896_s0 + $0x30] sm:$0xff]  ;;  %v21_v17 = vld [vmem:[%s896_s0 + $0x38] sm:$0xff] }
   0x4   :  { %v18_v10 = vld [vmem:[%s896_s0 + $0x20] sm:$0xff]  ;;  %v90_v15 = vmul.f32 %v380_v1, %v19_v11  ;;  %v91_v16 = vmul.f32 %v380_v1, %v20_v12  ;;  %v92_v21 = vmul.f32 %v380_v1, %v21_v17  ;;  %v23_v27 = vld [vmem:[%s896_s0 + $0x48] sm:$0xff]  ;;  %v24_v28 = vld [vmem:[%s896_s0 + $0x50] sm:$0xff] }
   0x5   :  { %v156_v13 = vadd.f32 %v385_v2, %v85_v3  ;;  %v89_v14 = vmul.f32 %v380_v1, %v18_v10  ;;  %v157_v18 = vadd.f32 %v385_v2, %v86_v7  ;;  %v158_v19 = vadd.f32 %v385_v2, %v87_v8  ;;  %v22_v22 = vld [vmem:[%s896_s0 + $0x40] sm:$0xff]  ;;  %v25_v29 = vld [vmem:[%s896_s0 + $0x58] sm:$0xff]  ;;  %v27_v35 = vld [vmem:[%s896_s0 + $0x68] sm:$0xff] }
   0x6   :  { %v159_v20 = vadd.f32 %v385_v2, %v88_v9  ;;  %v161_v25 = vadd.f32 %v385_v2, %v90_v15  ;;  %v162_v26 = vadd.f32 %v385_v2, %v91_v16  ;;  %v163_v33 = vadd.f32 %v385_v2, %v92_v21  ;;  %v26_v34 = vld [vmem:[%s896_s0 + $0x60] sm:$0xff]  ;;  %v28_v36 = vld [vmem:[%s896_s0 + $0x70] sm:$0xff]  ;;  %v29_v41 = vld [vmem:[%s896_s0 + $0x78] sm:$0xff] }
   0x7   :  { %v220_v23 = vmax.f32 %v156_v13, 0.0  ;;  %v160_v24 = vadd.f32 %v385_v2, %v89_v14  ;;  %v221_v30 = vmax.f32 %v157_v18, 0.0  ;;  %v222_v31 = vmax.f32 %v158_v19, 0.0  ;;  %v30_v54 = vld [vmem:[%s896_s0 + $0x80] sm:$0xff]  ;;  %v31_v59 = vld [vmem:[%s896_s0 + $0x88] sm:$0xff]  ;;  %v32_v60 = vld [vmem:[%s896_s0 + $0x90] sm:$0xff] }
   0x8   :  { %v223_v32 = vmax.f32 %v159_v20, 0.0  ;;  %v225_v38 = vmax.f32 %v161_v25, 0.0  ;;  %v226_v39 = vmax.f32 %v162_v26, 0.0  ;;  %v93_v40 = vmul.f32 %v380_v1, %v22_v22  ;;  %v33_v61 = vld [vmem:[%s896_s0 + $0x98] sm:$0xff]  ;;  %v34_v4 = vld [vmem:[%s896_s0 + $0xa0] sm:$0xff]  ;;  %v35_v5 = vld [vmem:[%s896_s0 + $0xa8] sm:$0xff] }
   0x9   :  { %284 = vst [vmem:[%s899_s3] sm:$0xff] %v220_v23  ;;  %v224_v37 = vmax.f32 %v160_v24, 0.0  ;;  %285 = vst [vmem:[%s899_s3 + $0x8] sm:$0xff] %v221_v30  ;;  %v227_v42 = vmax.f32 %v163_v33, 0.0  ;;  %v94_v43 = vmul.f32 %v380_v1, %v23_v27  ;;  %v95_v44 = vmul.f32 %v380_v1, %v24_v28  ;;  %v36_v6 = vld [vmem:[%s896_s0 + $0xb0] sm:$0xff]  ;;  %v37_v11 = vld [vmem:[%s896_s0 + $0xb8] sm:$0xff] }
   0xa   :  { %286 = vst [vmem:[%s899_s3 + $0x10] sm:$0xff] %v222_v31  ;;  %287 = vst [vmem:[%s899_s3 + $0x18] sm:$0xff] %v223_v32  ;;  %v96_v45 = vmul.f32 %v380_v1, %v25_v29  ;;  %v164_v46 = vadd.f32 %v385_v2, %v93_v40  ;;  %v97_v47 = vmul.f32 %v380_v1, %v26_v34  ;;  %v38_v24 = vld [vmem:[%s896_s0 + $0xc0] sm:$0xff]  ;;  %v39_v29 = vld [vmem:[%s896_s0 + $0xc8] sm:$0xff] }
   0xb   :  { %288 = vst [vmem:[%s899_s3 + $0x20] sm:$0xff] %v224_v37  ;;  %289 = vst [vmem:[%s899_s3 + $0x28] sm:$0xff] %v225_v38  ;;  %v98_v48 = vmul.f32 %v380_v1, %v27_v35  ;;  %v99_v49 = vmul.f32 %v380_v1, %v28_v36  ;;  %v165_v50 = vadd.f32 %v385_v2, %v94_v43  ;;  %v40_v30 = vld [vmem:[%s896_s0 + $0xd0] sm:$0xff]  ;;  %v41_v31 = vld [vmem:[%s896_s0 + $0xd8] sm:$0xff] }
   0xc   :  { %290 = vst [vmem:[%s899_s3 + $0x30] sm:$0xff] %v226_v39  ;;  %291 = vst [vmem:[%s899_s3 + $0x38] sm:$0xff] %v227_v42  ;;  %v166_v51 = vadd.f32 %v385_v2, %v95_v44  ;;  %v167_v52 = vadd.f32 %v385_v2, %v96_v45  ;;  %v100_v53 = vmul.f32 %v380_v1, %v29_v41  ;;  %v228_v55 = vmax.f32 %v164_v46, 0.0  ;;  %v42_v36 = vld [vmem:[%s896_s0 + $0xe0] sm:$0xff]  ;;  %v43_v37 = vld [vmem:[%s896_s0 + $0xe8] sm:$0xff] }
   0xd   :  { %v168_v56 = vadd.f32 %v385_v2, %v97_v47  ;;  %v169_v57 = vadd.f32 %v385_v2, %v98_v48  ;;  %v170_v58 = vadd.f32 %v385_v2, %v99_v49  ;;  %v229_v62 = vmax.f32 %v165_v50, 0.0  ;;  %v44_v38 = vld [vmem:[%s896_s0 + $0xf0] sm:$0xff]  ;;  %v45_v43 = vld [vmem:[%s896_s0 + $0xf8] sm:$0xff] }
   0xe   :  { %v230_v63 = vmax.f32 %v166_v51, 0.0  ;;  %v231_v0 = vmax.f32 %v167_v52, 0.0  ;;  %v171_v3 = vadd.f32 %v385_v2, %v100_v53  ;;  %292 = vst [vmem:[%s899_s3 + $0x40] sm:$0xff] %v228_v55  ;;  %v101_v10 = vmul.f32 %v380_v1, %v30_v54 }
   0xf   :  { %v232_v7 = vmax.f32 %v168_v56, 0.0  ;;  %v233_v8 = vmax.f32 %v169_v57, 0.0  ;;  %v234_v9 = vmax.f32 %v170_v58, 0.0  ;;  %293 = vst [vmem:[%s899_s3 + $0x48] sm:$0xff] %v229_v62  ;;  %v102_v13 = vmul.f32 %v380_v1, %v31_v59  ;;  %v46_v56 = vld [vmem:[%s896_s0 + $0x100] sm:$0xff]  ;;  %v48_v62 = vld [vmem:[%s896_s0 + $0x110] sm:$0xff] }
  0x10   :  { %294 = vst [vmem:[%s899_s3 + $0x50] sm:$0xff] %v230_v63  ;;  %295 = vst [vmem:[%s899_s3 + $0x58] sm:$0xff] %v231_v0  ;;  %v235_v12 = vmax.f32 %v171_v3, 0.0  ;;  %v103_v14 = vmul.f32 %v380_v1, %v32_v60  ;;  %v104_v15 = vmul.f32 %v380_v1, %v33_v61  ;;  %v172_v16 = vadd.f32 %v385_v2, %v101_v10  ;;  %v47_v61 = vld [vmem:[%s896_s0 + $0x108] sm:$0xff]  ;;  %v49_v63 = vld [vmem:[%s896_s0 + $0x118] sm:$0xff] }
  0x11   :  { %296 = vst [vmem:[%s899_s3 + $0x60] sm:$0xff] %v232_v7  ;;  %297 = vst [vmem:[%s899_s3 + $0x68] sm:$0xff] %v233_v8  ;;  %v105_v17 = vmul.f32 %v380_v1, %v34_v4  ;;  %v106_v18 = vmul.f32 %v380_v1, %v35_v5  ;;  %v107_v19 = vmul.f32 %v380_v1, %v36_v6  ;;  %v50_v6 = vld [vmem:[%s896_s0 + $0x120] sm:$0xff]  ;;  %v51_v7 = vld [vmem:[%s896_s0 + $0x128] sm:$0xff] }
  0x12   :  { %298 = vst [vmem:[%s899_s3 + $0x70] sm:$0xff] %v234_v9  ;;  %299 = vst [vmem:[%s899_s3 + $0x78] sm:$0xff] %v235_v12  ;;  %v173_v20 = vadd.f32 %v385_v2, %v102_v13  ;;  %v174_v21 = vadd.f32 %v385_v2, %v103_v14  ;;  %v175_v22 = vadd.f32 %v385_v2, %v104_v15  ;;  %v236_v25 = vmax.f32 %v172_v16, 0.0  ;;  %v52_v8 = vld [vmem:[%s896_s0 + $0x130] sm:$0xff]  ;;  %v53_v13 = vld [vmem:[%s896_s0 + $0x138] sm:$0xff] }
  0x13   :  { %v108_v23 = vmul.f32 %v380_v1, %v37_v11  ;;  %v176_v26 = vadd.f32 %v385_v2, %v105_v17  ;;  %v177_v27 = vadd.f32 %v385_v2, %v106_v18  ;;  %v178_v28 = vadd.f32 %v385_v2, %v107_v19 }
  0x14   :  { %v237_v32 = vmax.f32 %v173_v20, 0.0  ;;  %v238_v33 = vmax.f32 %v174_v21, 0.0  ;;  %v239_v34 = vmax.f32 %v175_v22, 0.0  ;;  %300 = vst [vmem:[%s899_s3 + $0x80] sm:$0xff] %v236_v25  ;;  %v109_v42 = vmul.f32 %v380_v1, %v38_v24 }
  0x15   :  { %v179_v35 = vadd.f32 %v385_v2, %v108_v23  ;;  %v240_v39 = vmax.f32 %v176_v26, 0.0  ;;  %v241_v40 = vmax.f32 %v177_v27, 0.0  ;;  %v242_v41 = vmax.f32 %v178_v28, 0.0  ;;  %v54_v26 = vld [vmem:[%s896_s0 + $0x140] sm:$0xff] }
  0x16   :  { %301 = vst [vmem:[%s899_s3 + $0x88] sm:$0xff] %v237_v32  ;;  %302 = vst [vmem:[%s899_s3 + $0x90] sm:$0xff] %v238_v33  ;;  %v110_v45 = vmul.f32 %v380_v1, %v39_v29  ;;  %v111_v46 = vmul.f32 %v380_v1, %v40_v30  ;;  %v112_v47 = vmul.f32 %v380_v1, %v41_v31  ;;  %v55_v31 = vld [vmem:[%s896_s0 + $0x148] sm:$0xff]  ;;  %v56_v32 = vld [vmem:[%s896_s0 + $0x150] sm:$0xff] }
  0x17   :  { %303 = vst [vmem:[%s899_s3 + $0x98] sm:$0xff] %v239_v34  ;;  %v243_v44 = vmax.f32 %v179_v35, 0.0  ;;  %304 = vst [vmem:[%s899_s3 + $0xa0] sm:$0xff] %v240_v39  ;;  %v180_v48 = vadd.f32 %v385_v2, %v109_v42  ;;  %v113_v49 = vmul.f32 %v380_v1, %v42_v36  ;;  %v114_v50 = vmul.f32 %v380_v1, %v43_v37  ;;  %v57_v33 = vld [vmem:[%s896_s0 + $0x158] sm:$0xff]  ;;  %v59_v39 = vld [vmem:[%s896_s0 + $0x168] sm:$0xff] }
  0x18   :  { %305 = vst [vmem:[%s899_s3 + $0xa8] sm:$0xff] %v241_v40  ;;  %306 = vst [vmem:[%s899_s3 + $0xb0] sm:$0xff] %v242_v41  ;;  %v115_v51 = vmul.f32 %v380_v1, %v44_v38  ;;  %v181_v52 = vadd.f32 %v385_v2, %v110_v45  ;;  %v182_v53 = vadd.f32 %v385_v2, %v111_v46  ;;  %v58_v38 = vld [vmem:[%s896_s0 + $0x160] sm:$0xff]  ;;  %v60_v40 = vld [vmem:[%s896_s0 + $0x170] sm:$0xff] }
  0x19   :  { %307 = vst [vmem:[%s899_s3 + $0xb8] sm:$0xff] %v243_v44  ;;  %v183_v54 = vadd.f32 %v385_v2, %v112_v47  ;;  %v116_v55 = vmul.f32 %v380_v1, %v45_v43  ;;  %v244_v57 = vmax.f32 %v180_v48, 0.0  ;;  %v184_v58 = vadd.f32 %v385_v2, %v113_v49  ;;  %v61_v45 = vld [vmem:[%s896_s0 + $0x178] sm:$0xff] }
  0x1a   :  { %v185_v59 = vadd.f32 %v385_v2, %v114_v50  ;;  %v186_v60 = vadd.f32 %v385_v2, %v115_v51  ;;  %v245_v0 = vmax.f32 %v181_v52, 0.0  ;;  %v246_v3 = vmax.f32 %v182_v53, 0.0 }
  0x1b   :  { %v247_v4 = vmax.f32 %v183_v54, 0.0  ;;  %v187_v5 = vadd.f32 %v385_v2, %v116_v55  ;;  %308 = vst [vmem:[%s899_s3 + $0xc0] sm:$0xff] %v244_v57  ;;  %v248_v9 = vmax.f32 %v184_v58, 0.0  ;;  %v117_v12 = vmul.f32 %v380_v1, %v46_v56  ;;  %v62_v58 = vld [vmem:[%s896_s0 + $0x180] sm:$0xff] }
  0x1c   :  { %v249_v10 = vmax.f32 %v185_v59, 0.0  ;;  %v250_v11 = vmax.f32 %v186_v60, 0.0  ;;  %309 = vst [vmem:[%s899_s3 + $0xc8] sm:$0xff] %v245_v0  ;;  %310 = vst [vmem:[%s899_s3 + $0xd0] sm:$0xff] %v246_v3  ;;  %v118_v15 = vmul.f32 %v380_v1, %v47_v61  ;;  %v119_v16 = vmul.f32 %v380_v1, %v48_v62  ;;  %v64_v0 = vld [vmem:[%s896_s0 + $0x190] sm:$0xff]  ;;  %v65_v3 = vld [vmem:[%s896_s0 + $0x198] sm:$0xff] }
  0x1d   :  { %311 = vst [vmem:[%s899_s3 + $0xd8] sm:$0xff] %v247_v4  ;;  %v251_v14 = vmax.f32 %v187_v5, 0.0  ;;  %v120_v17 = vmul.f32 %v380_v1, %v49_v63  ;;  %312 = vst [vmem:[%s899_s3 + $0xe0] sm:$0xff] %v248_v9  ;;  %v188_v18 = vadd.f32 %v385_v2, %v117_v12  ;;  %v121_v19 = vmul.f32 %v380_v1, %v50_v6  ;;  %v63_v63 = vld [vmem:[%s896_s0 + $0x188] sm:$0xff] }
  0x1e   :  { %313 = vst [vmem:[%s899_s3 + $0xe8] sm:$0xff] %v249_v10  ;;  %314 = vst [vmem:[%s899_s3 + $0xf0] sm:$0xff] %v250_v11  ;;  %v122_v20 = vmul.f32 %v380_v1, %v51_v7  ;;  %v123_v21 = vmul.f32 %v380_v1, %v52_v8  ;;  %v189_v22 = vadd.f32 %v385_v2, %v118_v15  ;;  %v66_v8 = vld [vmem:[%s896_s0 + $0x1a0] sm:$0xff]  ;;  %v67_v9 = vld [vmem:[%s896_s0 + $0x1a8] sm:$0xff] }
  0x1f   :  { %315 = vst [vmem:[%s899_s3 + $0xf8] sm:$0xff] %v251_v14  ;;  %v190_v23 = vadd.f32 %v385_v2, %v119_v16  ;;  %v191_v24 = vadd.f32 %v385_v2, %v120_v17  ;;  %v124_v25 = vmul.f32 %v380_v1, %v53_v13  ;;  %v252_v27 = vmax.f32 %v188_v18, 0.0  ;;  %v68_v10 = vld [vmem:[%s896_s0 + $0x1b0] sm:$0xff]  ;;  %v69_v15 = vld [vmem:[%s896_s0 + $0x1b8] sm:$0xff] }
  0x20   :  { %v192_v28 = vadd.f32 %v385_v2, %v121_v19  ;;  %v193_v29 = vadd.f32 %v385_v2, %v122_v20  ;;  %v194_v30 = vadd.f32 %v385_v2, %v123_v21  ;;  %v253_v34 = vmax.f32 %v189_v22, 0.0 }
  0x21   :  { %v254_v35 = vmax.f32 %v190_v23, 0.0  ;;  %v255_v36 = vmax.f32 %v191_v24, 0.0  ;;  %v195_v37 = vadd.f32 %v385_v2, %v124_v25  ;;  %316 = vst [vmem:[%s899_s3 + $0x100] sm:$0xff] %v252_v27  ;;  %v125_v44 = vmul.f32 %v380_v1, %v54_v26 }
  0x22   :  { %v256_v41 = vmax.f32 %v192_v28, 0.0  ;;  %v257_v42 = vmax.f32 %v193_v29, 0.0  ;;  %v258_v43 = vmax.f32 %v194_v30, 0.0  ;;  %317 = vst [vmem:[%s899_s3 + $0x108] sm:$0xff] %v253_v34  ;;  %v126_v47 = vmul.f32 %v380_v1, %v55_v31  ;;  %v70_v28 = vld [vmem:[%s896_s0 + $0x1c0] sm:$0xff]  ;;  %v72_v34 = vld [vmem:[%s896_s0 + $0x1d0] sm:$0xff] }
  0x23   :  { %318 = vst [vmem:[%s899_s3 + $0x110] sm:$0xff] %v254_v35  ;;  %319 = vst [vmem:[%s899_s3 + $0x118] sm:$0xff] %v255_v36  ;;  %v259_v46 = vmax.f32 %v195_v37, 0.0  ;;  %v127_v48 = vmul.f32 %v380_v1, %v56_v32  ;;  %v128_v49 = vmul.f32 %v380_v1, %v57_v33  ;;  %v196_v50 = vadd.f32 %v385_v2, %v125_v44  ;;  %v71_v33 = vld [vmem:[%s896_s0 + $0x1c8] sm:$0xff]  ;;  %v73_v35 = vld [vmem:[%s896_s0 + $0x1d8] sm:$0xff] }
  0x24   :  { %320 = vst [vmem:[%s899_s3 + $0x120] sm:$0xff] %v256_v41  ;;  %321 = vst [vmem:[%s899_s3 + $0x128] sm:$0xff] %v257_v42  ;;  %v129_v51 = vmul.f32 %v380_v1, %v58_v38  ;;  %v130_v52 = vmul.f32 %v380_v1, %v59_v39  ;;  %v131_v53 = vmul.f32 %v380_v1, %v60_v40  ;;  %v74_v40 = vld [vmem:[%s896_s0 + $0x1e0] sm:$0xff]  ;;  %v75_v41 = vld [vmem:[%s896_s0 + $0x1e8] sm:$0xff] }
  0x25   :  { %322 = vst [vmem:[%s899_s3 + $0x130] sm:$0xff] %v258_v43  ;;  %323 = vst [vmem:[%s899_s3 + $0x138] sm:$0xff] %v259_v46  ;;  %v197_v54 = vadd.f32 %v385_v2, %v126_v47  ;;  %v198_v55 = vadd.f32 %v385_v2, %v127_v48  ;;  %v199_v56 = vadd.f32 %v385_v2, %v128_v49  ;;  %v260_v59 = vmax.f32 %v196_v50, 0.0  ;;  %v76_v42 = vld [vmem:[%s896_s0 + $0x1f0] sm:$0xff]  ;;  %v77_v47 = vld [vmem:[%s896_s0 + $0x1f8] sm:$0xff] }
  0x26   :  { %v132_v57 = vmul.f32 %v380_v1, %v61_v45  ;;  %v200_v60 = vadd.f32 %v385_v2, %v129_v51  ;;  %v201_v61 = vadd.f32 %v385_v2, %v130_v52  ;;  %v202_v62 = vadd.f32 %v385_v2, %v131_v53 }
  0x27   :  { %v261_v4 = vmax.f32 %v197_v54, 0.0  ;;  %v262_v5 = vmax.f32 %v198_v55, 0.0  ;;  %v263_v6 = vmax.f32 %v199_v56, 0.0  ;;  %324 = vst [vmem:[%s899_s3 + $0x140] sm:$0xff] %v260_v59  ;;  %v133_v14 = vmul.f32 %v380_v1, %v62_v58 }
  0x28   :  { %v203_v7 = vadd.f32 %v385_v2, %v132_v57  ;;  %v264_v11 = vmax.f32 %v200_v60, 0.0  ;;  %v265_v12 = vmax.f32 %v201_v61, 0.0  ;;  %v266_v13 = vmax.f32 %v202_v62, 0.0 }
  0x29   :  { %325 = vst [vmem:[%s899_s3 + $0x148] sm:$0xff] %v261_v4  ;;  %326 = vst [vmem:[%s899_s3 + $0x150] sm:$0xff] %v262_v5  ;;  %v134_v17 = vmul.f32 %v380_v1, %v63_v63  ;;  %v135_v18 = vmul.f32 %v380_v1, %v64_v0  ;;  %v136_v19 = vmul.f32 %v380_v1, %v65_v3 }
  0x2a   :  { %327 = vst [vmem:[%s899_s3 + $0x158] sm:$0xff] %v263_v6  ;;  %v267_v16 = vmax.f32 %v203_v7, 0.0  ;;  %328 = vst [vmem:[%s899_s3 + $0x160] sm:$0xff] %v264_v11  ;;  %v204_v20 = vadd.f32 %v385_v2, %v133_v14  ;;  %v137_v21 = vmul.f32 %v380_v1, %v66_v8  ;;  %v138_v22 = vmul.f32 %v380_v1, %v67_v9 }
  0x2b   :  { %329 = vst [vmem:[%s899_s3 + $0x168] sm:$0xff] %v265_v12  ;;  %330 = vst [vmem:[%s899_s3 + $0x170] sm:$0xff] %v266_v13  ;;  %v139_v23 = vmul.f32 %v380_v1, %v68_v10  ;;  %v205_v24 = vadd.f32 %v385_v2, %v134_v17  ;;  %v206_v25 = vadd.f32 %v385_v2, %v135_v18 }
  0x2c   :  { %331 = vst [vmem:[%s899_s3 + $0x178] sm:$0xff] %v267_v16  ;;  %v207_v26 = vadd.f32 %v385_v2, %v136_v19  ;;  %v140_v27 = vmul.f32 %v380_v1, %v69_v15  ;;  %v268_v29 = vmax.f32 %v204_v20, 0.0  ;;  %v208_v30 = vadd.f32 %v385_v2, %v137_v21 }
  0x2d   :  { %v209_v31 = vadd.f32 %v385_v2, %v138_v22  ;;  %v210_v32 = vadd.f32 %v385_v2, %v139_v23  ;;  %v269_v36 = vmax.f32 %v205_v24, 0.0  ;;  %v270_v37 = vmax.f32 %v206_v25, 0.0 }
  0x2e   :  { %v271_v38 = vmax.f32 %v207_v26, 0.0  ;;  %v211_v39 = vadd.f32 %v385_v2, %v140_v27  ;;  %332 = vst [vmem:[%s899_s3 + $0x180] sm:$0xff] %v268_v29  ;;  %v272_v43 = vmax.f32 %v208_v30, 0.0  ;;  %v141_v46 = vmul.f32 %v380_v1, %v70_v28 }
  0x2f   :  { %v273_v44 = vmax.f32 %v209_v31, 0.0  ;;  %v274_v45 = vmax.f32 %v210_v32, 0.0  ;;  %333 = vst [vmem:[%s899_s3 + $0x188] sm:$0xff] %v269_v36  ;;  %334 = vst [vmem:[%s899_s3 + $0x190] sm:$0xff] %v270_v37  ;;  %v142_v49 = vmul.f32 %v380_v1, %v71_v33  ;;  %v143_v50 = vmul.f32 %v380_v1, %v72_v34 }
  0x30   :  { %335 = vst [vmem:[%s899_s3 + $0x198] sm:$0xff] %v271_v38  ;;  %v275_v48 = vmax.f32 %v211_v39, 0.0  ;;  %v144_v51 = vmul.f32 %v380_v1, %v73_v35  ;;  %336 = vst [vmem:[%s899_s3 + $0x1a0] sm:$0xff] %v272_v43  ;;  %v212_v52 = vadd.f32 %v385_v2, %v141_v46  ;;  %v145_v53 = vmul.f32 %v380_v1, %v74_v40 }
  0x31   :  { %337 = vst [vmem:[%s899_s3 + $0x1a8] sm:$0xff] %v273_v44  ;;  %338 = vst [vmem:[%s899_s3 + $0x1b0] sm:$0xff] %v274_v45  ;;  %v146_v54 = vmul.f32 %v380_v1, %v75_v41  ;;  %v147_v55 = vmul.f32 %v380_v1, %v76_v42  ;;  %v213_v56 = vadd.f32 %v385_v2, %v142_v49 }
  0x32   :  { %339 = vst [vmem:[%s899_s3 + $0x1b8] sm:$0xff] %v275_v48  ;;  %v214_v57 = vadd.f32 %v385_v2, %v143_v50  ;;  %v215_v58 = vadd.f32 %v385_v2, %v144_v51  ;;  %v148_v59 = vmul.f32 %v380_v1, %v77_v47  ;;  %v276_v60 = vmax.f32 %v212_v52, 0.0 }
  0x33   :  { %v216_v61 = vadd.f32 %v385_v2, %v145_v53  ;;  %v217_v62 = vadd.f32 %v385_v2, %v146_v54  ;;  %v218_v63 = vadd.f32 %v385_v2, %v147_v55  ;;  %v277_v0 = vmax.f32 %v213_v56, 0.0 }
  0x34   :  { %v278_v3 = vmax.f32 %v214_v57, 0.0  ;;  %v279_v4 = vmax.f32 %v215_v58, 0.0  ;;  %v219_v5 = vadd.f32 %v385_v2, %v148_v59  ;;  %340 = vst [vmem:[%s899_s3 + $0x1c0] sm:$0xff] %v276_v60 }
  0x35   :  { %v280_v6 = vmax.f32 %v216_v61, 0.0  ;;  %v281_v7 = vmax.f32 %v217_v62, 0.0  ;;  %v282_v8 = vmax.f32 %v218_v63, 0.0  ;;  %341 = vst [vmem:[%s899_s3 + $0x1c8] sm:$0xff] %v277_v0 }
  0x36   :  { %342 = vst [vmem:[%s899_s3 + $0x1d0] sm:$0xff] %v278_v3  ;;  %343 = vst [vmem:[%s899_s3 + $0x1d8] sm:$0xff] %v279_v4  ;;  %v283_v1 = vmax.f32 %v219_v5, 0.0 }
  0x37   :  { %344 = vst [vmem:[%s899_s3 + $0x1e0] sm:$0xff] %v280_v6  ;;  %345 = vst [vmem:[%s899_s3 + $0x1e8] sm:$0xff] %v281_v7 }
  0x38   :  { %346 = vst [vmem:[%s899_s3 + $0x1f0] sm:$0xff] %v282_v8  ;;  %347 = vst [vmem:[%s899_s3 + $0x1f8] sm:$0xff] %v283_v1 }

// kernel: plain_block_forward.5
= control target key start
LH: loop header
LB: loop body
LE: loop exit
PB: predicated region body
PF: predicated region fallthrough
CT: control target
= control target key end

     0   :  { %s1375_s0 = inlined_call_operand.vmem [shape: f32[512,128], index: 0, kind: input, shape index: {}]   ;;  %s1376_s1 = inlined_call_operand.vmem [shape: f32[1,128], index: 1, kind: input, shape index: {}]   ;;  %s1377_s2 = inlined_call_operand.vmem [shape: f32[1,128], index: 2, kind: input, shape index: {}]   ;;  %s1378_s3 = inlined_call_operand.vmem [shape: bf16[512,128], index: 3, kind: output, shape index: {}]  }
   0x1   :  { %v14_v0 = vld [vmem:[%s1375_s0] sm:$0xff]  ;;  %v15_v1 = vld [vmem:[%s1375_s0 + $0x8] sm:$0xff]  ;;  %v16_v6 = vld [vmem:[%s1375_s0 + $0x10] sm:$0xff] }
   0x2   :  { %v958_v2 = vld [vmem:[%s1376_s1] ss:$0 sm:$0xff]  ;;  %v17_v7 = vld [vmem:[%s1375_s0 + $0x18] sm:$0xff]  ;;  %v19_v11 = vld [vmem:[%s1375_s0 + $0x28] sm:$0xff] }
   0x3   :  { %v85_v3 = vmul.f32 %v958_v2, %v14_v0  ;;  %v86_v4 = vmul.f32 %v958_v2, %v15_v1  ;;  %v965_v5 = vld [vmem:[%s1377_s2] ss:$0 sm:$0xff]  ;;  %v87_v8 = vmul.f32 %v958_v2, %v16_v6  ;;  %v88_v9 = vmul.f32 %v958_v2, %v17_v7  ;;  %v20_v12 = vld [vmem:[%s1375_s0 + $0x30] sm:$0xff]  ;;  %v21_v17 = vld [vmem:[%s1375_s0 + $0x38] sm:$0xff] }
   0x4   :  { %v18_v10 = vld [vmem:[%s1375_s0 + $0x20] sm:$0xff]  ;;  %v90_v16 = vmul.f32 %v958_v2, %v19_v11  ;;  %v91_v20 = vmul.f32 %v958_v2, %v20_v12  ;;  %v92_v21 = vmul.f32 %v958_v2, %v21_v17  ;;  %v23_v27 = vld [vmem:[%s1375_s0 + $0x48] sm:$0xff]  ;;  %v24_v32 = vld [vmem:[%s1375_s0 + $0x50] sm:$0xff] }
   0x5   :  { %v156_v13 = vadd.f32 %v965_v5, %v85_v3  ;;  %v157_v14 = vadd.f32 %v965_v5, %v86_v4  ;;  %v89_v15 = vmul.f32 %v958_v2, %v18_v10  ;;  %v158_v18 = vadd.f32 %v965_v5, %v87_v8  ;;  %v22_v22 = vld [vmem:[%s1375_s0 + $0x40] sm:$0xff]  ;;  %v25_v33 = vld [vmem:[%s1375_s0 + $0x58] sm:$0xff]  ;;  %v27_v39 = vld [vmem:[%s1375_s0 + $0x68] sm:$0xff] }
   0x6   :  { %v159_v19 = vadd.f32 %v965_v5, %v88_v9  ;;  %v161_v26 = vadd.f32 %v965_v5, %v90_v16  ;;  %v162_v30 = vadd.f32 %v965_v5, %v91_v20  ;;  %v163_v31 = vadd.f32 %v965_v5, %v92_v21  ;;  %v26_v38 = vld [vmem:[%s1375_s0 + $0x60] sm:$0xff]  ;;  %v28_v44 = vld [vmem:[%s1375_s0 + $0x70] sm:$0xff]  ;;  %v29_v49 = vld [vmem:[%s1375_s0 + $0x78] sm:$0xff] }
   0x7   :  { %v220_v23 = vmax.f32 %v156_v13, 0.0  ;;  %v221_v24 = vmax.f32 %v157_v14, 0.0  ;;  %v160_v25 = vadd.f32 %v965_v5, %v89_v15  ;;  %v222_v28 = vmax.f32 %v158_v18, 0.0  ;;  %v30_v54 = vld [vmem:[%s1375_s0 + $0x80] sm:$0xff]  ;;  %v31_v63 = vld [vmem:[%s1375_s0 + $0x88] sm:$0xff]  ;;  %v32_v6 = vld [vmem:[%s1375_s0 + $0x90] sm:$0xff] }
   0x8   :  { %v223_v29 = vmax.f32 %v159_v19, 0.0  ;;  %v225_v36 = vmax.f32 %v161_v26, 0.0  ;;  %v93_v37 = vmul.f32 %v958_v2, %v22_v22  ;;  %v226_v41 = vmax.f32 %v162_v30, 0.0  ;;  %v33_v7 = vld [vmem:[%s1375_s0 + $0x98] sm:$0xff]  ;;  %v34_v12 = vld [vmem:[%s1375_s0 + $0xa0] sm:$0xff]  ;;  %v35_v13 = vld [vmem:[%s1375_s0 + $0xa8] sm:$0xff] }
   0x9   :  { %v741_v34 = vpack.c.bf16 %v221_v24, %v220_v23  ;;  %v224_v35 = vmax.f32 %v160_v25, 0.0  ;;  %v227_v42 = vmax.f32 %v163_v31, 0.0  ;;  %v94_v43 = vmul.f32 %v958_v2, %v23_v27  ;;  %v36_v18 = vld [vmem:[%s1375_s0 + $0xb0] sm:$0xff]  ;;  %v37_v23 = vld [vmem:[%s1375_s0 + $0xb8] sm:$0xff] }
   0xa   :  { %v746_v40 = vpack.c.bf16 %v223_v29, %v222_v28  ;;  %v164_v46 = vadd.f32 %v965_v5, %v93_v37  ;;  %v95_v47 = vmul.f32 %v958_v2, %v24_v32  ;;  %v96_v48 = vmul.f32 %v958_v2, %v25_v33  ;;  %v38_v28 = vld [vmem:[%s1375_s0 + $0xc0] sm:$0xff]  ;;  %v39_v37 = vld [vmem:[%s1375_s0 + $0xc8] sm:$0xff] }
   0xb   :  { %742 = vst [vmem:[%s1378_s3] sm:$0xff] %v741_v34   ;;  %v751_v45 = vpack.c.bf16 %v225_v36, %v224_v35  ;;  %v756_v50 = vpack.c.bf16 %v227_v42, %v226_v41  ;;  %v165_v51 = vadd.f32 %v965_v5, %v94_v43  ;;  %v97_v52 = vmul.f32 %v958_v2, %v26_v38  ;;  %v40_v42 = vld [vmem:[%s1375_s0 + $0xd0] sm:$0xff]  ;;  %v41_v43 = vld [vmem:[%s1375_s0 + $0xd8] sm:$0xff] }
   0xc   :  { %898 = vst [vmem:[%s1378_s3 + $0x8] sm:$0xff] %v746_v40   ;;  %v98_v53 = vmul.f32 %v958_v2, %v27_v39  ;;  %v228_v55 = vmax.f32 %v164_v46, 0.0  ;;  %v166_v56 = vadd.f32 %v965_v5, %v95_v47  ;;  %v167_v57 = vadd.f32 %v965_v5, %v96_v48  ;;  %v42_v48 = vld [vmem:[%s1375_s0 + $0xe0] sm:$0xff] }
   0xd   :  { %899 = vst [vmem:[%s1378_s3 + $0x10] sm:$0xff] %v751_v45   ;;  %v99_v58 = vmul.f32 %v958_v2, %v28_v44  ;;  %900 = vst [vmem:[%s1378_s3 + $0x18] sm:$0xff] %v756_v50   ;;  %v229_v59 = vmax.f32 %v165_v51, 0.0  ;;  %v168_v60 = vadd.f32 %v965_v5, %v97_v52  ;;  %v100_v62 = vmul.f32 %v958_v2, %v29_v49  ;;  %v43_v49 = vld [vmem:[%s1375_s0 + $0xe8] sm:$0xff] }
   0xe   :  { %v169_v61 = vadd.f32 %v965_v5, %v98_v53  ;;  %v230_v0 = vmax.f32 %v166_v56, 0.0  ;;  %v231_v1 = vmax.f32 %v167_v57, 0.0  ;;  %v101_v4 = vmul.f32 %v958_v2, %v30_v54  ;;  %v44_v54 = vld [vmem:[%s1375_s0 + $0xf0] sm:$0xff] }
   0xf   :  { %v170_v3 = vadd.f32 %v965_v5, %v99_v58  ;;  %v761_v8 = vpack.c.bf16 %v229_v59, %v228_v55  ;;  %v232_v9 = vmax.f32 %v168_v60, 0.0  ;;  %v171_v11 = vadd.f32 %v965_v5, %v100_v62  ;;  %v45_v59 = vld [vmem:[%s1375_s0 + $0xf8] sm:$0xff] }
  0x10   :  { %v233_v10 = vmax.f32 %v169_v61, 0.0  ;;  %v766_v14 = vpack.c.bf16 %v231_v1, %v230_v0  ;;  %v102_v16 = vmul.f32 %v958_v2, %v31_v63  ;;  %v172_v17 = vadd.f32 %v965_v5, %v101_v4  ;;  %v46_v0 = vld [vmem:[%s1375_s0 + $0x100] sm:$0xff] }
  0x11   :  { %v234_v15 = vmax.f32 %v170_v3, 0.0  ;;  %901 = vst [vmem:[%s1378_s3 + $0x20] sm:$0xff] %v761_v8   ;;  %v235_v20 = vmax.f32 %v171_v11, 0.0  ;;  %v103_v21 = vmul.f32 %v958_v2, %v32_v6  ;;  %v104_v22 = vmul.f32 %v958_v2, %v33_v7  ;;  %v47_v11 = vld [vmem:[%s1375_s0 + $0x108] sm:$0xff] }
  0x12   :  { %v771_v19 = vpack.c.bf16 %v233_v10, %v232_v9  ;;  %902 = vst [vmem:[%s1378_s3 + $0x28] sm:$0xff] %v766_v14   ;;  %v173_v24 = vadd.f32 %v965_v5, %v102_v16  ;;  %v236_v25 = vmax.f32 %v172_v17, 0.0  ;;  %v105_v26 = vmul.f32 %v958_v2, %v34_v12  ;;  %v48_v16 = vld [vmem:[%s1375_s0 + $0x110] sm:$0xff]  ;;  %v49_v17 = vld [vmem:[%s1375_s0 + $0x118] sm:$0xff] }
  0x13   :  { %v106_v27 = vmul.f32 %v958_v2, %v35_v13  ;;  %v776_v29 = vpack.c.bf16 %v235_v20, %v234_v15  ;;  %v174_v30 = vadd.f32 %v965_v5, %v103_v21  ;;  %v175_v31 = vadd.f32 %v965_v5, %v104_v22  ;;  %v50_v22 = vld [vmem:[%s1375_s0 + $0x120] sm:$0xff] }
  0x14   :  { %903 = vst [vmem:[%s1378_s3 + $0x30] sm:$0xff] %v771_v19   ;;  %v107_v32 = vmul.f32 %v958_v2, %v36_v18  ;;  %v237_v33 = vmax.f32 %v173_v24, 0.0  ;;  %v176_v34 = vadd.f32 %v965_v5, %v105_v26  ;;  %v108_v36 = vmul.f32 %v958_v2, %v37_v23  ;;  %v51_v23 = vld [vmem:[%s1375_s0 + $0x128] sm:$0xff] }
  0x15   :  { %v177_v35 = vadd.f32 %v965_v5, %v106_v27  ;;  %904 = vst [vmem:[%s1378_s3 + $0x38] sm:$0xff] %v776_v29   ;;  %v238_v38 = vmax.f32 %v174_v30, 0.0  ;;  %v239_v39 = vmax.f32 %v175_v31, 0.0  ;;  %v109_v41 = vmul.f32 %v958_v2, %v38_v28  ;;  %v52_v28 = vld [vmem:[%s1375_s0 + $0x130] sm:$0xff] }
  0x16   :  { %v178_v40 = vadd.f32 %v965_v5, %v107_v32  ;;  %v781_v44 = vpack.c.bf16 %v237_v33, %v236_v25  ;;  %v240_v45 = vmax.f32 %v176_v34, 0.0  ;;  %v179_v47 = vadd.f32 %v965_v5, %v108_v36  ;;  %v53_v33 = vld [vmem:[%s1375_s0 + $0x138] sm:$0xff] }
  0x17   :  { %v241_v46 = vmax.f32 %v177_v35, 0.0  ;;  %v786_v50 = vpack.c.bf16 %v239_v39, %v238_v38  ;;  %v110_v52 = vmul.f32 %v958_v2, %v39_v37  ;;  %v180_v53 = vadd.f32 %v965_v5, %v109_v41  ;;  %v54_v38 = vld [vmem:[%s1375_s0 + $0x140] sm:$0xff] }
  0x18   :  { %v242_v51 = vmax.f32 %v178_v40, 0.0  ;;  %905 = vst [vmem:[%s1378_s3 + $0x40] sm:$0xff] %v781_v44   ;;  %v243_v56 = vmax.f32 %v179_v47, 0.0  ;;  %v111_v57 = vmul.f32 %v958_v2, %v40_v42  ;;  %v112_v58 = vmul.f32 %v958_v2, %v41_v43  ;;  %v55_v47 = vld [vmem:[%s1375_s0 + $0x148] sm:$0xff] }
  0x19   :  { %v791_v55 = vpack.c.bf16 %v241_v46, %v240_v45  ;;  %906 = vst [vmem:[%s1378_s3 + $0x48] sm:$0xff] %v786_v50   ;;  %v181_v60 = vadd.f32 %v965_v5, %v110_v52  ;;  %v244_v61 = vmax.f32 %v180_v53, 0.0  ;;  %v113_v62 = vmul.f32 %v958_v2, %v42_v48  ;;  %v56_v52 = vld [vmem:[%s1375_s0 + $0x150] sm:$0xff]  ;;  %v57_v53 = vld [vmem:[%s1375_s0 + $0x158] sm:$0xff] }
  0x1a   :  { %v114_v63 = vmul.f32 %v958_v2, %v43_v49  ;;  %v796_v1 = vpack.c.bf16 %v243_v56, %v242_v51  ;;  %v182_v3 = vadd.f32 %v965_v5, %v111_v57  ;;  %v183_v4 = vadd.f32 %v965_v5, %v112_v58  ;;  %v58_v58 = vld [vmem:[%s1375_s0 + $0x160] sm:$0xff] }
  0x1b   :  { %907 = vst [vmem:[%s1378_s3 + $0x50] sm:$0xff] %v791_v55   ;;  %v115_v6 = vmul.f32 %v958_v2, %v44_v54  ;;  %v245_v7 = vmax.f32 %v181_v60, 0.0  ;;  %v184_v8 = vadd.f32 %v965_v5, %v113_v62  ;;  %v116_v10 = vmul.f32 %v958_v2, %v45_v59  ;;  %v59_v59 = vld [vmem:[%s1375_s0 + $0x168] sm:$0xff] }
  0x1c   :  { %v185_v9 = vadd.f32 %v965_v5, %v114_v63  ;;  %908 = vst [vmem:[%s1378_s3 + $0x58] sm:$0xff] %v796_v1   ;;  %v246_v12 = vmax.f32 %v182_v3, 0.0  ;;  %v247_v13 = vmax.f32 %v183_v4, 0.0  ;;  %v117_v15 = vmul.f32 %v958_v2, %v46_v0  ;;  %v60_v0 = vld [vmem:[%s1375_s0 + $0x170] sm:$0xff] }
  0x1d   :  { %v186_v14 = vadd.f32 %v965_v5, %v115_v6  ;;  %v801_v18 = vpack.c.bf16 %v245_v7, %v244_v61  ;;  %v248_v19 = vmax.f32 %v184_v8, 0.0  ;;  %v187_v21 = vadd.f32 %v965_v5, %v116_v10  ;;  %v61_v7 = vld [vmem:[%s1375_s0 + $0x178] sm:$0xff] }
  0x1e   :  { %v249_v20 = vmax.f32 %v185_v9, 0.0  ;;  %v806_v24 = vpack.c.bf16 %v247_v13, %v246_v12  ;;  %v118_v26 = vmul.f32 %v958_v2, %v47_v11  ;;  %v188_v27 = vadd.f32 %v965_v5, %v117_v15  ;;  %v62_v12 = vld [vmem:[%s1375_s0 + $0x180] sm:$0xff] }
  0x1f   :  { %v250_v25 = vmax.f32 %v186_v14, 0.0  ;;  %909 = vst [vmem:[%s1378_s3 + $0x60] sm:$0xff] %v801_v18   ;;  %v251_v30 = vmax.f32 %v187_v21, 0.0  ;;  %v119_v31 = vmul.f32 %v958_v2, %v48_v16  ;;  %v120_v32 = vmul.f32 %v958_v2, %v49_v17  ;;  %v63_v21 = vld [vmem:[%s1375_s0 + $0x188] sm:$0xff] }
  0x20   :  { %v811_v29 = vpack.c.bf16 %v249_v20, %v248_v19  ;;  %910 = vst [vmem:[%s1378_s3 + $0x68] sm:$0xff] %v806_v24   ;;  %v189_v34 = vadd.f32 %v965_v5, %v118_v26  ;;  %v252_v35 = vmax.f32 %v188_v27, 0.0  ;;  %v121_v36 = vmul.f32 %v958_v2, %v50_v22  ;;  %v64_v26 = vld [vmem:[%s1375_s0 + $0x190] sm:$0xff]  ;;  %v65_v27 = vld [vmem:[%s1375_s0 + $0x198] sm:$0xff] }
  0x21   :  { %v122_v37 = vmul.f32 %v958_v2, %v51_v23  ;;  %v816_v39 = vpack.c.bf16 %v251_v30, %v250_v25  ;;  %v190_v40 = vadd.f32 %v965_v5, %v119_v31  ;;  %v191_v41 = vadd.f32 %v965_v5, %v120_v32  ;;  %v66_v32 = vld [vmem:[%s1375_s0 + $0x1a0] sm:$0xff] }
  0x22   :  { %911 = vst [vmem:[%s1378_s3 + $0x70] sm:$0xff] %v811_v29   ;;  %v123_v42 = vmul.f32 %v958_v2, %v52_v28  ;;  %v253_v43 = vmax.f32 %v189_v34, 0.0  ;;  %v192_v44 = vadd.f32 %v965_v5, %v121_v36  ;;  %v124_v46 = vmul.f32 %v958_v2, %v53_v33  ;;  %v67_v33 = vld [vmem:[%s1375_s0 + $0x1a8] sm:$0xff] }
  0x23   :  { %v193_v45 = vadd.f32 %v965_v5, %v122_v37  ;;  %912 = vst [vmem:[%s1378_s3 + $0x78] sm:$0xff] %v816_v39   ;;  %v254_v48 = vmax.f32 %v190_v40, 0.0  ;;  %v255_v49 = vmax.f32 %v191_v41, 0.0  ;;  %v125_v51 = vmul.f32 %v958_v2, %v54_v38  ;;  %v68_v38 = vld [vmem:[%s1375_s0 + $0x1b0] sm:$0xff] }
  0x24   :  { %v194_v50 = vadd.f32 %v965_v5, %v123_v42  ;;  %v821_v54 = vpack.c.bf16 %v253_v43, %v252_v35  ;;  %v256_v55 = vmax.f32 %v192_v44, 0.0  ;;  %v195_v57 = vadd.f32 %v965_v5, %v124_v46  ;;  %v69_v43 = vld [vmem:[%s1375_s0 + $0x1b8] sm:$0xff] }
  0x25   :  { %v257_v56 = vmax.f32 %v193_v45, 0.0  ;;  %v826_v60 = vpack.c.bf16 %v255_v49, %v254_v48  ;;  %v126_v62 = vmul.f32 %v958_v2, %v55_v47  ;;  %v196_v63 = vadd.f32 %v965_v5, %v125_v51  ;;  %v70_v48 = vld [vmem:[%s1375_s0 + $0x1c0] sm:$0xff] }
  0x26   :  { %v258_v61 = vmax.f32 %v194_v50, 0.0  ;;  %913 = vst [vmem:[%s1378_s3 + $0x80] sm:$0xff] %v821_v54   ;;  %v259_v3 = vmax.f32 %v195_v57, 0.0  ;;  %v127_v4 = vmul.f32 %v958_v2, %v56_v52  ;;  %v128_v6 = vmul.f32 %v958_v2, %v57_v53  ;;  %v71_v57 = vld [vmem:[%s1375_s0 + $0x1c8] sm:$0xff] }
  0x27   :  { %v831_v1 = vpack.c.bf16 %v257_v56, %v256_v55  ;;  %914 = vst [vmem:[%s1378_s3 + $0x88] sm:$0xff] %v826_v60   ;;  %v197_v8 = vadd.f32 %v965_v5, %v126_v62  ;;  %v260_v9 = vmax.f32 %v196_v63, 0.0  ;;  %v129_v10 = vmul.f32 %v958_v2, %v58_v58  ;;  %v72_v62 = vld [vmem:[%s1375_s0 + $0x1d0] sm:$0xff]  ;;  %v73_v63 = vld [vmem:[%s1375_s0 + $0x1d8] sm:$0xff] }
  0x28   :  { %v130_v11 = vmul.f32 %v958_v2, %v59_v59  ;;  %v836_v13 = vpack.c.bf16 %v259_v3, %v258_v61  ;;  %v198_v14 = vadd.f32 %v965_v5, %v127_v4  ;;  %v199_v15 = vadd.f32 %v965_v5, %v128_v6  ;;  %v74_v6 = vld [vmem:[%s1375_s0 + $0x1e0] sm:$0xff] }
  0x29   :  { %915 = vst [vmem:[%s1378_s3 + $0x90] sm:$0xff] %v831_v1   ;;  %v131_v16 = vmul.f32 %v958_v2, %v60_v0  ;;  %v261_v17 = vmax.f32 %v197_v8, 0.0  ;;  %v200_v18 = vadd.f32 %v965_v5, %v129_v10  ;;  %v132_v20 = vmul.f32 %v958_v2, %v61_v7  ;;  %v75_v7 = vld [vmem:[%s1375_s0 + $0x1e8] sm:$0xff] }
  0x2a   :  { %v201_v19 = vadd.f32 %v965_v5, %v130_v11  ;;  %916 = vst [vmem:[%s1378_s3 + $0x98] sm:$0xff] %v836_v13   ;;  %v262_v22 = vmax.f32 %v198_v14, 0.0  ;;  %v263_v23 = vmax.f32 %v199_v15, 0.0  ;;  %v133_v25 = vmul.f32 %v958_v2, %v62_v12  ;;  %v76_v12 = vld [vmem:[%s1375_s0 + $0x1f0] sm:$0xff] }
  0x2b   :  { %v202_v24 = vadd.f32 %v965_v5, %v131_v16  ;;  %v841_v28 = vpack.c.bf16 %v261_v17, %v260_v9  ;;  %v264_v29 = vmax.f32 %v200_v18, 0.0  ;;  %v203_v31 = vadd.f32 %v965_v5, %v132_v20  ;;  %v77_v17 = vld [vmem:[%s1375_s0 + $0x1f8] sm:$0xff] }
  0x2c   :  { %v265_v30 = vmax.f32 %v201_v19, 0.0  ;;  %v846_v34 = vpack.c.bf16 %v263_v23, %v262_v22  ;;  %v134_v36 = vmul.f32 %v958_v2, %v63_v21  ;;  %v204_v37 = vadd.f32 %v965_v5, %v133_v25 }
  0x2d   :  { %v266_v35 = vmax.f32 %v202_v24, 0.0  ;;  %917 = vst [vmem:[%s1378_s3 + $0xa0] sm:$0xff] %v841_v28   ;;  %v267_v40 = vmax.f32 %v203_v31, 0.0  ;;  %v135_v41 = vmul.f32 %v958_v2, %v64_v26  ;;  %v136_v42 = vmul.f32 %v958_v2, %v65_v27 }
  0x2e   :  { %v851_v39 = vpack.c.bf16 %v265_v30, %v264_v29  ;;  %918 = vst [vmem:[%s1378_s3 + $0xa8] sm:$0xff] %v846_v34   ;;  %v205_v44 = vadd.f32 %v965_v5, %v134_v36  ;;  %v268_v45 = vmax.f32 %v204_v37, 0.0  ;;  %v137_v46 = vmul.f32 %v958_v2, %v66_v32 }
  0x2f   :  { %v138_v47 = vmul.f32 %v958_v2, %v67_v33  ;;  %v856_v49 = vpack.c.bf16 %v267_v40, %v266_v35  ;;  %v206_v50 = vadd.f32 %v965_v5, %v135_v41  ;;  %v207_v51 = vadd.f32 %v965_v5, %v136_v42 }
  0x30   :  { %919 = vst [vmem:[%s1378_s3 + $0xb0] sm:$0xff] %v851_v39   ;;  %v139_v52 = vmul.f32 %v958_v2, %v68_v38  ;;  %v269_v53 = vmax.f32 %v205_v44, 0.0  ;;  %v208_v54 = vadd.f32 %v965_v5, %v137_v46  ;;  %v140_v56 = vmul.f32 %v958_v2, %v69_v43 }
  0x31   :  { %v209_v55 = vadd.f32 %v965_v5, %v138_v47  ;;  %920 = vst [vmem:[%s1378_s3 + $0xb8] sm:$0xff] %v856_v49   ;;  %v270_v58 = vmax.f32 %v206_v50, 0.0  ;;  %v271_v59 = vmax.f32 %v207_v51, 0.0  ;;  %v141_v61 = vmul.f32 %v958_v2, %v70_v48 }
  0x32   :  { %v210_v60 = vadd.f32 %v965_v5, %v139_v52  ;;  %v861_v0 = vpack.c.bf16 %v269_v53, %v268_v45  ;;  %v272_v1 = vmax.f32 %v208_v54, 0.0  ;;  %v211_v4 = vadd.f32 %v965_v5, %v140_v56 }
  0x33   :  { %v273_v3 = vmax.f32 %v209_v55, 0.0  ;;  %v866_v8 = vpack.c.bf16 %v271_v59, %v270_v58  ;;  %v142_v10 = vmul.f32 %v958_v2, %v71_v57  ;;  %v212_v11 = vadd.f32 %v965_v5, %v141_v61 }
  0x34   :  { %v274_v9 = vmax.f32 %v210_v60, 0.0  ;;  %921 = vst [vmem:[%s1378_s3 + $0xc0] sm:$0xff] %v861_v0   ;;  %v275_v14 = vmax.f32 %v211_v4, 0.0  ;;  %v143_v15 = vmul.f32 %v958_v2, %v72_v62  ;;  %v144_v16 = vmul.f32 %v958_v2, %v73_v63 }
  0x35   :  { %v871_v13 = vpack.c.bf16 %v273_v3, %v272_v1  ;;  %922 = vst [vmem:[%s1378_s3 + $0xc8] sm:$0xff] %v866_v8   ;;  %v213_v18 = vadd.f32 %v965_v5, %v142_v10  ;;  %v276_v19 = vmax.f32 %v212_v11, 0.0  ;;  %v145_v20 = vmul.f32 %v958_v2, %v74_v6 }
  0x36   :  { %v146_v21 = vmul.f32 %v958_v2, %v75_v7  ;;  %v876_v22 = vpack.c.bf16 %v275_v14, %v274_v9  ;;  %v214_v23 = vadd.f32 %v965_v5, %v143_v15  ;;  %v215_v24 = vadd.f32 %v965_v5, %v144_v16 }
  0x37   :  { %923 = vst [vmem:[%s1378_s3 + $0xd0] sm:$0xff] %v871_v13   ;;  %v147_v25 = vmul.f32 %v958_v2, %v76_v12  ;;  %v277_v26 = vmax.f32 %v213_v18, 0.0  ;;  %v216_v27 = vadd.f32 %v965_v5, %v145_v20  ;;  %v148_v29 = vmul.f32 %v958_v2, %v77_v17 }
  0x38   :  { %v217_v28 = vadd.f32 %v965_v5, %v146_v21  ;;  %924 = vst [vmem:[%s1378_s3 + $0xd8] sm:$0xff] %v876_v22   ;;  %v278_v30 = vmax.f32 %v214_v23, 0.0  ;;  %v279_v31 = vmax.f32 %v215_v24, 0.0 }
  0x39   :  { %v218_v32 = vadd.f32 %v965_v5, %v147_v25  ;;  %v881_v33 = vpack.c.bf16 %v277_v26, %v276_v19  ;;  %v280_v34 = vmax.f32 %v216_v27, 0.0  ;;  %v219_v36 = vadd.f32 %v965_v5, %v148_v29 }
  0x3a   :  { %v281_v35 = vmax.f32 %v217_v28, 0.0  ;;  %v886_v37 = vpack.c.bf16 %v279_v31, %v278_v30 }
  0x3b   :  { %v282_v38 = vmax.f32 %v218_v32, 0.0  ;;  %925 = vst [vmem:[%s1378_s3 + $0xe0] sm:$0xff] %v881_v33   ;;  %v283_v39 = vmax.f32 %v219_v36, 0.0 }
  0x3c   :  { %v891_v2 = vpack.c.bf16 %v281_v35, %v280_v34  ;;  %926 = vst [vmem:[%s1378_s3 + $0xe8] sm:$0xff] %v886_v37  }
  0x3d   :  { %v896_v40 = vpack.c.bf16 %v283_v39, %v282_v38 }
  0x3e   :  { %927 = vst [vmem:[%s1378_s3 + $0xf0] sm:$0xff] %v891_v2  }
  0x3f   :  { %928 = vst [vmem:[%s1378_s3 + $0xf8] sm:$0xff] %v896_v40  }

// kernel: plain_block_forward.4
= control target key start
LH: loop header
LB: loop body
LE: loop exit
PB: predicated region body
PF: predicated region fallthrough
CT: control target
= control target key end

     0   :  { %s7081_s12 = smov 0   ;;  %s7083_s13 = smov 0   ;;  %s8929_s0 = inlined_call_operand.vmem [shape: bf16[2,18,18,128], index: 0, kind: input, shape index: {}]   ;;  %s8930_s1 = inlined_call_operand.vmem [shape: bf16[9,128,128], index: 1, kind: input, shape index: {}]   ;;  %s8931_s2 = inlined_call_operand.vmem [shape: f32[2,256,128], index: 2, kind: output, shape index: {0}]   ;;  %s8932_s3 = inlined_call_operand.vmem [shape: f32[2,1,2,128], index: 3, kind: output, shape index: {1}]  }
   0x1   :  { %s7085_s14 = smov 0  }
   0x2 LB: > { %s26_s15 = sadd.s32 1, %s7055_s13  ;;  %p5310_p0 = scmp.ge.s32.totalorder %s7059_s14, 1  ;;  %s7059_s14 = sphi %s7085_s14, %s14_s14   ;;  %s7055_s13 = sphi %s7083_s13, %s9000_s13   ;;  %s7051_s12 = sphi %s7081_s12, %s8999_s12  }
   0x3   : > { %p28_p1 = scmp.ge.s32.totalorder %s26_s15, 2  ;;  %p156_p2 = scmp.lt.s32.totalorder %s7059_s14, 3 }
   0x5   : > { %s9002_s15 = smov (%p28_p1, %s26_s15), 0  ;;  %p157_p3 = pnand %p5310_p0, %p156_p2 }
   0x7   : > { %160 = sbr.rel (%p157_p3) target bundleno = 605 (0x25d), region = 28 }
   0xe   : > { %v6847_v0 = vld [vmem:[%s8930_s1 + $0x40] sm:$0xff]   ;;  %p191_p4 = scmp.lt.s32.totalorder %s7051_s12, 1  ;;  %v6849_v2 = vld [vmem:[%s8930_s1 + $0x48] sm:$0xff]   ;;  %v6851_v4 = vld [vmem:[%s8930_s1 + $0x50] sm:$0xff]   ;;  %vm282_vm0 = vsmask.f32 3328 }
   0xf   : > { %v6848_v1 = vld [vmem:[%s8930_s1 + $0x100] sm:$0xff]   ;;  %6118 = vmatprep.subr.bf16.mxu1 %v6847_v0  ;;  %v6850_v3 = vld [vmem:[%s8930_s1 + $0x108] sm:$0xff]   ;;  %v6852_v5 = vld [vmem:[%s8930_s1 + $0x110] sm:$0xff]   ;;  %vm283_vm1 = vsmask.f32 7440  ;;  %vm1312_vm3 = vcmask 1042432  }
  0x10   : > { %6310 = vmatprep.subr.bf16.mxu0 %v6848_v1  ;;  %6119 = vmatpush3.bf16.msra.mxu1 %v6847_v0  ;;  %s9004_s12 = smov (!%p191_p4, %s7051_s12), 1  ;;  %v6853_v6 = vld [vmem:[%s8930_s1 + $0x58] sm:$0xff]   ;;  %v6855_v8 = vld [vmem:[%s8930_s1 + $0x60] sm:$0xff]   ;;  %v6857_v10 = vld [vmem:[%s8930_s1 + $0x68] sm:$0xff]   ;;  %vm1313_vm4 = vcmask 1046532   ;;  %vm5171_vm6 = vcmask 1040384  }
  0x11   : > { %6311 = vmatpush3.bf16.msra.mxu0 %v6848_v1  ;;  %6120 = vmatprep.subr.bf16.mxu1 %v6849_v2  ;;  %v6854_v7 = vld [vmem:[%s8930_s1 + $0x118] sm:$0xff]   ;;  %s6822_s5 = smul.u32 216, %s9004_s12  ;;  %v6856_v9 = vld [vmem:[%s8930_s1 + $0x120] sm:$0xff]   ;;  %v6858_v11 = vld [vmem:[%s8930_s1 + $0x128] sm:$0xff]   ;;  %s5314_s28 = sshll.u32 %s9004_s12, 1 }
  0x12   : > { %6312 = vmatprep.subr.bf16.mxu0 %v6850_v3  ;;  %v6859_v25 = vld [vmem:[%s8930_s1 + $0x70] sm:$0xff]   ;;  %v6861_v36 = vld [vmem:[%s8930_s1 + $0x78] sm:$0xff]   ;;  %vm7167_vm2 = vmor %vm282_vm0, %vm283_vm1  ;;  %s212_s4 = scalar_lea.vmem %s8932_s3, %s5314_s28 }
  0x13   : > { %s7135_s16 = scalar_lea.vmem %s8929_s0, %s6822_s5  ;;  %v6860_v30 = vld [vmem:[%s8930_s1 + $0x130] sm:$0xff]   ;;  %v6862_v51 = vld [vmem:[%s8930_s1 + $0x138] sm:$0xff]   ;;  %vm7413_vm5 = vmor %vm1312_vm3, %vm1313_vm4 }
  0x14   : > { %6121 = vmatpush3.bf16.msra.mxu1 %v6849_v2  ;;  %v218_v12 = vld [vmem:[%s7135_s16] sm:$0xf]  ;;  %v219_v13 = vld [vmem:[%s7135_s16 + $0x4] sm:$0xf]  ;;  %v266_v14 = vld [vmem:[%s7135_s16 + $0x8] sm:$0x1] }
  0x15   : > { %6313 = vmatpush3.bf16.msra.mxu0 %v6850_v3  ;;  %6122 = vmatprep.subr.bf16.mxu1 %v6851_v4  ;;  %v286_v15 = vshrl.u32 %v218_v12, 16  ;;  %v289_v16 = vshll.u32 %v218_v12, 16  ;;  %v295_v17 = vshll.u32 %v219_v13, 16  ;;  %v299_v18 = vshrl.u32 %v219_v13, 16  ;;  %v5507_v20 = vld [vmem:[%s7135_s16 + $0xc] sm:$0xf] }
  0x16   : > { %6314 = vmatprep.subr.bf16.mxu0 %v6852_v5  ;;  %v305_v19 = vshll.u32 %v266_v14, 16  ;;  %v7148_v23 = vld [vmem:[%s7135_s16 + $0x10] sm:$0xf]  ;;  %v7151_v24 = vld [vmem:[%s7135_s16 + $0x14] sm:$0x1]  ;;  %v2188_v29 = vshrl.u32 %v5507_v20, 16 }
  0x17   : > { %v288_v21 = vrot.slane %v286_v15, 4  ;;  %v291_v22 = vrot.slane %v289_v16, 5  ;;  %v297_v26 = vrot.slane %v295_v17, 5  ;;  %v301_v27 = vrot.slane %v299_v18, 4  ;;  %v220_v35 = vld [vmem:[%s7135_s16 + $0xc] sm:$0xf] }
  0x18   : > { %6123 = vmatpush3.bf16.msra.mxu1 %v6851_v4  ;;  %v307_v28 = vrot.slane %v305_v19, 5  ;;  %v2191_v32 = vshll.u32 %v5507_v20, 16  ;;  %v2197_v33 = vshll.u32 %v7148_v23, 16  ;;  %v2201_v34 = vshrl.u32 %v7148_v23, 16  ;;  %v221_v42 = vld [vmem:[%s7135_s16 + $0x10] sm:$0xf] }
  0x19   : > { %6315 = vmatpush3.bf16.msra.mxu0 %v6852_v5  ;;  %6124 = vmatprep.subr.bf16.mxu1 %v6853_v6  ;;  %v292_v31 = vor.u32 %v291_v22, %v288_v21  ;;  %v302_v38 = vor.u32 %v301_v27, %v297_v26  ;;  %v2190_v39 = vrot.slane %v2188_v29, 4  ;;  %v2207_v40 = vshll.u32 %v7151_v24, 16  ;;  %v267_v55 = vld [vmem:[%s7135_s16 + $0x14] sm:$0x1]  ;;  %v5510_v57 = vld [vmem:[%s7135_s16 + $0x18] sm:$0xf] }
  0x1a   : > { %6316 = vmatprep.subr.bf16.mxu0 %v6854_v7  ;;  %v2962_v41 = vrot.slane %v7151_v24, 5  ;;  %v2193_v44 = vrot.slane %v2191_v32, 5  ;;  %v2199_v45 = vrot.slane %v2197_v33, 5  ;;  %v2203_v46 = vrot.slane %v2201_v34, 4  ;;  %v7184_v62 = vld [vmem:[%s7135_s16 + $0x1c] sm:$0xf] }
  0x1b   : > { %v293_v43 = vrot.slane %v292_v31, 4  ;;  %v303_v47 = vrot.slane %v302_v38, 4  ;;  %v2209_v48 = vrot.slane %v2207_v40, 5  ;;  %v310_v49 = vshrl.u32 %v220_v35, 16  ;;  %v6863_v3 = vld [vmem:[%s8930_s1] sm:$0xff]  }
  0x1c   : > { %6125 = vmatpush3.bf16.msra.mxu1 %v6853_v6  ;;  %v313_v50 = vshll.u32 %v220_v35, 16  ;;  %v2194_v53 = vor.u32 %v2193_v44, %v2190_v39  ;;  %v2204_v54 = vor.u32 %v2203_v46, %v2199_v45  ;;  %v319_v56 = vshll.u32 %v221_v42, 16  ;;  %v7192_v4 = vld [vmem:[%s8930_s1 + $0x140] sm:$0xff]   ;;  %v222_v21 = vld [vmem:[%s7135_s16 + $0x18] sm:$0xf]  ;;  %v6866_v46 = vld [vmem:[%s8930_s1 + $0x8] sm:$0xff]  }
  0x1d   : > { %6317 = vmatpush3.bf16.msra.mxu0 %v6854_v7  ;;  %6126 = vmatprep.subr.bf16.mxu1 %v6855_v8  ;;  %v298_v52 = vsel %vm7167_vm2, %v293_v43, %v297_v26  ;;  %v308_v58 = vsel %vm7167_vm2, %v303_v47, %v307_v28  ;;  %v312_v59 = vrot.slane %v310_v49, 4  ;;  %v323_v61 = vshrl.u32 %v221_v42, 16  ;;  %v223_v28 = vld [vmem:[%s7135_s16 + $0x1c] sm:$0xf]  ;;  %v268_v33 = vld [vmem:[%s7135_s16 + $0x20] sm:$0x1] }
  0x1e   : > { %6318 = vmatprep.subr.bf16.mxu0 %v6856_v9  ;;  %v315_v60 = vrot.slane %v313_v50, 5  ;;  %v5331_v63 = vcombine.low %v298_v52, %v308_v58  ;;  %v2195_v0 = vrot.slane %v2194_v53, 4  ;;  %v2205_v1 = vrot.slane %v2204_v54, 4  ;;  %v5513_v39 = vld [vmem:[%s7135_s16 + $0x24] sm:$0xf] }
  0x1f   : > { %v321_v2 = vrot.slane %v319_v56, 5  ;;  %v325_v6 = vrot.slane %v323_v61, 4  ;;  %v329_v7 = vshll.u32 %v267_v55, 16  ;;  %v2215_v12 = vshll.u32 %v5510_v57, 16  ;;  %v224_v52 = vld [vmem:[%s7135_s16 + $0x24] sm:$0xf] }
  0x20   : > { %6127 = vmatpush3.bf16.msra.mxu1 %v6855_v8  ;;  %v316_v5 = vor.u32 %v315_v60, %v312_v59  ;;  %v7195_v8 = vld [vmem:[%s7135_s16 + $0x20] sm:$0x1]  ;;  %6134 = vmatprep.mubr.bf16.mxu1 %v5331_v63  ;;  %v2221_v19 = vshll.u32 %v7184_v62, 16  ;;  %v2225_v20 = vshrl.u32 %v7184_v62, 16  ;;  %v2966_v27 = vrot.slane %v7184_v62, 5  ;;  %v6865_v63 = vld [vmem:[%s8930_s1 + $0x148] sm:$0xff]  }
  0x21   : > { %6319 = vmatpush3.bf16.msra.mxu0 %v6856_v9  ;;  %6128 = vmatprep.subr.bf16.mxu1 %v6857_v10  ;;  %v2200_v9 = vsel %vm7167_vm2, %v2195_v0, %v2199_v45  ;;  %v326_v15 = vor.u32 %v325_v6, %v321_v2  ;;  %v331_v16 = vrot.slane %v329_v7, 5  ;;  %v2217_v18 = vrot.slane %v2215_v12, 5  ;;  %v7220_v45 = vld [vmem:[%s7135_s16 + $0x28] sm:$0xf] }
  0x22   : > { %6320 = vmatprep.subr.bf16.mxu0 %v6858_v11  ;;  %v317_v14 = vrot.slane %v316_v5, 4  ;;  %v2231_v26 = vshll.u32 %v7195_v8, 16  ;;  %v2227_v31 = vrot.slane %v2225_v20, 4  ;;  %v2969_v32 = vrot.slane %v7195_v8, 5  ;;  %v225_v5 = vld [vmem:[%s7135_s16 + $0x28] sm:$0xf] }
  0x23   : > { %v334_v38 = vshrl.u32 %v222_v21, 16  ;;  %v337_v44 = vshll.u32 %v222_v21, 16  ;;  %v347_v49 = vshrl.u32 %v223_v28, 16  ;;  %v353_v50 = vshll.u32 %v268_v33, 16  ;;  %v7251_v33 = vld [vmem:[%s7135_s16 + $0x34] sm:$0xf] }
  0x24   : > { %6129 = vmatpush3.bf16.msra.mxu1 %v6857_v10  ;;  %v2210_v10 = vsel %vm7167_vm2, %v2205_v1, %v2209_v48  ;;  %v322_v22 = vsel %vm7167_vm2, %v317_v14, %v321_v2  ;;  %v2233_v35 = vrot.slane %v2231_v26, 5  ;;  %v343_v48 = vshll.u32 %v223_v28, 16 }
  0x25   : > { %6321 = vmatpush3.bf16.msra.mxu0 %v6858_v11  ;;  %6130 = vmatprep.subr.bf16.mxu1 %v6859_v25  ;;  %v2212_v11 = vshrl.u32 %v5510_v57, 16  ;;  %v5571_v13 = vcombine.low %v2200_v9, %v2210_v10  ;;  %v336_v47 = vrot.slane %v334_v38, 4  ;;  %v339_v55 = vrot.slane %v337_v44, 5 }
  0x26   : > { %6322 = vmatprep.subr.bf16.mxu0 %v6860_v30  ;;  %v2236_v56 = vshrl.u32 %v5513_v39, 16  ;;  %v345_v57 = vrot.slane %v343_v48, 5  ;;  %v349_v58 = vrot.slane %v347_v49, 4  ;;  %v355_v59 = vrot.slane %v353_v50, 5  ;;  %v6868_v48 = vld [vmem:[%s8930_s1 + $0x158] sm:$0xff]  }
  0x27   : > { %v2214_v17 = vrot.slane %v2212_v11, 4  ;;  %6326 = vmatprep.mubr.bf16.mxu0 %v5571_v13  ;;  %v2239_v60 = vshll.u32 %v5513_v39, 16  ;;  %v340_v0 = vor.u32 %v339_v55, %v336_v47  ;;  %v2245_v2 = vshll.u32 %v7220_v45, 16  ;;  %v269_v11 = vld [vmem:[%s7135_s16 + $0x2c] sm:$0x1] }
  0x28   : > { %6131 = vmatpush3.bf16.msra.mxu1 %v6859_v25  ;;  %v327_v25 = vrot.slane %v326_v15, 4  ;;  %v2238_v1 = vrot.slane %v2236_v56, 4  ;;  %v350_v7 = vor.u32 %v349_v58, %v345_v57  ;;  %v2249_v10 = vshrl.u32 %v7220_v45, 16 }
  0x29   : > { %6323 = vmatpush3.bf16.msra.mxu0 %v6860_v30  ;;  %6132 = vmatprep.subr.bf16.mxu1 %v6861_v36  ;;  %v2218_v29 = vor.u32 %v2217_v18, %v2214_v17  ;;  %v2223_v30 = vrot.slane %v2221_v19, 5  ;;  %v2241_v9 = vrot.slane %v2239_v60, 5  ;;  %v341_v12 = vrot.slane %v340_v0, 4  ;;  %v6875_v60 = vld [vmem:[%s8930_s1 + $0x20] sm:$0xff]  }
  0x2a   : > { %6324 = vmatprep.subr.bf16.mxu0 %v6862_v51  ;;  %v332_v34 = vsel %vm7167_vm2, %v327_v25, %v331_v16  ;;  %v2247_v13 = vrot.slane %v2245_v2, 5  ;;  %v358_v15 = vshrl.u32 %v224_v52, 16  ;;  %v5516_v16 = vld [vmem:[%s7135_s16 + $0x30] sm:$0xf]  ;;  %v351_v17 = vrot.slane %v350_v7, 4 }
  0x2b   : > { %v5332_v40 = vcombine.low %v322_v22, %v332_v34  ;;  %v2219_v42 = vrot.slane %v2218_v29, 4  ;;  %v2228_v43 = vor.u32 %v2227_v31, %v2223_v30  ;;  %v2242_v18 = vor.u32 %v2241_v9, %v2238_v1  ;;  %v6872_v34 = vld [vmem:[%s8930_s1 + $0x18] sm:$0xff]  }
  0x2c   : > { %6133 = vmatpush3.bf16.msra.mxu1 %v6861_v36  ;;  %v7216_v36 = vrot.slane %v2966_v27, 4  ;;  %v2251_v19 = vrot.slane %v2249_v10, 4  ;;  %v361_v20 = vshll.u32 %v224_v52, 16  ;;  %v346_v21 = vsel %vm7167_vm2, %v341_v12, %v345_v57  ;;  %v270_v2 = vld [vmem:[%s7135_s16 + $0x38] sm:$0x1] }
  0x2d   : > { %6325 = vmatpush3.bf16.msra.mxu0 %v6862_v51  ;;  %6166 = vmatprep.subr.bf16.mxu1 %v6863_v3  ;;  %v7226_v51 = vld [vmem:[%s7135_s16 + $0x2c] sm:$0x1]  ;;  %v2224_v53 = vsel %vm7167_vm2, %v2219_v42, %v2223_v30  ;;  %v2229_v54 = vrot.slane %v2228_v43, 4  ;;  %v360_v25 = vrot.slane %v358_v15, 4  ;;  %v367_v26 = vshll.u32 %v225_v5, 16 }
  0x2e   : > { %6358 = vmatprep.subr.bf16.mxu0 %v7192_v4  ;;  %v2255_v14 = vshll.u32 %v7226_v51, 16  ;;  %v356_v28 = vsel %vm7167_vm2, %v351_v17, %v355_v59  ;;  %v2243_v29 = vrot.slane %v2242_v18, 4  ;;  %v2252_v30 = vor.u32 %v2251_v19, %v2247_v13  ;;  %v227_v59 = vld [vmem:[%s7135_s16 + $0x34] sm:$0xf]  ;;  %v5519_v9 = vld [vmem:[%s7135_s16 + $0x3c] sm:$0xf] }
  0x2f   : > { %6135 = vmatmul.mubr.bf16.vlgmr.msra.gmra.mrb[0].mxu1 %v5332_v40  ;;  %v2234_v61 = vsel %vm7167_vm2, %v2229_v54, %v2233_v35  ;;  %v363_v31 = vrot.slane %v361_v20, 5  ;;  %v5333_v35 = vcombine.low %v346_v21, %v356_v28  ;;  %v369_v38 = vrot.slane %v367_v26, 5  ;;  %v226_v54 = vld [vmem:[%s7135_s16 + $0x30] sm:$0xf]  ;;  %v7285_v19 = vld [vmem:[%s7135_s16 + $0x40] sm:$0xf] }
  0x30   : > { %6167 = vmatpush3.bf16.msra.mxu1 %v6863_v3  ;;  %v6869_v3 = vld [vmem:[%s8930_s1 + $0x10] sm:$0xff]   ;;  %v5572_v6 = vcombine.low %v2224_v53, %v2234_v61  ;;  %v2257_v22 = vrot.slane %v2255_v14, 5  ;;  %v371_v39 = vshrl.u32 %v225_v5, 16  ;;  %v377_v40 = vshll.u32 %v269_v11, 16  ;;  %v6877_v14 = vld [vmem:[%s8930_s1 + $0x28] sm:$0xff]   ;;  %v6870_v20 = vld [vmem:[%s8930_s1 + $0x160] sm:$0xff]  }
  0x31   : > { %6168 = vmatprep.subr.bf16.mxu1 %v6866_v46  ;;  %v2248_v42 = vsel %vm7167_vm2, %v2243_v29, %v2247_v13  ;;  %v2253_v43 = vrot.slane %v2252_v30, 4  ;;  %v364_v44 = vor.u32 %v363_v31, %v360_v25  ;;  %v2260_v47 = vshrl.u32 %v5516_v16, 16  ;;  %6138 = vmatprep.mubr.bf16.mxu1 %v5333_v35  ;;  %v7293_v28 = vld [vmem:[%s7135_s16 + $0x44] sm:$0x1]  ;;  %v6879_v35 = vld [vmem:[%s8930_s1 + $0x30] sm:$0xff]  }
  0x32   : > { %6327 = vmatmul.mubr.bf16.vlgmr.msra.gmra.mrb[0].mxu0 %v5572_v6  ;;  %v373_v49 = vrot.slane %v371_v39, 4  ;;  %v379_v50 = vrot.slane %v377_v40, 5  ;;  %v2263_v52 = vshll.u32 %v5516_v16, 16  ;;  %v2269_v53 = vshll.u32 %v7251_v33, 16 }
  0x33   : > { %6359 = vmatpush3.bf16.msra.mxu0 %v7192_v4  ;;  %v6867_v4 = vld [vmem:[%s8930_s1 + $0x150] sm:$0xff]   ;;  %v2258_v55 = vsel %vm7167_vm2, %v2253_v43, %v2257_v22  ;;  %v365_v56 = vrot.slane %v364_v44, 4  ;;  %v2262_v57 = vrot.slane %v2260_v47, 4  ;;  %v2273_v58 = vshrl.u32 %v7251_v33, 16 }
  0x34   : > { %6169 = vmatpush3.bf16.msra.mxu1 %v6866_v46  ;;  %6360 = vmatprep.subr.bf16.mxu0 %v6865_v63  ;;  %v7262_v46 = vld [vmem:[%s7135_s16 + $0x38] sm:$0x1]  ;;  %v5573_v61 = vcombine.low %v2248_v42, %v2258_v55  ;;  %v2265_v0 = vrot.slane %v2263_v52, 5  ;;  %v2271_v1 = vrot.slane %v2269_v53, 5  ;;  %v382_v7 = vshrl.u32 %v226_v54, 16 }
  0x35   : > { %6170 = vmatprep.subr.bf16.mxu1 %v6869_v3  ;;  %v370_v5 = vsel %vm7167_vm2, %v365_v56, %v369_v38  ;;  %v2279_v6 = vshll.u32 %v7262_v46, 16  ;;  %v385_v12 = vshll.u32 %v226_v54, 16  ;;  %v391_v13 = vshll.u32 %v227_v59, 16  ;;  %v229_v55 = vld [vmem:[%s7135_s16 + $0x40] sm:$0xf] }
  0x36   : > { %6330 = vmatprep.mubr.bf16.mxu0 %v5573_v61  ;;  %v2266_v11 = vor.u32 %v2265_v0, %v2262_v57  ;;  %v384_v17 = vrot.slane %v382_v7, 4  ;;  %v395_v18 = vshrl.u32 %v227_v59, 16  ;;  %v2284_v40 = vshrl.u32 %v5519_v9, 16 }
  0x37   : > { %6361 = vmatpush3.bf16.msra.mxu0 %v6865_v63  ;;  %v374_v63 = vor.u32 %v373_v49, %v369_v38  ;;  %v2281_v16 = vrot.slane %v2279_v6, 5  ;;  %v387_v25 = vrot.slane %v385_v12, 5  ;;  %v393_v26 = vrot.slane %v391_v13, 5 }
  0x38   : > { %6171 = vmatpush3.bf16.msra.mxu1 %v6869_v3  ;;  %6362 = vmatprep.subr.bf16.mxu0 %v6867_v4  ;;  %v2275_v3 = vrot.slane %v2273_v58, 4  ;;  %v2267_v22 = vrot.slane %v2266_v11, 4  ;;  %v397_v31 = vrot.slane %v395_v18, 4  ;;  %v2287_v42 = vshll.u32 %v5519_v9, 16  ;;  %v5522_v9 = vld [vmem:[%s7135_s16 + $0x48] sm:$0xf] }
  0x39   : > { %6172 = vmatprep.subr.bf16.mxu1 %v6872_v34  ;;  %v375_v10 = vrot.slane %v374_v63, 4  ;;  %v388_v39 = vor.u32 %v387_v25, %v384_v17  ;;  %v2293_v49 = vshll.u32 %v7285_v19, 16  ;;  %v2286_v53 = vrot.slane %v2284_v40, 4  ;;  %v271_v63 = vld [vmem:[%s7135_s16 + $0x44] sm:$0x1] }
  0x3a   : > { %v2276_v15 = vor.u32 %v2275_v3, %v2271_v1  ;;  %v2272_v38 = vsel %vm7167_vm2, %v2267_v22, %v2271_v1  ;;  %v398_v44 = vor.u32 %v397_v31, %v393_v26  ;;  %v2289_v54 = vrot.slane %v2287_v42, 5  ;;  %v7326_v22 = vld [vmem:[%s7135_s16 + $0x50] sm:$0x1]  ;;  %v6874_v31 = vld [vmem:[%s8930_s1 + $0x178] sm:$0xff]  }
  0x3b   : > { %6363 = vmatpush3.bf16.msra.mxu0 %v6867_v4  ;;  %v380_v21 = vsel %vm7167_vm2, %v375_v10, %v379_v50  ;;  %v401_v4 = vshll.u32 %v270_v2, 16  ;;  %v389_v52 = vrot.slane %v388_v39, 4  ;;  %v2295_v57 = vrot.slane %v2293_v49, 5  ;;  %v6881_v2 = vld [vmem:[%s8930_s1 + $0x38] sm:$0xff]  }
  0x3c   : > { %6173 = vmatpush3.bf16.msra.mxu1 %v6872_v34  ;;  %6364 = vmatprep.subr.bf16.mxu0 %v6868_v48  ;;  %v5334_v29 = vcombine.low %v370_v5, %v380_v21  ;;  %v2277_v30 = vrot.slane %v2276_v15, 4  ;;  %v228_v34 = vld [vmem:[%s7135_s16 + $0x3c] sm:$0xf]  ;;  %v399_v56 = vrot.slane %v398_v44, 4  ;;  %v2297_v58 = vshrl.u32 %v7285_v19, 16  ;;  %v6873_v15 = vld [vmem:[%s8930_s1 + $0x170] sm:$0xff]  }
  0x3d   : > { %6174 = vmatprep.subr.bf16.mxu1 %v6875_v60  ;;  %v403_v47 = vrot.slane %v401_v4, 5  ;;  %v2303_v59 = vshll.u32 %v7293_v28, 16  ;;  %v2290_v61 = vor.u32 %v2289_v54, %v2286_v53  ;;  %v406_v0 = vshrl.u32 %v228_v34, 16  ;;  %v7337_v4 = vld [vmem:[%s8930_s1 + $0x80] sm:$0xff]   ;;  %v231_v53 = vld [vmem:[%s7135_s16 + $0x4c] sm:$0xf] }
  0x3e   : > { %6139 = vmatmul.mubr.bf16.gmra.mrb[4].mxu1 %v5334_v29  ;;  %v2282_v43 = vsel %vm7167_vm2, %v2277_v30, %v2281_v16  ;;  %v409_v1 = vshll.u32 %v228_v34, 16  ;;  %v2299_v3 = vrot.slane %v2297_v58, 4  ;;  %v415_v7 = vshll.u32 %v229_v55, 16  ;;  %v230_v30 = vld [vmem:[%s7135_s16 + $0x48] sm:$0xf] }
  0x3f   : > { %6365 = vmatpush3.bf16.msra.mxu0 %v6868_v48  ;;  %v5574_v50 = vcombine.low %v2272_v38, %v2282_v43  ;;  %v6871_v48 = vld [vmem:[%s8930_s1 + $0x168] sm:$0xff]   ;;  %v404_v5 = vsel %vm7167_vm2, %v399_v56, %v403_v47  ;;  %v2305_v6 = vrot.slane %v2303_v59, 5  ;;  %v2291_v11 = vrot.slane %v2290_v61, 4  ;;  %v272_v54 = vld [vmem:[%s7135_s16 + $0x50] sm:$0x1] }
  0x40   : > { %6175 = vmatpush3.bf16.msra.mxu1 %v6875_v60  ;;  %6366 = vmatprep.subr.bf16.mxu0 %v6870_v20  ;;  %v394_v60 = vsel %vm7167_vm2, %v389_v52, %v393_v26  ;;  %v408_v12 = vrot.slane %v406_v0, 4  ;;  %v411_v13 = vrot.slane %v409_v1, 5  ;;  %v2300_v16 = vor.u32 %v2299_v3, %v2295_v57  ;;  %v5525_v58 = vld [vmem:[%s7135_s16 + $0x54] sm:$0xf]  ;;  %v7351_v0 = vld [vmem:[%s7135_s16 + $0x58] sm:$0xf] }
  0x41   : > { %6176 = vmatprep.subr.bf16.mxu1 %v6877_v14  ;;  %6331 = vmatmul.mubr.bf16.gmra.mrb[4].mxu0 %v5574_v50  ;;  %v5335_v10 = vcombine.low %v394_v60, %v404_v5  ;;  %v417_v17 = vrot.slane %v415_v7, 5  ;;  %v419_v18 = vshrl.u32 %v229_v55, 16  ;;  %v425_v21 = vshll.u32 %v271_v63, 16 }
  0x42   : > { %v412_v25 = vor.u32 %v411_v13, %v408_v12  ;;  %v2308_v26 = vshrl.u32 %v5522_v9, 16  ;;  %v2311_v29 = vshll.u32 %v5522_v9, 16  ;;  %v2301_v34 = vrot.slane %v2300_v16, 4 }
  0x43   : > { %6367 = vmatpush3.bf16.msra.mxu0 %v6870_v20  ;;  %6142 = vmatprep.mubr.bf16.mxu1 %v5335_v10  ;;  %v2296_v20 = vsel %vm7167_vm2, %v2291_v11, %v2295_v57  ;;  %v427_v38 = vrot.slane %v425_v21, 5  ;;  %v2327_v52 = vshll.u32 %v7326_v22, 16  ;;  %v430_v61 = vshrl.u32 %v230_v30, 16 }
  0x44   : > { %6177 = vmatpush3.bf16.msra.mxu1 %v6877_v14  ;;  %v7320_v14 = vld [vmem:[%s7135_s16 + $0x4c] sm:$0xf]  ;;  %6368 = vmatprep.subr.bf16.mxu0 %v6871_v48  ;;  %v413_v40 = vrot.slane %v412_v25, 4  ;;  %v2310_v42 = vrot.slane %v2308_v26, 4  ;;  %v2313_v43 = vrot.slane %v2311_v29, 5  ;;  %v2306_v47 = vsel %vm7167_vm2, %v2301_v34, %v2305_v6  ;;  %v7356_v6 = vld [vmem:[%s8930_s1 + $0x180] sm:$0xff]  }
  0x45   : > { %6178 = vmatprep.subr.bf16.mxu1 %v6879_v35  ;;  %v2317_v39 = vshll.u32 %v7320_v14, 16  ;;  %v2321_v44 = vshrl.u32 %v7320_v14, 16  ;;  %v5575_v55 = vcombine.low %v2296_v20, %v2306_v47  ;;  %v2329_v60 = vrot.slane %v2327_v52, 5  ;;  %v7363_v20 = vld [vmem:[%s7135_s16 + $0x5c] sm:$0x1] }
  0x46   : > { %v2314_v56 = vor.u32 %v2313_v43, %v2310_v42  ;;  %v433_v63 = vshll.u32 %v230_v30, 16  ;;  %v443_v3 = vshrl.u32 %v231_v53, 16  ;;  %v432_v9 = vrot.slane %v430_v61, 4  ;;  %v233_v43 = vld [vmem:[%s7135_s16 + $0x58] sm:$0xf] }
  0x47   : > { %6369 = vmatpush3.bf16.msra.mxu0 %v6871_v48  ;;  %v2319_v50 = vrot.slane %v2317_v39, 5  ;;  %v418_v48 = vsel %vm7167_vm2, %v413_v40, %v417_v17  ;;  %v2323_v57 = vrot.slane %v2321_v44, 4  ;;  %6334 = vmatprep.mubr.bf16.mxu0 %v5575_v55  ;;  %v449_v11 = vshll.u32 %v272_v54, 16  ;;  %v5528_v52 = vld [vmem:[%s7135_s16 + $0x60] sm:$0xf] }
  0x48   : > { %6179 = vmatpush3.bf16.msra.mxu1 %v6879_v35  ;;  %v421_v35 = vrot.slane %v419_v18, 4  ;;  %6370 = vmatprep.subr.bf16.mxu0 %v6873_v15  ;;  %v2315_v1 = vrot.slane %v2314_v56, 4  ;;  %v435_v10 = vrot.slane %v433_v63, 5  ;;  %v445_v18 = vrot.slane %v443_v3, 4 }
  0x49   : > { %6180 = vmatprep.subr.bf16.mxu1 %v6881_v2  ;;  %v2324_v5 = vor.u32 %v2323_v57, %v2319_v50  ;;  %v451_v21 = vrot.slane %v449_v11, 5  ;;  %v2332_v25 = vshrl.u32 %v5525_v58, 16  ;;  %v2335_v29 = vshll.u32 %v5525_v58, 16 }
  0x4a   : > { %v422_v49 = vor.u32 %v421_v35, %v417_v17  ;;  %v2320_v13 = vsel %vm7167_vm2, %v2315_v1, %v2319_v50  ;;  %v436_v17 = vor.u32 %v435_v10, %v432_v9  ;;  %v2341_v30 = vshll.u32 %v7351_v0, 16  ;;  %v232_v35 = vld [vmem:[%s7135_s16 + $0x54] sm:$0xf]  ;;  %v273_v50 = vld [vmem:[%s7135_s16 + $0x5c] sm:$0x1] }
  0x4b   : > { %6371 = vmatpush3.bf16.msra.mxu0 %v6873_v15  ;;  %v2325_v15 = vrot.slane %v2324_v5, 4  ;;  %v2345_v34 = vshrl.u32 %v7351_v0, 16  ;;  %v2334_v42 = vrot.slane %v2332_v25, 4  ;;  %v454_v55 = vshrl.u32 %v232_v35, 16  ;;  %v7391_v25 = vld [vmem:[%s7135_s16 + $0x60] sm:$0xf] }
  0x4c   : > { %6181 = vmatpush3.bf16.msra.mxu1 %v6881_v2  ;;  %v423_v59 = vrot.slane %v422_v49, 4  ;;  %v439_v2 = vshll.u32 %v231_v53, 16  ;;  %6372 = vmatprep.subr.bf16.mxu0 %v6874_v31  ;;  %v437_v39 = vrot.slane %v436_v17, 4  ;;  %v2343_v44 = vrot.slane %v2341_v30, 5  ;;  %v7387_v17 = vld [vmem:[%s7135_s16 + $0x68] sm:$0x1] }
  0x4d   : > { %6214 = vmatprep.subr.bf16.mxu1 %v7337_v4  ;;  %v2330_v26 = vsel %vm7167_vm2, %v2325_v15, %v2329_v60  ;;  %v2347_v47 = vrot.slane %v2345_v34, 4  ;;  %v2351_v49 = vshll.u32 %v7363_v20, 16  ;;  %v7378_v60 = vld [vmem:[%s7135_s16 + $0x64] sm:$0xf]  ;;  %v456_v63 = vrot.slane %v454_v55, 4 }
  0x4e   : > { %v428_v7 = vsel %vm7167_vm2, %v423_v59, %v427_v38  ;;  %v441_v16 = vrot.slane %v439_v2, 5  ;;  %v5576_v38 = vcombine.low %v2320_v13, %v2330_v26  ;;  %v463_v59 = vshll.u32 %v233_v43, 16 }
  0x4f   : > { %v5336_v12 = vcombine.low %v418_v48, %v428_v7  ;;  %6373 = vmatpush3.bf16.msra.mxu0 %v6874_v31  ;;  %v2337_v31 = vrot.slane %v2335_v29, 5  ;;  %v457_v48 = vshll.u32 %v232_v35, 16  ;;  %v2348_v57 = vor.u32 %v2347_v47, %v2343_v44  ;;  %v7394_v35 = vld [vmem:[%s7135_s16 + $0x64] sm:$0xf] }
  0x50   : > { %6406 = vmatprep.subr.bf16.mxu0 %v7356_v6  ;;  %v446_v40 = vor.u32 %v445_v18, %v441_v16  ;;  %6335 = vmatmul.mubr.bf16.gmra.mrb[8].mxu0 %v5576_v38  ;;  %v442_v53 = vsel %vm7167_vm2, %v437_v39, %v441_v16  ;;  %v2353_v58 = vrot.slane %v2351_v49, 5  ;;  %v467_v5 = vshrl.u32 %v233_v43, 16  ;;  %v274_v43 = vld [vmem:[%s7135_s16 + $0x68] sm:$0x1] }
  0x51   : > { %6143 = vmatmul.mubr.bf16.gmra.mrb[8].mxu1 %v5336_v12  ;;  %v2338_v56 = vor.u32 %v2337_v31, %v2334_v42  ;;  %v459_v1 = vrot.slane %v457_v48, 5  ;;  %v2349_v7 = vrot.slane %v2348_v57, 4  ;;  %v465_v9 = vrot.slane %v463_v59, 5 }
  0x52   : > { %v447_v54 = vrot.slane %v446_v40, 4  ;;  %v469_v11 = vrot.slane %v467_v5, 4  ;;  %v473_v12 = vshll.u32 %v273_v50, 16  ;;  %v2356_v13 = vshrl.u32 %v5528_v52, 16  ;;  %v5595_v50 = vld [vmem:[%s7135_s16 + $0xc] sm:$0xe] }
  0x53   : > { %v2339_v3 = vrot.slane %v2338_v56, 4  ;;  %v460_v10 = vor.u32 %v459_v1, %v456_v63  ;;  %v2354_v16 = vsel %vm7167_vm2, %v2349_v7, %v2353_v58  ;;  %v2359_v18 = vshll.u32 %v5528_v52, 16  ;;  %v7409_v5 = vld [vmem:[%s7135_s16 + $0x6c] sm:$0xf] }
  0x54   : > { %v452_v61 = vsel %vm7167_vm2, %v447_v54, %v451_v21  ;;  %v2365_v21 = vshll.u32 %v7378_v60, 16  ;;  %v470_v30 = vor.u32 %v469_v11, %v465_v9  ;;  %v475_v34 = vrot.slane %v473_v12, 5 }
  0x55   : > { %v5337_v2 = vcombine.low %v442_v53, %v452_v61  ;;  %v2344_v15 = vsel %vm7167_vm2, %v2339_v3, %v2343_v44  ;;  %v461_v29 = vrot.slane %v460_v10, 4  ;;  %v2358_v38 = vrot.slane %v2356_v13, 4 }
  0x56   : > { %v5577_v26 = vcombine.low %v2344_v15, %v2354_v16  ;;  %v2361_v39 = vrot.slane %v2359_v18, 5  ;;  %v2367_v40 = vrot.slane %v2365_v21, 5  ;;  %v2369_v42 = vshrl.u32 %v7378_v60, 16  ;;  %v7421_v21 = vld [vmem:[%s7135_s16 + $0x70] sm:$0xf] }
  0x57   : > { %6146 = vmatprep.mubr.bf16.mxu1 %v5337_v2  ;;  %v466_v31 = vsel %vm7167_vm2, %v461_v29, %v465_v9  ;;  %v471_v44 = vrot.slane %v470_v30, 4  ;;  %v2375_v47 = vshll.u32 %v7387_v17, 16  ;;  %v478_v49 = vshrl.u32 %v7391_v25, 16  ;;  %v6965_v9 = vld [vmem:[%s7135_s16 + $0xb4] sm:$0xff]  }
  0x58   : > { %6338 = vmatprep.mubr.bf16.mxu0 %v5577_v26  ;;  %v2362_v52 = vor.u32 %v2361_v39, %v2358_v38  ;;  %v2371_v53 = vrot.slane %v2369_v42, 4  ;;  %v481_v54 = vshll.u32 %v7391_v25, 16  ;;  %v487_v55 = vshll.u32 %v7394_v35, 16 }
  0x59   : > { %v476_v48 = vsel %vm7167_vm2, %v471_v44, %v475_v34  ;;  %v2377_v56 = vrot.slane %v2375_v47, 5  ;;  %v480_v57 = vrot.slane %v478_v49, 4  ;;  %v491_v58 = vshrl.u32 %v7394_v35, 16  ;;  %v7432_v47 = vld [vmem:[%s7135_s16 + $0x78] sm:$0xf] }
  0x5a   : > { %v5338_v59 = vcombine.low %v466_v31, %v476_v48  ;;  %v2363_v61 = vrot.slane %v2362_v52, 4  ;;  %v2372_v63 = vor.u32 %v2371_v53, %v2367_v40  ;;  %v483_v1 = vrot.slane %v481_v54, 5  ;;  %v7443_v54 = vld [vmem:[%s7135_s16 + $0x7c] sm:$0xf] }
  0x5b   : > { %v489_v2 = vrot.slane %v487_v55, 5  ;;  %v493_v3 = vrot.slane %v491_v58, 4  ;;  %v497_v7 = vshll.u32 %v274_v43, 16  ;;  %v5611_v10 = vrot.slane %v5595_v50, 9  ;;  %v276_v58 = vld [vmem:[%s7135_s16 + $0x80] sm:$0x1] }
  0x5c   : > { %6147 = vmatmul.mubr.bf16.gmra.mrb[12].mxu1 %v5338_v59  ;;  %v2368_v11 = vsel %vm7167_vm2, %v2363_v61, %v2367_v40  ;;  %v2373_v12 = vrot.slane %v2372_v63, 4  ;;  %v484_v13 = vor.u32 %v483_v1, %v480_v57  ;;  %v2959_v15 = vrot.slane %v7148_v23, 5  ;;  %v275_v40 = vld [vmem:[%s7135_s16 + $0x74] sm:$0x1]  ;;  %v5596_v23 = vld [vmem:[%s7135_s16 + $0x18] sm:$0xe] }
  0x5d   : > { %v494_v16 = vor.u32 %v493_v3, %v489_v2  ;;  %v499_v18 = vrot.slane %v497_v7, 5  ;;  %v502_v26 = vshrl.u32 %v7409_v5, 16  ;;  %v505_v29 = vshll.u32 %v7409_v5, 16 }
  0x5e   : > { %v2378_v30 = vsel %vm7167_vm2, %v2373_v12, %v2377_v56  ;;  %v485_v34 = vrot.slane %v484_v13, 4  ;;  %v2960_v38 = vsel %vm7413_vm5, %v5611_v10, %v2959_v15  ;;  %v2961_v39 = vrot.slane %v2959_v15, 4  ;;  %v5597_v13 = vld [vmem:[%s7135_s16 + $0x24] sm:$0xe] }
  0x5f   : > { %v5578_v42 = vcombine.low %v2368_v11, %v2378_v30  ;;  %v495_v43 = vrot.slane %v494_v16, 4  ;;  %v504_v31 = vrot.slane %v502_v26, 4  ;;  %v507_v44 = vrot.slane %v505_v29, 5  ;;  %v7465_v16 = vld [vmem:[%s7135_s16 + $0x84] sm:$0xf]  ;;  %v6878_v29 = vld [vmem:[%s8930_s1 + $0x188] sm:$0xff]  }
  0x60   : > { %v490_v49 = vsel %vm7167_vm2, %v485_v34, %v489_v2  ;;  %v2963_v50 = vsel %vm7413_vm5, %v2961_v39, %v2962_v41  ;;  %v511_v52 = vshll.u32 %v7421_v21, 16  ;;  %v515_v53 = vshrl.u32 %v7421_v21, 16 }
  0x61   : > { %6339 = vmatmul.mubr.bf16.gmra.mrb[12].mxu0 %v5578_v42  ;;  %v500_v55 = vsel %vm7167_vm2, %v495_v43, %v499_v18  ;;  %v5643_v48 = vcombine.low %v2960_v38, %v2963_v50  ;;  %v508_v56 = vor.u32 %v507_v44, %v504_v31  ;;  %v521_v57 = vshll.u32 %v275_v40, 16  ;;  %v7473_v40 = vld [vmem:[%s7135_s16 + $0x88] sm:$0xf]  ;;  %v277_v31 = vld [vmem:[%s7135_s16 + $0x8c] sm:$0x1] }
  0x62   : > { %v5339_v59 = vcombine.low %v490_v49, %v500_v55  ;;  %v513_v24 = vrot.slane %v511_v52, 5  ;;  %v517_v61 = vrot.slane %v515_v53, 4  ;;  %v5612_v63 = vrot.slane %v5596_v23, 9 }
  0x63   : > { %6374 = vmatprep.mubr.bf16.mxu0 %v5643_v48  ;;  %v509_v41 = vrot.slane %v508_v56, 4  ;;  %v523_v1 = vrot.slane %v521_v57, 5  ;;  %v2970_v2 = vsel %vm7413_vm5, %v7216_v36, %v2969_v32  ;;  %v526_v3 = vshrl.u32 %v7432_v47, 16 }
  0x64   : > { %6150 = vmatprep.mubr.bf16.mxu1 %v5339_v59  ;;  %v518_v7 = vor.u32 %v517_v61, %v513_v24  ;;  %v2967_v10 = vsel %vm7413_vm5, %v5612_v63, %v2966_v27  ;;  %v529_v11 = vshll.u32 %v7432_v47, 16  ;;  %v535_v12 = vshll.u32 %v7443_v54, 16 }
  0x65   : > { %v514_v8 = vsel %vm7167_vm2, %v509_v41, %v513_v24  ;;  %v5644_v15 = vcombine.low %v2967_v10, %v2970_v2  ;;  %v528_v32 = vrot.slane %v526_v3, 4  ;;  %v539_v36 = vshrl.u32 %v7443_v54, 16  ;;  %v7494_v2 = vld [vmem:[%s7135_s16 + $0x90] sm:$0xf]  ;;  %v7497_v3 = vld [vmem:[%s7135_s16 + $0x94] sm:$0xf] }
  0x66   : > { %v519_v62 = vrot.slane %v518_v7, 4  ;;  %v531_v18 = vrot.slane %v529_v11, 5  ;;  %v537_v26 = vrot.slane %v535_v12, 5  ;;  %v545_v27 = vshll.u32 %v276_v58, 16 }
  0x67   : > { %v541_v30 = vrot.slane %v539_v36, 4  ;;  %v5613_v34 = vrot.slane %v5597_v13, 9  ;;  %v2973_v38 = vrot.slane %v7220_v45, 5  ;;  %v2976_v39 = vrot.slane %v7226_v51, 5  ;;  %v5598_v45 = vld [vmem:[%s7135_s16 + $0x30] sm:$0xe] }
  0x68   : > { %v524_v23 = vsel %vm7167_vm2, %v519_v62, %v523_v1  ;;  %v532_v42 = vor.u32 %v531_v18, %v528_v32  ;;  %v547_v43 = vrot.slane %v545_v27, 5  ;;  %v550_v44 = vshrl.u32 %v7465_v16, 16  ;;  %v278_v62 = vld [vmem:[%s7135_s16 + $0x98] sm:$0x1] }
  0x69   : > { %v5340_v49 = vcombine.low %v514_v8, %v524_v23  ;;  %6375 = vmatmul.mubr.bf16.vlgmr.msra.gmra.mrb[0].mxu0 %v5644_v15  ;;  %v542_v50 = vor.u32 %v541_v30, %v537_v26  ;;  %v2974_v52 = vsel %vm7413_vm5, %v5613_v34, %v2973_v38  ;;  %v2975_v53 = vrot.slane %v2973_v38, 4  ;;  %v6882_v30 = vld [vmem:[%s8930_s1 + $0x198] sm:$0xff]  }
  0x6a   : > { %6407 = vmatpush3.bf16.msra.mxu0 %v7356_v6  ;;  %v533_v51 = vrot.slane %v532_v42, 4  ;;  %v552_v55 = vrot.slane %v550_v44, 4  ;;  %v553_v48 = vshll.u32 %v7465_v16, 16  ;;  %v559_v56 = vshll.u32 %v7473_v40, 16  ;;  %v6880_v6 = vld [vmem:[%s8930_s1 + $0x190] sm:$0xff]  }
  0x6b   : > { %6151 = vmatmul.mubr.bf16.gmra.mrb[16].mxu1 %v5340_v49  ;;  %v543_v57 = vrot.slane %v542_v50, 4  ;;  %v2977_v58 = vsel %vm7413_vm5, %v2975_v53, %v2976_v39  ;;  %v563_v59 = vshrl.u32 %v7473_v40, 16  ;;  %v569_v24 = vshll.u32 %v277_v31, 16  ;;  %6408 = vmatprep.subr.bf16.mxu0 %v6878_v29  ;;  %v5599_v38 = vld [vmem:[%s7135_s16 + $0x3c] sm:$0xe] }
  0x6c   : > { %v538_v61 = vsel %vm7167_vm2, %v533_v51, %v537_v26  ;;  %v5645_v63 = vcombine.low %v2974_v52, %v2977_v58  ;;  %v555_v41 = vrot.slane %v553_v48, 5  ;;  %v561_v1 = vrot.slane %v559_v56, 5  ;;  %v7515_v31 = vld [vmem:[%s7135_s16 + $0x9c] sm:$0xf]  ;;  %v7524_v48 = vld [vmem:[%s7135_s16 + $0xa0] sm:$0xf] }
  0x6d   : > { %v548_v7 = vsel %vm7167_vm2, %v543_v57, %v547_v43  ;;  %v565_v10 = vrot.slane %v563_v59, 4  ;;  %v571_v11 = vrot.slane %v569_v24, 5  ;;  %v5614_v12 = vrot.slane %v5598_v45, 9  ;;  %v6886_v56 = vld [vmem:[%s8930_s1 + $0x1a0] sm:$0xff]  }
  0x6e   : > { %v5341_v13 = vcombine.low %v538_v61, %v548_v7  ;;  %6378 = vmatprep.mubr.bf16.mxu0 %v5645_v63  ;;  %v556_v8 = vor.u32 %v555_v41, %v552_v55  ;;  %v2980_v15 = vrot.slane %v7251_v33, 5  ;;  %v2983_v32 = vrot.slane %v7262_v46, 5  ;;  %6409 = vmatpush3.bf16.msra.mxu0 %v6878_v29  ;;  %v279_v61 = vld [vmem:[%s7135_s16 + $0xa4] sm:$0x1] }
  0x6f   : > { %v566_v36 = vor.u32 %v565_v10, %v561_v1  ;;  %v574_v18 = vshrl.u32 %v7494_v2, 16  ;;  %v577_v26 = vshll.u32 %v7494_v2, 16  ;;  %v583_v27 = vshll.u32 %v7497_v3, 16  ;;  %6410 = vmatprep.subr.bf16.mxu0 %v6880_v6 }
  0x70   : > { %6154 = vmatprep.mubr.bf16.mxu1 %v5341_v13  ;;  %v557_v34 = vrot.slane %v556_v8, 4  ;;  %v2981_v33 = vsel %vm7413_vm5, %v5614_v12, %v2980_v15  ;;  %v2982_v46 = vrot.slane %v2980_v15, 4  ;;  %v587_v29 = vshrl.u32 %v7497_v3, 16  ;;  %v5600_v15 = vld [vmem:[%s7135_s16 + $0x48] sm:$0xe] }
  0x71   : > { %v567_v39 = vrot.slane %v566_v36, 4  ;;  %v576_v23 = vrot.slane %v574_v18, 4  ;;  %v579_v42 = vrot.slane %v577_v26, 5  ;;  %v585_v43 = vrot.slane %v583_v27, 5  ;;  %v7549_v27 = vld [vmem:[%s7135_s16 + $0xa8] sm:$0xf] }
  0x72   : > { %v562_v44 = vsel %vm7167_vm2, %v557_v34, %v561_v1  ;;  %v2984_v49 = vsel %vm7413_vm5, %v2982_v46, %v2983_v32  ;;  %v589_v50 = vrot.slane %v587_v29, 4  ;;  %v593_v52 = vshll.u32 %v278_v62, 16  ;;  %6411 = vmatpush3.bf16.msra.mxu0 %v6880_v6  ;;  %v6890_v32 = vld [vmem:[%s8930_s1 + $0x1a8] sm:$0xff]  }
  0x73   : > { %v572_v53 = vsel %vm7167_vm2, %v567_v39, %v571_v11  ;;  %v5646_v45 = vcombine.low %v2981_v33, %v2984_v49  ;;  %v580_v51 = vor.u32 %v579_v42, %v576_v23  ;;  %v5615_v55 = vrot.slane %v5599_v38, 9  ;;  %6412 = vmatprep.subr.bf16.mxu0 %v6882_v30  ;;  %v7552_v29 = vld [vmem:[%s7135_s16 + $0xac] sm:$0xf] }
  0x74   : > { %v5342_v57 = vcombine.low %v562_v44, %v572_v53  ;;  %v590_v58 = vor.u32 %v589_v50, %v585_v43  ;;  %v595_v59 = vrot.slane %v593_v52, 5  ;;  %v2987_v24 = vrot.slane %v7285_v19, 5  ;;  %v5601_v53 = vld [vmem:[%s7135_s16 + $0x54] sm:$0xe] }
  0x75   : > { %6379 = vmatmul.mubr.bf16.gmra.mrb[4].mxu0 %v5646_v45  ;;  %v581_v6 = vrot.slane %v580_v51, 4  ;;  %v2990_v63 = vrot.slane %v7293_v28, 5  ;;  %v598_v41 = vshrl.u32 %v7515_v31, 16  ;;  %v601_v1 = vshll.u32 %v7515_v31, 16  ;;  %v6894_v45 = vld [vmem:[%s8930_s1 + $0x1b0] sm:$0xff]  }
  0x76   : > { %6155 = vmatmul.mubr.bf16.gmra.mrb[20].mxu1 %v5342_v57  ;;  %v591_v7 = vrot.slane %v590_v58, 4  ;;  %v2988_v10 = vsel %vm7413_vm5, %v5615_v55, %v2987_v24  ;;  %v2989_v11 = vrot.slane %v2987_v24, 4  ;;  %v607_v12 = vshll.u32 %v7524_v48, 16  ;;  %6413 = vmatpush3.bf16.msra.mxu0 %v6882_v30 }
  0x77   : > { %v586_v19 = vsel %vm7167_vm2, %v581_v6, %v585_v43  ;;  %v600_v13 = vrot.slane %v598_v41, 4  ;;  %v603_v28 = vrot.slane %v601_v1, 5  ;;  %v611_v8 = vshrl.u32 %v7524_v48, 16  ;;  %6414 = vmatprep.subr.bf16.mxu0 %v6886_v56  ;;  %v280_v43 = vld [vmem:[%s7135_s16 + $0xb0] sm:$0x1] }
  0x78   : > { %v596_v36 = vsel %vm7167_vm2, %v591_v7, %v595_v59  ;;  %v2991_v62 = vsel %vm7413_vm5, %v2989_v11, %v2990_v63  ;;  %v609_v18 = vrot.slane %v607_v12, 5  ;;  %v617_v26 = vshll.u32 %v279_v61, 16  ;;  %v7572_v41 = vld [vmem:[%s7135_s16 + $0xb4] sm:$0xf]  ;;  %v7577_v12 = vld [vmem:[%s7135_s16 + $0xb8] sm:$0xf] }
  0x79   : > { %v5343_v30 = vcombine.low %v586_v19, %v596_v36  ;;  %v5647_v34 = vcombine.low %v2988_v10, %v2991_v62  ;;  %v604_v33 = vor.u32 %v603_v28, %v600_v13  ;;  %v613_v46 = vrot.slane %v611_v8, 4  ;;  %v281_v19 = vld [vmem:[%s7135_s16 + $0xbc] sm:$0x1] }
  0x7a   : > { %v619_v38 = vrot.slane %v617_v26, 5  ;;  %v5616_v39 = vrot.slane %v5600_v15, 9  ;;  %v2994_v23 = vrot.slane %v7320_v14, 5  ;;  %v2997_v42 = vrot.slane %v7326_v22, 5  ;;  %6415 = vmatpush3.bf16.msra.mxu0 %v6886_v56  ;;  %v6898_v13 = vld [vmem:[%s8930_s1 + $0x1b8] sm:$0xff]  }
  0x7b   : > { %6158 = vmatprep.mubr.bf16.mxu1 %v5343_v30  ;;  %6382 = vmatprep.mubr.bf16.mxu0 %v5647_v34  ;;  %v605_v44 = vrot.slane %v604_v33, 4  ;;  %v614_v49 = vor.u32 %v613_v46, %v609_v18  ;;  %v622_v50 = vshrl.u32 %v7549_v27, 16  ;;  %v625_v52 = vshll.u32 %v7549_v27, 16  ;;  %v5602_v30 = vld [vmem:[%s7135_s16 + $0x60] sm:$0xe] }
  0x7c   : > { %v2995_v14 = vsel %vm7413_vm5, %v5616_v39, %v2994_v23  ;;  %v2996_v22 = vrot.slane %v2994_v23, 4  ;;  %v631_v51 = vshll.u32 %v7552_v29, 16  ;;  %v635_v55 = vshrl.u32 %v7552_v29, 16  ;;  %6416 = vmatprep.subr.bf16.mxu0 %v6890_v32  ;;  %v5532_v39 = vld [vmem:[%s7135_s16 + $0x70] sm:$0xf] }
  0x7d   : > { %v610_v56 = vsel %vm7167_vm2, %v605_v44, %v609_v18  ;;  %v615_v57 = vrot.slane %v614_v49, 4  ;;  %v624_v58 = vrot.slane %v622_v50, 4  ;;  %v627_v59 = vrot.slane %v625_v52, 5  ;;  %v7599_v44 = vld [vmem:[%s8930_s1 + $0x1c0] sm:$0xff]  }
  0x7e   : > { %v2998_v24 = vsel %vm7413_vm5, %v2996_v22, %v2997_v42  ;;  %v633_v61 = vrot.slane %v631_v51, 5  ;;  %v637_v6 = vrot.slane %v635_v55, 4  ;;  %v641_v63 = vshll.u32 %v280_v43, 16  ;;  %6417 = vmatpush3.bf16.msra.mxu0 %v6890_v32  ;;  %v5603_v43 = vld [vmem:[%s7135_s16 + $0x6c] sm:$0xe] }
  0x7f   : > { %v620_v1 = vsel %vm7167_vm2, %v615_v57, %v619_v38  ;;  %v5648_v7 = vcombine.low %v2995_v14, %v2998_v24  ;;  %v628_v10 = vor.u32 %v627_v59, %v624_v58  ;;  %v5617_v11 = vrot.slane %v5601_v53, 9  ;;  %6418 = vmatprep.subr.bf16.mxu0 %v6894_v45  ;;  %v5533_v55 = vld [vmem:[%s7135_s16 + $0x74] sm:$0x1]  ;;  %v5604_v24 = vld [vmem:[%s7135_s16 + $0x78] sm:$0xe] }
  0x80   : > { %v5344_v28 = vcombine.low %v610_v56, %v620_v1  ;;  %v638_v8 = vor.u32 %v637_v6, %v633_v61  ;;  %v643_v15 = vrot.slane %v641_v63, 5  ;;  %v3001_v32 = vrot.slane %v7351_v0, 5 }
  0x81   : > { %6383 = vmatmul.mubr.bf16.gmra.mrb[8].mxu0 %v5648_v7  ;;  %v629_v36 = vrot.slane %v628_v10, 4  ;;  %v3004_v62 = vrot.slane %v7363_v20, 5  ;;  %v646_v18 = vshrl.u32 %v7572_v41, 16  ;;  %v649_v26 = vshll.u32 %v7572_v41, 16 }
  0x82   : > { %6159 = vmatmul.mubr.bf16.gmra.mrb[24].mxu1 %v5344_v28  ;;  %v639_v34 = vrot.slane %v638_v8, 4  ;;  %v3002_v33 = vsel %vm7413_vm5, %v5617_v11, %v3001_v32  ;;  %v3003_v46 = vrot.slane %v3001_v32, 4  ;;  %v655_v38 = vshll.u32 %v7577_v12, 16  ;;  %6419 = vmatpush3.bf16.msra.mxu0 %v6894_v45  ;;  %v7612_v11 = vld [vmem:[%s7135_s16 + $0x7c] sm:$0xf] }
  0x83   : > { %v634_v0 = vsel %vm7167_vm2, %v629_v36, %v633_v61  ;;  %v648_v20 = vrot.slane %v646_v18, 4  ;;  %v651_v23 = vrot.slane %v649_v26, 5  ;;  %v659_v42 = vshrl.u32 %v7577_v12, 16  ;;  %6420 = vmatprep.subr.bf16.mxu0 %v6898_v13  ;;  %v6967_v36 = vld [vmem:[%s7135_s16] sm:$0xf] }
  0x84   : > { %v644_v49 = vsel %vm7167_vm2, %v639_v34, %v643_v15  ;;  %v3005_v50 = vsel %vm7413_vm5, %v3003_v46, %v3004_v62  ;;  %v657_v52 = vrot.slane %v655_v38, 5  ;;  %v665_v53 = vshll.u32 %v281_v19, 16  ;;  %v5538_v15 = vld [vmem:[%s7135_s16 + $0x88] sm:$0xf]  ;;  %v7627_v62 = vld [vmem:[%s7135_s16 + $0x4] sm:$0xf] }
  0x85   : > { %v5345_v45 = vcombine.low %v634_v0, %v644_v49  ;;  %v5649_v14 = vcombine.low %v3002_v33, %v3005_v50  ;;  %v652_v22 = vor.u32 %v651_v23, %v648_v20  ;;  %v661_v51 = vrot.slane %v659_v42, 4  ;;  %v5539_v26 = vld [vmem:[%s7135_s16 + $0x8c] sm:$0x1]  ;;  %v5542_v23 = vld [vmem:[%s7135_s16 + $0x98] sm:$0x1] }
  0x86   : > { %v667_v56 = vrot.slane %v665_v53, 5  ;;  %v5618_v57 = vrot.slane %v5602_v30, 9  ;;  %v3008_v58 = vrot.slane %v7378_v60, 5  ;;  %v3011_v59 = vrot.slane %v7387_v17, 5  ;;  %6421 = vmatpush3.bf16.msra.mxu0 %v6898_v13  ;;  %v7615_v17 = vld [vmem:[%s7135_s16 + $0x80] sm:$0x1] }
  0x87   : > { %6162 = vmatprep.mubr.bf16.mxu1 %v5345_v45  ;;  %6386 = vmatprep.mubr.bf16.mxu0 %v5649_v14  ;;  %v653_v61 = vrot.slane %v652_v22, 4  ;;  %v662_v6 = vor.u32 %v661_v51, %v657_v52  ;;  %v5619_v63 = vrot.slane %v5603_v43, 9  ;;  %v3015_v1 = vrot.slane %v5532_v39, 5  ;;  %v5605_v30 = vld [vmem:[%s7135_s16 + $0x84] sm:$0xe] }
  0x88   : > { %v3009_v7 = vsel %vm7413_vm5, %v5618_v57, %v3008_v58  ;;  %v3010_v10 = vrot.slane %v3008_v58, 4  ;;  %v3018_v60 = vrot.slane %v5533_v55, 5  ;;  %6454 = vmatprep.subr.bf16.mxu0 %v7599_v44  ;;  %v5355_v18 = vcombine.low %v6967_v36, %v7627_v62  ;;  %v5541_v39 = vld [vmem:[%s7135_s16 + $0x94] sm:$0xf]  ;;  %v5606_v42 = vld [vmem:[%s7135_s16 + $0x90] sm:$0xe] }
  0x89   : > { %v658_v19 = vsel %vm7167_vm2, %v653_v61, %v657_v52  ;;  %v663_v13 = vrot.slane %v662_v6, 4  ;;  %v3016_v28 = vsel %vm7413_vm5, %v5619_v63, %v3015_v1  ;;  %v3017_v8 = vrot.slane %v3015_v1, 4  ;;  %v5607_v50 = vld [vmem:[%s7135_s16 + $0x9c] sm:$0xe]  ;;  %v5544_v14 = vld [vmem:[%s7135_s16 + $0xa0] sm:$0xf] }
  0x8a   : > { %v3012_v32 = vsel %vm7413_vm5, %v3010_v10, %v3011_v59  ;;  %v5620_v38 = vrot.slane %v5604_v24, 9  ;;  %v3022_v43 = vrot.slane %v7612_v11, 5  ;;  %v3025_v49 = vrot.slane %v7615_v17, 5  ;;  %v5545_v22 = vld [vmem:[%s7135_s16 + $0xa4] sm:$0x1] }
  0x8b   : > { %v668_v34 = vsel %vm7167_vm2, %v663_v13, %v667_v56  ;;  %v5650_v33 = vcombine.low %v3009_v7, %v3012_v32  ;;  %v3019_v46 = vsel %vm7413_vm5, %v3017_v8, %v3018_v60  ;;  %v5621_v52 = vrot.slane %v5605_v30, 9  ;;  %v5547_v59 = vld [vmem:[%s7135_s16 + $0xac] sm:$0xf]  ;;  %v7651_v61 = vld [vmem:[%s7135_s16 + $0x10] sm:$0xf] }
  0x8c   : > { %v5346_v0 = vcombine.low %v658_v19, %v668_v34  ;;  %v5651_v20 = vcombine.low %v3016_v28, %v3019_v46  ;;  %v3029_v53 = vrot.slane %v5538_v15, 5  ;;  %v3032_v45 = vrot.slane %v5539_v26, 5  ;;  %v6969_v24 = vld [vmem:[%s7135_s16 + $0xc] sm:$0xf]  ;;  %v6971_v8 = vld [vmem:[%s7135_s16 + $0x18] sm:$0xf] }
  0x8d   : > { %6387 = vmatmul.mubr.bf16.gmra.mrb[12].mxu0 %v5650_v33  ;;  %v3023_v51 = vsel %vm7413_vm5, %v5620_v38, %v3022_v43  ;;  %v3024_v55 = vrot.slane %v3022_v43, 4  ;;  %v3036_v58 = vrot.slane %v5541_v39, 5  ;;  %v5356_v6 = vcombine.low %v6969_v24, %v7651_v61  ;;  %v6889_v19 = vld [vmem:[%s8930_s1 + $0x88] sm:$0xff]   ;;  %v7663_v15 = vld [vmem:[%s7135_s16 + $0x1c] sm:$0xf] }
  0x8e   : > { %6163 = vmatmul.mubr.bf16.gmra.mrb[28].mxu1 %v5346_v0  ;;  %6390 = vmatprep.mubr.bf16.mxu0 %v5651_v20  ;;  %v3030_v56 = vsel %vm7413_vm5, %v5621_v52, %v3029_v53  ;;  %v3031_v57 = vrot.slane %v3029_v53, 4  ;;  %v5622_v1 = vrot.slane %v5606_v42, 9  ;;  %v3039_v7 = vrot.slane %v5542_v23, 5  ;;  %v5548_v30 = vld [vmem:[%s7135_s16 + $0xb0] sm:$0x1] }
  0x8f   : > { %6182 = vmatprep.mubr.bf16.mxu1 %v5355_v18  ;;  %v3026_v63 = vsel %vm7413_vm5, %v3024_v55, %v3025_v49  ;;  %v3038_v13 = vrot.slane %v3036_v58, 4  ;;  %v5623_v28 = vrot.slane %v5607_v50, 9  ;;  %v5357_v32 = vcombine.low %v6971_v8, %v7663_v15  ;;  %v5608_v34 = vld [vmem:[%s7135_s16 + $0xa8] sm:$0xe]  ;;  %v5550_v33 = vld [vmem:[%s7135_s16 + $0xb8] sm:$0xf] }
  0x90   : > { %v5652_v10 = vcombine.low %v3023_v51, %v3026_v63  ;;  %v3033_v60 = vsel %vm7413_vm5, %v3031_v57, %v3032_v45  ;;  %v3043_v18 = vrot.slane %v5544_v14, 5  ;;  %v3046_v26 = vrot.slane %v5545_v22, 5  ;;  %v5551_v20 = vld [vmem:[%s7135_s16 + $0xbc] sm:$0x1]  ;;  %v5609_v23 = vld [vmem:[%s7135_s16 + $0xb4] sm:$0xe] }
  0x91   : > { %v5653_v36 = vcombine.low %v3030_v56, %v3033_v60  ;;  %v3050_v38 = vrot.slane %v5547_v59, 5  ;;  %v3037_v39 = vsel %vm7413_vm5, %v5622_v1, %v3036_v58  ;;  %v3040_v0 = vsel %vm7413_vm5, %v3038_v13, %v3039_v7  ;;  %v6893_v50 = vld [vmem:[%s8930_s1 + $0x90] sm:$0xff]   ;;  %v5553_v53 = vld [vmem:[%s7135_s16 + $0xc4] sm:$0xf]  ;;  %v7686_v51 = vld [vmem:[%s7135_s16 + $0x28] sm:$0xf] }
  0x92   : > { %v3045_v46 = vrot.slane %v3043_v18, 4  ;;  %v3044_v42 = vsel %vm7413_vm5, %v5623_v28, %v3043_v18  ;;  %v3057_v49 = vrot.slane %v5550_v33, 5  ;;  %v5624_v52 = vrot.slane %v5608_v34, 9  ;;  %v6973_v22 = vld [vmem:[%s7135_s16 + $0x24] sm:$0xf]  ;;  %v6897_v1 = vld [vmem:[%s8930_s1 + $0x98] sm:$0xff]  }
  0x93   : > { %v5654_v45 = vcombine.low %v3037_v39, %v3040_v0  ;;  %v3052_v14 = vrot.slane %v3050_v38, 4  ;;  %v5358_v55 = vcombine.low %v6973_v22, %v7686_v51  ;;  %v6975_v57 = vld [vmem:[%s7135_s16 + $0x30] sm:$0xf]  ;;  %v7691_v58 = vld [vmem:[%s7135_s16 + $0x34] sm:$0xf]  ;;  %v5625_v24 = vrot.slane %v5609_v23, 9 }
  0x94   : > { %v3047_v43 = vsel %vm7413_vm5, %v3045_v46, %v3046_v26  ;;  %v5359_v59 = vcombine.low %v6975_v57, %v7691_v58  ;;  %v3060_v63 = vrot.slane %v5551_v20, 5  ;;  %v5610_v7 = vld [vmem:[%s7135_s16 + $0xc0] sm:$0xe]  ;;  %v3051_v60 = vsel %vm7413_vm5, %v5624_v52, %v3050_v38  ;;  %v5554_v8 = vld [vmem:[%s7135_s16 + $0xc8] sm:$0x1]  ;;  %v6900_v22 = vld [vmem:[%s7135_s16 + $0x18] sm:$0xff]  }
  0x95   : > { %6391 = vmatmul.mubr.bf16.gmra.mrb[16].mxu0 %v5652_v10  ;;  %v5655_v56 = vcombine.low %v3044_v42, %v3047_v43  ;;  %v3064_v10 = vrot.slane %v5553_v53, 5  ;;  %v3058_v13 = vsel %vm7413_vm5, %v5625_v24, %v3057_v49  ;;  %v5626_v18 = vrot.slane %v5610_v7, 9  ;;  %v6977_v26 = vld [vmem:[%s7135_s16 + $0x3c] sm:$0xf]  ;;  %v6979_v39 = vld [vmem:[%s7135_s16 + $0x48] sm:$0xf] }
  0x96   : > { %6183 = vmatmul.mubr.bf16.vlgmr.msra.gmra.mrb[0].mxu1 %v5356_v6  ;;  %6394 = vmatprep.mubr.bf16.mxu0 %v5653_v36  ;;  %v3059_v6 = vrot.slane %v3057_v49, 4  ;;  %v3067_v38 = vrot.slane %v5554_v8, 5  ;;  %v7717_v0 = vld [vmem:[%s7135_s16 + $0x4c] sm:$0xf]  ;;  %v6914_v49 = vld [vmem:[%s8930_s1 + $0xb0] sm:$0xff]   ;;  %v2417_v52 = vshrl.u32 %v7612_v11, 16 }
  0x97   : > { %6215 = vmatpush3.bf16.msra.mxu1 %v7337_v4  ;;  %6186 = vmatprep.mubr.bf16.mxu1 %v5357_v32  ;;  %v3053_v4 = vrot.slane %v5548_v30, 5  ;;  %v6902_v32 = vld [vmem:[%s8930_s1 + $0xa0] sm:$0xff]   ;;  %v3066_v46 = vrot.slane %v3064_v10, 4  ;;  %v5361_v20 = vcombine.low %v6979_v39, %v7717_v0  ;;  %v6908_v23 = vld [vmem:[%s8930_s1 + $0xa8] sm:$0xff]   ;;  %v3065_v42 = vsel %vm7413_vm5, %v5626_v18, %v3064_v10  ;;  %v6906_v18 = vld [vmem:[%s7135_s16 + $0x30] sm:$0xff]  }
  0x98   : > { %6216 = vmatprep.subr.bf16.mxu1 %v6889_v19  ;;  %v3061_v28 = vsel %vm7413_vm5, %v3059_v6, %v3060_v63  ;;  %v7712_v30 = vld [vmem:[%s7135_s16 + $0x40] sm:$0xf]  ;;  %v7745_v57 = vrot.slane %v2417_v52, 4  ;;  %v6903_v6 = vld [vmem:[%s7135_s16 + $0x24] sm:$0xff]   ;;  %v1324_v7 = vrot.slane %v7651_v61, 5  ;;  %v2423_v8 = vshll.u32 %v7615_v17, 16 }
  0x99   : > { %v5360_v34 = vcombine.low %v6977_v26, %v7712_v30  ;;  %v5657_v33 = vcombine.low %v3058_v13, %v3061_v28  ;;  %v3068_v43 = vsel %vm7413_vm5, %v3066_v46, %v3067_v38  ;;  %v1264_v63 = vld [vmem:[%s7135_s16] sm:$0xe]  ;;  %v1265_v10 = vld [vmem:[%s7135_s16 + $0xc] sm:$0xe]  ;;  %v1331_v13 = vrot.slane %v7663_v15, 5 }
  0x9a   : > { %v5658_v53 = vcombine.low %v3065_v42, %v3068_v43  ;;  %v1267_v61 = vld [vmem:[%s7135_s16 + $0x24] sm:$0xe]  ;;  %v5366_v15 = vcombine.low %v7465_v16, %v7473_v40  ;;  %v5367_v26 = vcombine.low %v7494_v2, %v7497_v3  ;;  %v5379_v17 = vrot.slane %v1264_v63, 9  ;;  %v6985_v38 = vld [vmem:[%s7135_s16 + $0x20] sm:$0x1]  ;;  %v6915_v2 = vld [vmem:[%s7135_s16 + $0x54] sm:$0xff]  }
  0x9b   : > { %6217 = vmatpush3.bf16.msra.mxu1 %v6889_v19  ;;  %v3054_v19 = vsel %vm7413_vm5, %v3052_v14, %v3053_v4  ;;  %v7734_v14 = vld [vmem:[%s7135_s16 + $0x58] sm:$0xf]  ;;  %v1333_v46 = vrot.slane %v1331_v13, 4  ;;  %v1334_v39 = vrot.slane %v6985_v38, 5  ;;  %v6986_v43 = vld [vmem:[%s7135_s16 + $0x2c] sm:$0x1] }
  0x9c   : > { %6218 = vmatprep.subr.bf16.mxu1 %v6893_v50  ;;  %v5656_v36 = vcombine.low %v3051_v60, %v3054_v19  ;;  %v7760_v60 = vld [vmem:[%s8930_s1 + $0xc0] sm:$0xff]   ;;  %v1266_v19 = vld [vmem:[%s7135_s16 + $0x18] sm:$0xe]  ;;  %v6989_v38 = vld [vmem:[%s7135_s16 + $0x50] sm:$0x1]  ;;  %v1366_v16 = vrot.slane %v7734_v14, 5 }
  0x9d   : > { %6395 = vmatmul.mubr.bf16.gmra.mrb[20].mxu0 %v5654_v45  ;;  %v6981_v45 = vld [vmem:[%s7135_s16 + $0x54] sm:$0xf]  ;;  %v7883_v40 = vld [vmem:[%s7135_s16 + $0x64] sm:$0xf] }
  0x9e   : > { %6187 = vmatmul.mubr.bf16.gmra.mrb[4].mxu1 %v5358_v55  ;;  %6398 = vmatprep.mubr.bf16.mxu0 %v5655_v56  ;;  %v5362_v4 = vcombine.low %v6981_v45, %v7734_v14  ;;  %v5363_v55 = vcombine.low %v7391_v25, %v7394_v35  ;;  %v6920_v56 = vld [vmem:[%s8930_s1 + $0xb8] sm:$0xff]   ;;  %v6984_v25 = vld [vmem:[%s7135_s16 + $0x14] sm:$0x1]  ;;  %v6918_v3 = vld [vmem:[%s7135_s16 + $0x60] sm:$0xff]  }
  0x9f   : > { %6190 = vmatprep.mubr.bf16.mxu1 %v5359_v59  ;;  %6219 = vmatpush3.bf16.msra.mxu1 %v6893_v50  ;;  %v2413_v50 = vshll.u32 %v7612_v11, 16  ;;  %v7748_v59 = vld [vmem:[%s7135_s16 + $0x8] sm:$0x1]  ;;  %v1327_v35 = vrot.slane %v6984_v25, 5 }
  0xa0   : > { %6220 = vmatprep.subr.bf16.mxu1 %v6897_v1  ;;  %v1320_v24 = vrot.slane %v7748_v59, 5 }
  0xa1   : > { %v7743_v11 = vrot.slane %v2413_v50, 5 }
  0xa3   : > { %6221 = vmatpush3.bf16.msra.mxu1 %v6897_v1  ;;  %v1317_v1 = vrot.slane %v7627_v62, 5  ;;  %v5364_v62 = vcombine.low %v7409_v5, %v7421_v21  ;;  %v5380_v21 = vrot.slane %v1265_v10, 9  ;;  %v5739_v10 = vld [vmem:[%s7135_s16 + $0x18] sm:$0xf] }
  0xa4   : > { %6222 = vmatprep.subr.bf16.mxu1 %v6902_v32 }
  0xa5   : > { %6399 = vmatmul.mubr.bf16.gmra.mrb[24].mxu0 %v5656_v36  ;;  %v5365_v36 = vcombine.low %v7432_v47, %v7443_v54  ;;  %v1319_v5 = vrot.slane %v1317_v1, 4  ;;  %v6910_v47 = vld [vmem:[%s8930_s1 + $0x1c8] sm:$0xff]   ;;  %v5381_v54 = vrot.slane %v1266_v19, 9  ;;  %v7803_v59 = vsel %vm7413_vm5, %v5379_v17, %v1317_v1  ;;  %v5740_v19 = vld [vmem:[%s7135_s16 + $0x1c] sm:$0xf] }
  0xa6   : > { %6191 = vmatmul.mubr.bf16.gmra.mrb[8].mxu1 %v5360_v34  ;;  %6402 = vmatprep.mubr.bf16.mxu0 %v5657_v33  ;;  %v1345_v34 = vrot.slane %v7691_v58, 5  ;;  %v1326_v33 = vrot.slane %v1324_v7, 4  ;;  %v5382_v58 = vrot.slane %v1267_v61, 9  ;;  %v1359_v1 = vrot.slane %v7717_v0, 5  ;;  %v6912_v0 = vld [vmem:[%s7135_s16 + $0x48] sm:$0xff]  }
  0xa7   : > { %6194 = vmatprep.mubr.bf16.mxu1 %v5361_v20  ;;  %6223 = vmatpush3.bf16.msra.mxu1 %v6902_v32  ;;  %v1338_v32 = vrot.slane %v7686_v51, 5  ;;  %v1268_v51 = vld [vmem:[%s7135_s16 + $0x30] sm:$0xe]  ;;  %v5368_v20 = vcombine.low %v7515_v31, %v7524_v48  ;;  %v7811_v25 = vsel %vm7413_vm5, %v1319_v5, %v1320_v24  ;;  %v7819_v63 = vsel %vm7413_vm5, %v5381_v54, %v1331_v13  ;;  %v1270_v13 = vld [vmem:[%s7135_s16 + $0x48] sm:$0xe] }
  0xa8   : > { %6224 = vmatprep.subr.bf16.mxu1 %v6908_v23  ;;  %v5383_v50 = vrot.slane %v1268_v51, 9  ;;  %v1347_v52 = vrot.slane %v1345_v34, 4  ;;  %v3830_v5 = vshrl.u32 %v5739_v10, 16  ;;  %v3843_v51 = vshrl.u32 %v5740_v19, 16  ;;  %v6921_v48 = vld [vmem:[%s7135_s16 + $0x6c] sm:$0xff]  }
  0xa9   : > { %v1340_v42 = vrot.slane %v1338_v32, 4  ;;  %v7831_v24 = vsel %vm7413_vm5, %v5382_v58, %v1338_v32  ;;  %v6988_v32 = vld [vmem:[%s7135_s16 + $0x44] sm:$0x1]  ;;  %v5385_v54 = vrot.slane %v1270_v13, 9  ;;  %v5743_v13 = vld [vmem:[%s7135_s16 + $0x28] sm:$0xf] }
  0xaa   : > { %v7841_v61 = vsel %vm7413_vm5, %v5383_v50, %v1345_v34  ;;  %v1355_v17 = vrot.slane %v6988_v32, 5  ;;  %v5741_v50 = vld [vmem:[%s7135_s16 + $0x20] sm:$0x1]  ;;  %v1272_v32 = vld [vmem:[%s7135_s16 + $0x60] sm:$0xe] }
  0xab   : > { %6225 = vmatpush3.bf16.msra.mxu1 %v6908_v23  ;;  %v5369_v23 = vcombine.low %v7549_v27, %v7552_v29 }
  0xac   : > { %6226 = vmatprep.subr.bf16.mxu1 %v6914_v49 }
  0xad   : > { %6403 = vmatmul.mubr.bf16.gmra.mrb[28].mxu0 %v5658_v53  ;;  %v6987_v53 = vld [vmem:[%s7135_s16 + $0x38] sm:$0x1] }
  0xae   : > { %6195 = vmatmul.mubr.bf16.gmra.mrb[12].mxu1 %v5362_v4  ;;  %6422 = vmatprep.mubr.bf16.mxu0 %v6900_v22  ;;  %v1348_v45 = vrot.slane %v6987_v53, 5  ;;  %v1269_v4 = vld [vmem:[%s7135_s16 + $0x3c] sm:$0xe]  ;;  %v1352_v22 = vrot.slane %v7712_v30, 5  ;;  %v7807_v30 = vsel %vm7413_vm5, %v5380_v21, %v1324_v7  ;;  %v3833_v21 = vshll.u32 %v5739_v10, 16  ;;  %v6926_v53 = vld [vmem:[%s8930_s1 + $0x1e0] sm:$0xff]  }
  0xaf   : > { %6198 = vmatprep.mubr.bf16.mxu1 %v5363_v55  ;;  %6227 = vmatpush3.bf16.msra.mxu1 %v6914_v49  ;;  %v1341_v49 = vrot.slane %v6986_v43, 5  ;;  %v7794_v55 = vrot.slane %v2423_v8, 5  ;;  %v6909_v7 = vld [vmem:[%s7135_s16 + $0x3c] sm:$0xff]   ;;  %v7827_v8 = vsel %vm7413_vm5, %v1333_v46, %v1334_v39  ;;  %v1361_v46 = vrot.slane %v1359_v1, 4  ;;  %v5745_v43 = vld [vmem:[%s7135_s16 + $0x30] sm:$0xf] }
  0xb0   : > { %6228 = vmatprep.subr.bf16.mxu1 %v6920_v56  ;;  %v1362_v39 = vrot.slane %v6989_v38, 5  ;;  %v3832_v10 = vrot.slane %v3830_v5, 4 }
  0xb1   : > { %8951 = vst [vmem:[#allocation2_spill] sm:$0xff] %v7794_v55 }
  0xb3   : > { %6229 = vmatpush3.bf16.msra.mxu1 %v6920_v56  ;;  %v6916_v56 = vld [vmem:[%s8930_s1 + $0x1d0] sm:$0xff]  }
  0xb4   : > { %6262 = vmatprep.subr.bf16.mxu1 %v7760_v60 }
  0xb5   : > { %6423 = vmatmul.mubr.bf16.vlgmr.msra.gmra.mrb[0].mxu0 %v6903_v6  ;;  %v7815_v6 = vsel %vm7413_vm5, %v1326_v33, %v1327_v35  ;;  %v7835_v35 = vsel %vm7413_vm5, %v1340_v42, %v1341_v49  ;;  %v3839_v33 = vshll.u32 %v5740_v19, 16  ;;  %v3835_v19 = vrot.slane %v3833_v21, 5  ;;  %v1273_v21 = vld [vmem:[%s7135_s16 + $0x6c] sm:$0xe] }
  0xb6   : > { %6199 = vmatmul.mubr.bf16.gmra.mrb[16].mxu1 %v5364_v62  ;;  %6455 = vmatpush3.bf16.msra.mxu0 %v7599_v44  ;;  %v5384_v62 = vrot.slane %v1269_v4, 9  ;;  %v5388_v58 = vrot.slane %v1273_v21, 9 }
  0xb7   : > { %6202 = vmatprep.mubr.bf16.mxu1 %v5365_v36  ;;  %6426 = vmatprep.mubr.bf16.mxu0 %v6906_v18  ;;  %v7845_v36 = vsel %vm7413_vm5, %v1347_v52, %v1348_v45  ;;  %v1354_v18 = vrot.slane %v1352_v22, 4  ;;  %v5742_v52 = vld [vmem:[%s7135_s16 + $0x24] sm:$0xf]  ;;  %v3867_v45 = vshrl.u32 %v5743_v13, 16 }
  0xb8   : > { %6456 = vmatprep.subr.bf16.mxu0 %v6910_v47  ;;  %v7862_v49 = vsel %vm7413_vm5, %v5384_v62, %v1352_v22  ;;  %v7879_v22 = vld [vmem:[%s7135_s16 + $0x54] sm:$0xe]  ;;  %v3845_v62 = vrot.slane %v3843_v51, 4  ;;  %v3854_v38 = vshrl.u32 %v5742_v52, 16  ;;  %v3857_v28 = vshll.u32 %v5742_v52, 16 }
  0xb9   : > { %v7876_v4 = vsel %vm7413_vm5, %v1354_v18, %v1355_v17  ;;  %v3849_v17 = vshll.u32 %v5741_v50, 16  ;;  %v5386_v5 = vrot.slane %v7879_v22, 9  ;;  %v6930_v50 = vld [vmem:[%s8930_s1 + $0x1e8] sm:$0xff]   ;;  %v1368_v52 = vrot.slane %v1366_v16, 4 }
  0xba   : > { %6457 = vmatpush3.bf16.msra.mxu0 %v6910_v47  ;;  %v6922_v47 = vld [vmem:[%s8930_s1 + $0x1d8] sm:$0xff]   ;;  %v3836_v22 = vor.u32 %v3835_v19, %v3832_v10  ;;  %v3856_v34 = vrot.slane %v3854_v38, 4  ;;  %v3859_v44 = vrot.slane %v3857_v28, 5  ;;  %v6994_v10 = vld [vmem:[%s7135_s16 + $0x74] sm:$0x1]  ;;  %v3869_v28 = vrot.slane %v3867_v45, 4 }
  0xbb   : > { %6458 = vmatprep.subr.bf16.mxu0 %v6916_v56  ;;  %v7917_v42 = vrot.slane %v3849_v17, 5  ;;  %v1383_v19 = vrot.slane %v6994_v10, 5  ;;  %v3878_v38 = vshrl.u32 %v5745_v43, 16  ;;  %v7942_v27 = vsel %vm7413_vm5, %v5386_v5, %v1366_v16 }
  0xbc   : > { %v3837_v21 = vrot.slane %v3836_v22, 4 }
  0xbd   : > { %6427 = vmatmul.mubr.bf16.gmra.mrb[4].mxu0 %v6909_v7  ;;  %v7889_v7 = vrot.slane %v3839_v33, 5  ;;  %v6992_v33 = vld [vmem:[%s7135_s16 + $0x70] sm:$0xf] }
  0xbe   : > { %6203 = vmatmul.mubr.bf16.gmra.mrb[20].mxu1 %v5366_v15  ;;  %6430 = vmatprep.mubr.bf16.mxu0 %v6912_v0  ;;  %v1373_v15 = vrot.slane %v7883_v40, 5  ;;  %v6991_v0 = vld [vmem:[%s7135_s16 + $0x5c] sm:$0x1]  ;;  %v1380_v51 = vrot.slane %v6992_v33, 5 }
  0xbf   : > { %6206 = vmatprep.mubr.bf16.mxu1 %v5367_v26  ;;  %6459 = vmatpush3.bf16.msra.mxu0 %v6916_v56  ;;  %v1369_v18 = vrot.slane %v6991_v0, 5  ;;  %v7898_v26 = vsel %vm7413_vm5, %v5385_v54, %v1359_v1  ;;  %v7902_v56 = vsel %vm7413_vm5, %v1361_v46, %v1362_v39  ;;  %v6993_v1 = vld [vmem:[%s7135_s16 + $0x68] sm:$0x1]  ;;  %v3863_v0 = vshll.u32 %v5743_v13, 16  ;;  %v6938_v40 = vld [vmem:[%s8930_s1 + $0x1f8] sm:$0xff]  }
  0xc0   : > { %6460 = vmatprep.subr.bf16.mxu0 %v6922_v47  ;;  %v1376_v54 = vrot.slane %v6993_v1, 5  ;;  %v5387_v46 = vrot.slane %v1272_v32, 9  ;;  %v1375_v39 = vrot.slane %v1373_v15, 4  ;;  %v3846_v33 = vor.u32 %v3845_v62, %v7889_v7  ;;  %v5746_v1 = vld [vmem:[%s7135_s16 + $0x34] sm:$0xf] }
  0xc1   : > { %v1382_v32 = vrot.slane %v1380_v51, 4  ;;  %v5744_v62 = vld [vmem:[%s7135_s16 + $0x2c] sm:$0x1]  ;;  %v7929_v17 = vrot.slane %v3863_v0, 5  ;;  %v3887_v13 = vshll.u32 %v5746_v1, 16  ;;  %v3891_v31 = vshrl.u32 %v5746_v1, 16 }
  0xc2   : > { %v3847_v10 = vrot.slane %v3846_v33, 4  ;;  %v7946_v29 = vsel %vm7413_vm5, %v1368_v52, %v1369_v18  ;;  %v7953_v45 = vsel %vm7413_vm5, %v5387_v46, %v1373_v15  ;;  %v7957_v14 = vsel %vm7413_vm5, %v1375_v39, %v1376_v54  ;;  %v1274_v18 = vld [vmem:[%s7135_s16 + $0x78] sm:$0xe] }
  0xc3   : > { %6461 = vmatpush3.bf16.msra.mxu0 %v6922_v47  ;;  %v7961_v16 = vsel %vm7413_vm5, %v5388_v58, %v1380_v51  ;;  %v7971_v15 = vsel %vm7413_vm5, %v1382_v32, %v1383_v19  ;;  %v3870_v5 = vor.u32 %v3869_v28, %v7929_v17  ;;  %v3880_v52 = vrot.slane %v3878_v38, 4  ;;  %v5748_v58 = vld [vmem:[%s7135_s16 + $0x3c] sm:$0xf]  ;;  %v5749_v51 = vld [vmem:[%s7135_s16 + $0x40] sm:$0xf] }
  0xc4   : > { %6462 = vmatprep.subr.bf16.mxu0 %v6926_v53  ;;  %v3842_v0 = vsel %vm7167_vm2, %v3837_v21, %v7889_v7  ;;  %v3852_v46 = vsel %vm7167_vm2, %v3847_v10, %v7917_v42  ;;  %v7982_v39 = vrot.slane %v3887_v13, 5  ;;  %v3893_v22 = vrot.slane %v3891_v31, 4  ;;  %v6996_v19 = vld [vmem:[%s7135_s16 + $0x80] sm:$0x1]  ;;  %v8141_v47 = vld [vmem:[%s7135_s16 + $0x68] sm:$0x1] }
  0xc5   : > { %6431 = vmatmul.mubr.bf16.gmra.mrb[8].mxu0 %v6915_v2  ;;  %v3881_v2 = vshll.u32 %v5745_v43, 16  ;;  %v3873_v43 = vshll.u32 %v5744_v62, 16  ;;  %v5389_v32 = vrot.slane %v1274_v18, 9  ;;  %v1275_v62 = vld [vmem:[%s7135_s16 + $0x84] sm:$0xe]  ;;  %v3902_v28 = vshrl.u32 %v5748_v58, 16 }
  0xc6   : > { %6207 = vmatmul.mubr.bf16.gmra.mrb[24].mxu1 %v5368_v20  ;;  %6434 = vmatprep.mubr.bf16.mxu0 %v6918_v3  ;;  %v6934_v20 = vld [vmem:[%s8930_s1 + $0x1f0] sm:$0xff]   ;;  %v6995_v3 = vld [vmem:[%s7135_s16 + $0x7c] sm:$0xf]  ;;  %v3905_v7 = vshll.u32 %v5748_v58, 16  ;;  %v3911_v38 = vshll.u32 %v5749_v51, 16  ;;  %v8952_v42 = vcombine.low %v7572_v41, %v7577_v12  ;;  %v7993_v13 = vrot.slane %v3870_v5, 4 }
  0xc7   : > { %6210 = vmatprep.mubr.bf16.mxu1 %v5369_v23  ;;  %6463 = vmatpush3.bf16.msra.mxu0 %v6926_v53  ;;  %v3860_v23 = vor.u32 %v3859_v44, %v3856_v34  ;;  %v6923_v53 = vld [vmem:[%s7135_s16 + $0x78] sm:$0xff]   ;;  %v1387_v44 = vrot.slane %v6995_v3, 5  ;;  %v3883_v54 = vrot.slane %v3881_v2, 5  ;;  %v7986_v1 = vrot.slane %v3873_v43, 5  ;;  %v7998_v21 = vld [vmem:[%s8930_s1 + $0x200] sm:$0xff]   ;;  %8960 = vst [vmem:[#allocation5_spill] sm:$0xff] %v8141_v47 }
  0xc8   : > { %6464 = vmatprep.subr.bf16.mxu0 %v6930_v50  ;;  %v5747_v34 = vld [vmem:[%s7135_s16 + $0x38] sm:$0x1]  ;;  %v3915_v2 = vshrl.u32 %v5749_v51, 16  ;;  %v6925_v43 = vld [vmem:[%s7135_s16 + $0x84] sm:$0xff]   ;;  %v3894_v12 = vor.u32 %v3893_v22, %v7982_v39  ;;  %v3907_v58 = vrot.slane %v3905_v7, 5  ;;  %v8020_v51 = vrot.slane %v3911_v38, 5 }
  0xc9   : > { %v7984_v33 = vrot.slane %v3860_v23, 4  ;;  %v1389_v10 = vrot.slane %v1387_v44, 4  ;;  %v3884_v31 = vor.u32 %v3883_v54, %v3880_v52  ;;  %v8953_v23 = vcombine.low %v7803_v59, %v7811_v25  ;;  %v6997_v18 = vld [vmem:[%s7135_s16 + $0x88] sm:$0xf]  ;;  %v5750_v5 = vld [vmem:[%s7135_s16 + $0x44] sm:$0x1] }
  0xca   : > { %v1394_v3 = vrot.slane %v6997_v18, 5  ;;  %v8011_v59 = vcombine.low %v3842_v0, %v3852_v46  ;;  %v5751_v52 = vld [vmem:[%s7135_s16 + $0x48] sm:$0xf]  ;;  %v3904_v54 = vrot.slane %v3902_v28, 4  ;;  %v3917_v22 = vrot.slane %v3915_v2, 4 }
  0xcb   : > { %6465 = vmatpush3.bf16.msra.mxu0 %v6930_v50  ;;  %v1390_v50 = vrot.slane %v6996_v19, 5  ;;  %v6927_v19 = vld [vmem:[%s7135_s16 + $0x90] sm:$0xff]   ;;  %v3866_v0 = vsel %vm7167_vm2, %v7984_v33, %v7929_v17  ;;  %v3885_v46 = vrot.slane %v3884_v31, 4  ;;  %v3876_v28 = vsel %vm7167_vm2, %v7993_v13, %v7986_v1  ;;  %v8042_v33 = vld [vmem:[%s7135_s16 + $0x58] sm:$0xf]  ;;  %v6928_v31 = vld [vmem:[%s8930_s1 + $0xc8] sm:$0xff]  }
  0xcc   : > { %6466 = vmatprep.subr.bf16.mxu0 %v6934_v20  ;;  %v3895_v38 = vrot.slane %v3894_v12, 4  ;;  %v1396_v2 = vrot.slane %v1394_v3, 4  ;;  %v5754_v17 = vld [vmem:[%s7135_s16 + $0x54] sm:$0xf]  ;;  %v3921_v1 = vshll.u32 %v5750_v5, 16  ;;  %v3926_v13 = vshrl.u32 %v5751_v52, 16 }
  0xcd   : > { %6435 = vmatmul.mubr.bf16.gmra.mrb[12].mxu0 %v6921_v48  ;;  %v3897_v48 = vshll.u32 %v5747_v34, 16  ;;  %v8038_v7 = vsel %vm7413_vm5, %v1389_v10, %v1390_v50  ;;  %v3929_v50 = vshll.u32 %v5751_v52, 16  ;;  %v3908_v10 = vor.u32 %v3907_v58, %v3904_v54  ;;  %v6929_v54 = vld [vmem:[%s7135_s16 + $0x9c] sm:$0xff]   ;;  %v7003_v41 = vld [vmem:[%s7135_s16 + $0xac] sm:$0xf] }
  0xce   : > { %6211 = vmatmul.mubr.bf16.gmra.mrb[28].mxu1 %v8952_v42  ;;  %6438 = vmatprep.mubr.bf16.mxu0 %v6923_v53  ;;  %v5390_v53 = vrot.slane %v1275_v62, 9  ;;  %v6998_v42 = vld [vmem:[%s7135_s16 + $0x8c] sm:$0x1]  ;;  %v3959_v5 = vshll.u32 %v8042_v33, 16  ;;  %v8955_v52 = vcombine.low %v7819_v63, %v7827_v8  ;;  %v8078_v63 = vld [vmem:[%s7135_s16 + $0x50] sm:$0x1] }
  0xcf   : > { %6230 = vmatprep.mubr.bf16.mxu1 %v8953_v23  ;;  %6467 = vmatpush3.bf16.msra.mxu0 %v6934_v20  ;;  %v8017_v20 = vsel %vm7413_vm5, %v5389_v32, %v1387_v44  ;;  %v3899_v62 = vrot.slane %v3897_v48, 5  ;;  %v1397_v23 = vrot.slane %v6998_v42, 5  ;;  %v1276_v44 = vld [vmem:[%s7135_s16 + $0x90] sm:$0xe]  ;;  %v8030_v32 = vld [vmem:[%s7135_s16 + $0x4c] sm:$0xf]  ;;  %v3918_v48 = vor.u32 %v3917_v22, %v8020_v51 }
  0xd0   : > { %6468 = vmatprep.subr.bf16.mxu0 %v6938_v40  ;;  %v3935_v12 = vshll.u32 %v8030_v32, 16  ;;  %v3939_v18 = vshrl.u32 %v8030_v32, 16  ;;  %v8954_v42 = vcombine.low %v7807_v30, %v7815_v6  ;;  %v6932_v30 = vld [vmem:[%s8930_s1 + $0xd0] sm:$0xff]   ;;  %v3890_v6 = vsel %vm7167_vm2, %v3885_v46, %v7982_v39  ;;  %v6931_v8 = vld [vmem:[%s7135_s16 + $0xa8] sm:$0xff]   ;;  %v8085_v39 = vld [vmem:[%s7135_s16 + $0x5c] sm:$0x1] }
  0xd1   : > { %v3900_v58 = vsel %vm7167_vm2, %v3895_v38, %v3899_v62  ;;  %v5391_v22 = vrot.slane %v1276_v44, 9  ;;  %v3931_v25 = vrot.slane %v3929_v50, 5  ;;  %8956 = vst [vmem:[#allocation3_spill] sm:$0xff] %v8085_v39  ;;  %v3909_v46 = vrot.slane %v3908_v10, 4 }
  0xd2   : > { %v3919_v62 = vrot.slane %v3918_v48, 4  ;;  %v8087_v38 = vrot.slane %v3935_v12, 5  ;;  %v8089_v34 = vrot.slane %v3959_v5, 5  ;;  %v8094_v50 = vcombine.low %v3866_v0, %v3876_v28  ;;  %v5757_v28 = vld [vmem:[%s7135_s16 + $0x60] sm:$0xf] }
  0xd3   : > { %6469 = vmatpush3.bf16.msra.mxu0 %v6938_v40  ;;  %v8050_v40 = vsel %vm7413_vm5, %v5390_v53, %v1394_v3  ;;  %v3950_v53 = vshrl.u32 %v5754_v17, 16  ;;  %v3953_v3 = vshll.u32 %v5754_v17, 16  ;;  %v6999_v17 = vld [vmem:[%s7135_s16 + $0x94] sm:$0xf]  ;;  %v8098_v48 = vcombine.low %v3890_v6, %v3900_v58 }
  0xd4   : > { %6502 = vmatprep.subr.bf16.mxu0 %v7998_v21  ;;  %v3945_v0 = vshll.u32 %v8078_v63, 16  ;;  %v3914_v6 = vsel %vm7167_vm2, %v3909_v46, %v8020_v51  ;;  %v8959_v46 = vcombine.low %v7841_v61, %v7845_v36 }
  0xd5   : > { %6439 = vmatmul.mubr.bf16.gmra.mrb[16].mxu0 %v6925_v43  ;;  %v3963_v43 = vshrl.u32 %v8042_v33, 16  ;;  %v3952_v44 = vrot.slane %v3950_v53, 4  ;;  %v7000_v53 = vld [vmem:[%s7135_s16 + $0x98] sm:$0x1] }
  0xd6   : > { %6231 = vmatmul.mubr.bf16.vlgmr.msra.gmra.mrb[0].mxu1 %v8954_v42  ;;  %6442 = vmatprep.mubr.bf16.mxu0 %v6927_v19  ;;  %v8081_v19 = vrot.slane %v3921_v1, 5  ;;  %v1401_v42 = vrot.slane %v6999_v17, 5  ;;  %v7001_v17 = vld [vmem:[%s7135_s16 + $0xa0] sm:$0xf]  ;;  %v3947_v36 = vrot.slane %v3945_v0, 5 }
  0xd7   : > { %6263 = vmatpush3.bf16.msra.mxu1 %v7760_v60  ;;  %6234 = vmatprep.mubr.bf16.mxu1 %v8955_v52  ;;  %v8075_v60 = vsel %vm7413_vm5, %v1396_v2, %v1397_v23  ;;  %v3928_v52 = vrot.slane %v3926_v13, 4  ;;  %v3941_v23 = vrot.slane %v3939_v18, 4  ;;  %v3955_v2 = vrot.slane %v3953_v3, 5  ;;  %v6936_v13 = vld [vmem:[%s8930_s1 + $0xd8] sm:$0xff]  }
  0xd8   : > { %6264 = vmatprep.subr.bf16.mxu1 %v6928_v31  ;;  %v3965_v1 = vrot.slane %v3963_v43, 4  ;;  %v1277_v18 = vld [vmem:[%s7135_s16 + $0x9c] sm:$0xe]  ;;  %v1404_v3 = vrot.slane %v7000_v53, 5  ;;  %v8111_v43 = vld [vmem:[%s7135_s16 + $0x64] sm:$0xf] }
  0xd9   : > { %v3932_v5 = vor.u32 %v3931_v25, %v3928_v52  ;;  %8957 = vst [vmem:[#allocation4_spill] sm:$0xff] %v8111_v43  ;;  %v3942_v58 = vor.u32 %v3941_v23, %v8087_v38  ;;  %v1408_v12 = vrot.slane %v7001_v17, 5  ;;  %v8958_v25 = vcombine.low %v7831_v24, %v7835_v35  ;;  %v6933_v23 = vld [vmem:[%s7135_s16 + $0xb4] sm:$0xff]   ;;  %v6939_v24 = vld [vmem:[%s8930_s1 + $0xe0] sm:$0xff]   ;;  %v5760_v17 = vld [vmem:[%s7135_s16 + $0x6c] sm:$0xf] }
  0xda   : > { %v1403_v52 = vrot.slane %v1401_v42, 4  ;;  %v3956_v53 = vor.u32 %v3955_v2, %v3952_v44  ;;  %v3966_v51 = vor.u32 %v3965_v1, %v8089_v34  ;;  %v3974_v35 = vshrl.u32 %v5757_v28, 16  ;;  %v7002_v2 = vld [vmem:[%s7135_s16 + $0xa4] sm:$0x1] }
  0xdb   : > { %6265 = vmatpush3.bf16.msra.mxu1 %v6928_v31  ;;  %v8105_v31 = vsel %vm7413_vm5, %v5391_v22, %v1401_v42  ;;  %v3969_v22 = vshll.u32 %v8085_v39, 16  ;;  %v3987_v42 = vshrl.u32 %v8111_v43, 16  ;;  %v3933_v61 = vrot.slane %v3932_v5, 4  ;;  %v8280_v39 = vld [vmem:[%s7135_s16 + $0x98] sm:$0x1] }
  0xdc   : > { %6266 = vmatprep.subr.bf16.mxu1 %v6932_v30  ;;  %v5392_v44 = vrot.slane %v1277_v18, 9  ;;  %v1411_v1 = vrot.slane %v7002_v2, 5  ;;  %v3957_v5 = vrot.slane %v3956_v53, 4  ;;  %v3967_v18 = vrot.slane %v3966_v51, 4  ;;  %8973 = vst [vmem:[#allocation14_spill] sm:$0xff] %v8280_v39 }
  0xdd   : > { %6443 = vmatmul.mubr.bf16.gmra.mrb[20].mxu0 %v6929_v54  ;;  %v3924_v54 = vsel %vm7167_vm2, %v3919_v62, %v8081_v19  ;;  %v3983_v19 = vshll.u32 %v8111_v43, 16  ;;  %v6935_v62 = vld [vmem:[%s7135_s16 + $0xc0] sm:$0xff]   ;;  %v3971_v10 = vrot.slane %v3969_v22, 5  ;;  %v8147_v43 = vsel %vm7413_vm5, %v1403_v52, %v1404_v3 }
  0xde   : > { %6235 = vmatmul.mubr.bf16.gmra.mrb[4].mxu1 %v8958_v25  ;;  %6446 = vmatprep.mubr.bf16.mxu0 %v6931_v8  ;;  %v3977_v8 = vshll.u32 %v5757_v28, 16  ;;  %v3943_v25 = vrot.slane %v3942_v58, 4  ;;  %v1415_v28 = vrot.slane %v7003_v41, 5  ;;  %v8143_v55 = vcombine.low %v3914_v6, %v3924_v54  ;;  %v6941_v41 = vld [vmem:[%s8930_s1 + $0xe8] sm:$0xff]  }
  0xdf   : > { %6238 = vmatprep.mubr.bf16.mxu1 %v8959_v46  ;;  %6267 = vmatpush3.bf16.msra.mxu1 %v6932_v30  ;;  %v1278_v30 = vld [vmem:[%s7135_s16 + $0xa8] sm:$0xe]  ;;  %v1410_v46 = vrot.slane %v1408_v12, 4  ;;  %v3976_v0 = vrot.slane %v3974_v35, 4  ;;  %v8149_v58 = vrot.slane %v3983_v19, 5  ;;  %v3989_v22 = vrot.slane %v3987_v42, 4 }
  0xe0   : > { %6268 = vmatprep.subr.bf16.mxu1 %v6936_v13  ;;  %v3979_v2 = vrot.slane %v3977_v8, 5  ;;  %v3938_v3 = vsel %vm7167_vm2, %v3933_v61, %v8087_v38  ;;  %v8159_v6 = vsel %vm7413_vm5, %v5392_v44, %v1408_v12  ;;  %v3998_v54 = vshrl.u32 %v5760_v17, 16  ;;  %v7004_v38 = vld [vmem:[%s7135_s16 + $0xb0] sm:$0x1]  ;;  %v1279_v19 = vld [vmem:[%s7135_s16 + $0xb4] sm:$0xe] }
  0xe1   : > { %v4001_v52 = vshll.u32 %v5760_v17, 16  ;;  %v3948_v53 = vsel %vm7167_vm2, %v3943_v25, %v3947_v36  ;;  %v8168_v51 = vsel %vm7413_vm5, %v1410_v46, %v1411_v1  ;;  %v5393_v35 = vrot.slane %v1278_v30, 9  ;;  %v8190_v30 = vld [vmem:[%s7135_s16 + $0x74] sm:$0x1]  ;;  %v7005_v25 = vld [vmem:[%s7135_s16 + $0xb8] sm:$0xf] }
  0xe2   : > { %v1418_v8 = vrot.slane %v7004_v38, 5  ;;  %v8962_v12 = vcombine.low %v7862_v49, %v7876_v4  ;;  %v3962_v42 = vsel %vm7167_vm2, %v3957_v5, %v8089_v34  ;;  %v3972_v61 = vsel %vm7167_vm2, %v3967_v18, %v3971_v10  ;;  %v6937_v4 = vld [vmem:[%s7135_s16 + $0xcc] sm:$0xff]   ;;  %8964 = vst [vmem:[#allocation7_spill] sm:$0xff] %v8190_v30  ;;  %v5766_v38 = vld [vmem:[%s7135_s16 + $0x84] sm:$0xf] }
  0xe3   : > { %6269 = vmatpush3.bf16.msra.mxu1 %v6936_v13  ;;  %v8162_v13 = vld [vmem:[%s7135_s16 + $0x70] sm:$0xf]  ;;  %v1417_v36 = vrot.slane %v1415_v28, 4  ;;  %v3993_v44 = vshll.u32 %v8141_v47, 16  ;;  %v8963_v49 = vcombine.low %v7898_v26, %v7902_v56  ;;  %v3990_v1 = vor.u32 %v3989_v22, %v8149_v58  ;;  %v8207_v22 = vld [vmem:[%s7135_s16 + $0x7c] sm:$0xf] }
  0xe4   : > { %6270 = vmatprep.subr.bf16.mxu1 %v6939_v24  ;;  %8961 = vst [vmem:[#allocation6_spill] sm:$0xff] %v8162_v13  ;;  %v4007_v34 = vshll.u32 %v8162_v13, 16  ;;  %v4011_v10 = vshrl.u32 %v8162_v13, 16  ;;  %v5394_v17 = vrot.slane %v1279_v19, 9  ;;  %v1422_v46 = vrot.slane %v7005_v25, 5  ;;  %8965 = vst [vmem:[#allocation8_spill] sm:$0xff] %v8207_v22 }
  0xe5   : > { %6447 = vmatmul.mubr.bf16.gmra.mrb[24].mxu0 %v6933_v23  ;;  %v6943_v23 = vld [vmem:[%s8930_s1 + $0xf0] sm:$0xff]   ;;  %v4000_v26 = vrot.slane %v3998_v54, 4  ;;  %v4003_v56 = vrot.slane %v4001_v52, 5  ;;  %v8198_v18 = vcombine.low %v3938_v3, %v3948_v53  ;;  %v8210_v19 = vcombine.low %v3962_v42, %v3972_v61  ;;  %v7006_v3 = vld [vmem:[%s7135_s16 + $0xbc] sm:$0x1] }
  0xe6   : > { %6239 = vmatmul.mubr.bf16.gmra.mrb[8].mxu1 %v8962_v12  ;;  %6450 = vmatprep.mubr.bf16.mxu0 %v6935_v62  ;;  %v3980_v62 = vor.u32 %v3979_v2, %v3976_v0  ;;  %v8204_v2 = vsel %vm7413_vm5, %v5393_v35, %v1415_v28  ;;  %v8214_v54 = vsel %vm7413_vm5, %v1417_v36, %v1418_v8  ;;  %v8216_v52 = vrot.slane %v3993_v44, 5  ;;  %v6945_v12 = vld [vmem:[%s8930_s1 + $0xf8] sm:$0xff]   ;;  %v8223_v28 = vld [vmem:[%s7135_s16 + $0x88] sm:$0xf] }
  0xe7   : > { %6242 = vmatprep.mubr.bf16.mxu1 %v8963_v49  ;;  %6271 = vmatpush3.bf16.msra.mxu1 %v6939_v24  ;;  %v5763_v24 = vld [vmem:[%s7135_s16 + $0x78] sm:$0xf]  ;;  %v1425_v53 = vrot.slane %v7006_v3, 5  ;;  %8966 = vst [vmem:[#allocation9_spill] sm:$0xff] %v8223_v28  ;;  %v8227_v42 = vrot.slane %v3990_v1, 4  ;;  %v8229_v61 = vrot.slane %v4007_v34, 5  ;;  %v8233_v36 = vsel %vm7413_vm5, %v5394_v17, %v1422_v46 }
  0xe8   : > { %6272 = vmatprep.subr.bf16.mxu1 %v6941_v41  ;;  %v8225_v35 = vrot.slane %v3980_v62, 4  ;;  %v4013_v8 = vrot.slane %v4011_v10, 4  ;;  %v1424_v44 = vrot.slane %v1422_v46, 4  ;;  %v4004_v49 = vor.u32 %v4003_v56, %v4000_v26  ;;  %v5769_v3 = vld [vmem:[%s7135_s16 + $0x90] sm:$0xf] }
  0xe9   : > { %v4017_v25 = vshll.u32 %v8190_v30, 16  ;;  %v4025_v0 = vshll.u32 %v5763_v24, 16  ;;  %v4031_v62 = vshll.u32 %v8207_v22, 16  ;;  %v4035_v1 = vshrl.u32 %v8207_v22, 16  ;;  %v8240_v34 = vld [vmem:[%s7135_s16 + $0x94] sm:$0xf] }
  0xea   : > { %8967 = vst [vmem:[#allocation10_spill] sm:$0xff] %v8240_v34  ;;  %v8968_v10 = vcombine.low %v7942_v27, %v7946_v29  ;;  %v4046_v17 = vshrl.u32 %v5766_v38, 16  ;;  %v4049_v46 = vshll.u32 %v5766_v38, 16  ;;  %v4059_v26 = vshrl.u32 %v8223_v28, 16  ;;  %v5772_v38 = vld [vmem:[%s7135_s16 + $0x9c] sm:$0xf] }
  0xeb   : > { %6273 = vmatpush3.bf16.msra.mxu1 %v6941_v41  ;;  %v4022_v41 = vshrl.u32 %v5763_v24, 16  ;;  %v8969_v56 = vcombine.low %v7953_v45, %v7957_v14  ;;  %v4014_v29 = vor.u32 %v4013_v8, %v8229_v61  ;;  %v4073_v24 = vshll.u32 %v5769_v3, 16  ;;  %v8262_v45 = vld [vmem:[%s7135_s16 + $0x80] sm:$0x1] }
  0xec   : > { %6274 = vmatprep.subr.bf16.mxu1 %v6943_v23  ;;  %v8259_v5 = vrot.slane %v4017_v25, 5  ;;  %8970 = vst [vmem:[#allocation11_spill] sm:$0xff] %v8262_v45  ;;  %v4079_v14 = vshll.u32 %v8240_v34, 16  ;;  %v4027_v27 = vrot.slane %v4025_v0, 5  ;;  %v4037_v8 = vrot.slane %v4035_v1, 4 }
  0xed   : > { %6451 = vmatmul.mubr.bf16.gmra.mrb[28].mxu0 %v6937_v4  ;;  %v4055_v4 = vshll.u32 %v8223_v28, 16  ;;  %v8266_v28 = vrot.slane %v4031_v62, 5  ;;  %v8272_v22 = vld [vmem:[%s7135_s16 + $0xa0] sm:$0xf]  ;;  %v4048_v25 = vrot.slane %v4046_v17, 4  ;;  %v4051_v30 = vrot.slane %v4049_v46, 5 }
  0xee   : > { %6243 = vmatmul.mubr.bf16.gmra.mrb[12].mxu1 %v8968_v10  ;;  %6470 = vmatprep.mubr.bf16.mxu0 %v8011_v59  ;;  %v4070_v59 = vshrl.u32 %v5769_v3, 16  ;;  %v8257_v10 = vrot.slane %v4004_v49, 4  ;;  %v8269_v3 = vld [vmem:[%s7135_s16 + $0x8c] sm:$0x1]  ;;  %8972 = vst [vmem:[#allocation13_spill] sm:$0xff] %v8272_v22  ;;  %v4061_v47 = vrot.slane %v4059_v26, 4  ;;  %v8289_v62 = vsel %vm7413_vm5, %v1424_v44, %v1425_v53 }
  0xef   : > { %6246 = vmatprep.mubr.bf16.mxu1 %v8969_v56  ;;  %6275 = vmatpush3.bf16.msra.mxu1 %v6943_v23  ;;  %v4083_v23 = vshrl.u32 %v8240_v34, 16  ;;  %v4024_v56 = vrot.slane %v4022_v41, 4  ;;  %8971 = vst [vmem:[#allocation12_spill] sm:$0xff] %v8269_v3  ;;  %v6942_v49 = vld [vmem:[%s8930_s1 + $0x208] sm:$0xff]   ;;  %v8277_v13 = vrot.slane %v4055_v4, 5  ;;  %v4075_v34 = vrot.slane %v4073_v24, 5 }
  0xf0   : > { %6276 = vmatprep.subr.bf16.mxu1 %v6945_v12  ;;  %v5775_v41 = vld [vmem:[%s7135_s16 + $0xa8] sm:$0xf]  ;;  %v4072_v1 = vrot.slane %v4070_v59, 4  ;;  %v8294_v17 = vld [vmem:[%s8930_s1 + $0x100] sm:$0xff]   ;;  %v8297_v46 = vrot.slane %v4079_v14, 5  ;;  %v4094_v26 = vshrl.u32 %v5772_v38, 16  ;;  %v8975_v24 = vcombine.low %v7961_v16, %v7971_v15 }
  0xf1   : > { %8974 = vst [vmem:[#allocation15_spill] sm:$0xff] %v8294_v17  ;;  %v4085_v4 = vrot.slane %v4083_v23, 4  ;;  %v4097_v0 = vshll.u32 %v5772_v38, 16  ;;  %v8300_v53 = vrot.slane %v4014_v29, 4  ;;  %v4103_v44 = vshll.u32 %v8272_v22, 16  ;;  %v6944_v16 = vld [vmem:[%s8930_s1 + $0x210] sm:$0xff]  }
  0xf2   : > { %v4107_v59 = vshrl.u32 %v8272_v22, 16  ;;  %v4028_v14 = vor.u32 %v4027_v27, %v4024_v56  ;;  %v4038_v38 = vor.u32 %v4037_v8, %v8266_v28  ;;  %v4052_v23 = vor.u32 %v4051_v30, %v4048_v25  ;;  %v8312_v29 = vld [vmem:[%s7135_s16 + $0xac] sm:$0xf]  ;;  %v8325_v25 = vld [vmem:[%s7135_s16 + $0xa4] sm:$0x1] }
  0xf3   : > { %6277 = vmatpush3.bf16.msra.mxu1 %v6945_v12  ;;  %v4041_v12 = vshll.u32 %v8262_v45, 16  ;;  %8976 = vst [vmem:[#allocation16_spill] sm:$0xff] %v8312_v29  ;;  %v4062_v15 = vor.u32 %v4061_v47, %v8277_v13  ;;  %v4118_v27 = vshrl.u32 %v5775_v41, 16  ;;  %v4121_v30 = vshll.u32 %v5775_v41, 16 }
  0xf4   : > { %6550 = vmatprep.subr.bf16.mxu1 %v8294_v17  ;;  %v8977_v17 = vcombine.low %v8017_v20, %v8038_v7  ;;  %v4076_v56 = vor.u32 %v4075_v34, %v4072_v1  ;;  %v4086_v8 = vor.u32 %v4085_v4, %v8297_v46  ;;  %v4096_v20 = vrot.slane %v4094_v26, 4 }
  0xf5   : > { %6471 = vmatmul.mubr.bf16.vlgmr.msra.gmra.mrb[0].mxu0 %v8094_v50  ;;  %v4065_v50 = vshll.u32 %v8269_v3, 16  ;;  %v4099_v7 = vrot.slane %v4097_v0, 5  ;;  %v4131_v22 = vshrl.u32 %v8312_v29, 16  ;;  %v4029_v47 = vrot.slane %v4028_v14, 4  ;;  %v6946_v0 = vld [vmem:[%s8930_s1 + $0x218] sm:$0xff]  }
  0xf6   : > { %6247 = vmatmul.mubr.bf16.gmra.mrb[16].mxu1 %v8975_v24  ;;  %6503 = vmatpush3.bf16.msra.mxu0 %v7998_v21  ;;  %v4089_v21 = vshll.u32 %v8280_v39, 16  ;;  %v4127_v24 = vshll.u32 %v8312_v29, 16  ;;  %v4039_v39 = vrot.slane %v4038_v38, 4  ;;  %v4043_v3 = vrot.slane %v4041_v12, 5 }
  0xf7   : > { %6250 = vmatprep.mubr.bf16.mxu1 %v8977_v17  ;;  %6474 = vmatprep.mubr.bf16.mxu0 %v8098_v48  ;;  %v8327_v17 = vrot.slane %v4103_v44, 5  ;;  %v4109_v48 = vrot.slane %v4107_v59, 4  ;;  %v4067_v41 = vrot.slane %v4065_v50, 5  ;;  %v4053_v34 = vrot.slane %v4052_v23, 4 }
  0xf8   : > { %6504 = vmatprep.subr.bf16.mxu0 %v6942_v49  ;;  %v4063_v1 = vrot.slane %v4062_v15, 4  ;;  %v4120_v4 = vrot.slane %v4118_v27, 4  ;;  %v4123_v45 = vrot.slane %v4121_v30, 5  ;;  %v4077_v26 = vrot.slane %v4076_v56, 4  ;;  %v8393_v27 = vld [vmem:[%s7135_s16 + $0xbc] sm:$0x1] }
  0xf9   : > { %v4091_v44 = vrot.slane %v4089_v21, 5  ;;  %v4100_v59 = vor.u32 %v4099_v7, %v4096_v20  ;;  %v4113_v29 = vshll.u32 %v8325_v25, 16  ;;  %v4110_v12 = vor.u32 %v4109_v48, %v8327_v17  ;;  %v8360_v21 = vld [vmem:[%s7135_s16 + $0xb0] sm:$0x1] }
  0xfa   : > { %6505 = vmatpush3.bf16.msra.mxu0 %v6942_v49  ;;  %v4087_v49 = vrot.slane %v4086_v8, 4  ;;  %v8337_v14 = vrot.slane %v4127_v24, 5  ;;  %v4133_v38 = vrot.slane %v4131_v22, 4  ;;  %v8978_v23 = vor.u32 %v7745_v57, %v7743_v11 }
  0xfb   : > { %6506 = vmatprep.subr.bf16.mxu0 %v6944_v16  ;;  %v8979_v15 = vcombine.low %v8050_v40, %v8075_v60  ;;  %v4020_v22 = vsel %vm7167_vm2, %v8300_v53, %v8259_v5  ;;  %v4034_v57 = vsel %vm7167_vm2, %v4029_v47, %v8266_v28  ;;  %v8980_v40 = vcombine.low %v8105_v31, %v8147_v43  ;;  %v6949_v31 = vld [vmem:[%s8930_s1 + $0x220] sm:$0xff]  }
  0xfc   : > { %v8342_v50 = vrot.slane %v8978_v23, 4  ;;  %v4044_v60 = vsel %vm7167_vm2, %v4039_v39, %v4043_v3  ;;  %v4124_v5 = vor.u32 %v4123_v45, %v4120_v4  ;;  %v4068_v28 = vsel %vm7167_vm2, %v4063_v1, %v4067_v41  ;;  %v5831_v41 = vld [vmem:[%s7135_s16 + $0x48] sm:$0xe] }
  0xfd   : > { %6475 = vmatmul.mubr.bf16.gmra.mrb[4].mxu0 %v8143_v55  ;;  %v4010_v55 = vsel %vm7167_vm2, %v8257_v10, %v8229_v61  ;;  %v5778_v61 = vld [vmem:[%s7135_s16 + $0xb4] sm:$0xf]  ;;  %v8372_v10 = vld [vmem:[%s7135_s16 + $0xb8] sm:$0xf]  ;;  %v4082_v39 = vsel %vm7167_vm2, %v4077_v26, %v8297_v46  ;;  %v8382_v43 = vrot.slane %v4100_v59, 4  ;;  %v8384_v3 = vrot.slane %v4113_v29, 5 }
  0xfe   : > { %6251 = vmatmul.mubr.bf16.gmra.mrb[20].mxu1 %v8979_v15  ;;  %6478 = vmatprep.mubr.bf16.mxu0 %v8198_v18  ;;  %v4058_v18 = vsel %vm7167_vm2, %v4053_v34, %v8277_v13  ;;  %v4092_v13 = vsel %vm7167_vm2, %v4087_v49, %v4091_v44  ;;  %v8388_v45 = vrot.slane %v4110_v12, 4  ;;  %v4134_v53 = vor.u32 %v4133_v38, %v8337_v14  ;;  %v5832_v26 = vld [vmem:[%s7135_s16 + $0x54] sm:$0xe] }
  0xff   : > { %6254 = vmatprep.mubr.bf16.mxu1 %v8980_v40  ;;  %6507 = vmatpush3.bf16.msra.mxu0 %v6944_v16  ;;  %v4137_v16 = vshll.u32 %v8360_v21, 16  ;;  %v8981_v46 = vsel %vm7167_vm2, %v8227_v42, %v8216_v52  ;;  %v8982_v29 = vsel %vm7167_vm2, %v8225_v35, %v8149_v58  ;;  %v4142_v56 = vshrl.u32 %v5778_v61, 16 }
 0x100   : > { %6508 = vmatprep.subr.bf16.mxu0 %v6946_v0  ;;  %v5809_v30 = vcombine.low %v8982_v29, %v8981_v46  ;;  %v4145_v8 = vshll.u32 %v5778_v61, 16  ;;  %v4151_v20 = vshll.u32 %v8372_v10, 16  ;;  %v5425_v7 = vcombine.low %v8204_v2, %v8214_v54  ;;  %v6952_v2 = vld [vmem:[%s8930_s1 + $0x228] sm:$0xff]   ;;  %v5781_v54 = vld [vmem:[%s7135_s16 + $0xc0] sm:$0xf]  ;;  %v8986_v29 = vld [vmem:[#allocation5_spill] sm:$0xff] }
 0x101   : > { %v5426_v48 = vcombine.low %v8233_v36, %v8289_v62  ;;  %v5810_v24 = vcombine.low %v4010_v55, %v4020_v22  ;;  %v8410_v52 = vrot.slane %v4124_v5, 4  ;;  %v5811_v42 = vcombine.low %v4034_v57, %v4044_v60 }
 0x102   : > { %v8412_v58 = vcombine.low %v4058_v18, %v4068_v28  ;;  %v8414_v35 = vcombine.low %v4082_v39, %v4092_v13  ;;  %v4106_v47 = vsel %vm7167_vm2, %v8382_v43, %v8327_v17  ;;  %v4116_v34 = vsel %vm7167_vm2, %v8388_v45, %v8384_v3  ;;  %v5834_v28 = vld [vmem:[%s7135_s16 + $0x6c] sm:$0xe] }
 0x103   : > { %6509 = vmatpush3.bf16.msra.mxu0 %v6946_v0  ;;  %v8430_v1 = vrot.slane %v4134_v53, 4  ;;  %v8432_v4 = vrot.slane %v4137_v16, 5  ;;  %v4155_v0 = vshrl.u32 %v8372_v10, 16  ;;  %v8983_v44 = vcombine.low %v8159_v6, %v8168_v51  ;;  %v6955_v6 = vld [vmem:[%s8930_s1 + $0x230] sm:$0xff]   ;;  %v8454_v51 = vld [vmem:[%s7135_s16 + $0xc4] sm:$0xf] }
 0x104   : > { %6510 = vmatprep.subr.bf16.mxu0 %v6949_v31  ;;  %v8439_v59 = vrot.slane %v4142_v56, 4  ;;  %v8443_v49 = vrot.slane %v4151_v20, 5  ;;  %v4161_v12 = vshll.u32 %v8393_v27, 16  ;;  %v4130_v38 = vsel %vm7167_vm2, %v8410_v52, %v8337_v14  ;;  %v5833_v14 = vld [vmem:[%s7135_s16 + $0x60] sm:$0xe]  ;;  %v8984_v39 = vld [vmem:[#allocation3_spill] sm:$0xff] }
 0x105   : > { %6479 = vmatmul.mubr.bf16.gmra.mrb[8].mxu0 %v8210_v19  ;;  %v8441_v19 = vrot.slane %v4145_v8, 5  ;;  %v4166_v23 = vshrl.u32 %v5781_v54, 16  ;;  %v5847_v15 = vrot.slane %v5831_v41, 9  ;;  %v4629_v55 = vrot.slane %v8030_v32, 5  ;;  %v6947_v13 = vld [vmem:[%s7135_s16 + $0xc] sm:$0xff]   ;;  %v6958_v56 = vld [vmem:[%s8930_s1 + $0x238] sm:$0xff]  }
 0x106   : > { %6255 = vmatmul.mubr.bf16.gmra.mrb[24].mxu1 %v8983_v44  ;;  %6482 = vmatprep.mubr.bf16.mxu0 %v5809_v30  ;;  %v4169_v22 = vshll.u32 %v5781_v54, 16  ;;  %v4632_v57 = vrot.slane %v8078_v63, 5  ;;  %v5848_v40 = vrot.slane %v5832_v26, 9  ;;  %v4636_v60 = vrot.slane %v8042_v33, 5  ;;  %v8985_v16 = vld [vmem:[#allocation4_spill] sm:$0xff]  ;;  %v8987_v52 = vld [vmem:[#allocation6_spill] sm:$0xff] }
 0x107   : > { %6258 = vmatprep.mubr.bf16.mxu1 %v5425_v7  ;;  %6511 = vmatpush3.bf16.msra.mxu0 %v6949_v31  ;;  %v4140_v18 = vsel %vm7167_vm2, %v8430_v1, %v8432_v4  ;;  %v8464_v5 = vrot.slane %v4155_v0, 4  ;;  %v8468_v61 = vsel %vm7413_vm5, %v5847_v15, %v4629_v55  ;;  %v4631_v32 = vrot.slane %v4629_v55, 4  ;;  %v8988_v4 = vld [vmem:[#allocation7_spill] sm:$0xff] }
 0x108   : > { %6512 = vmatprep.subr.bf16.mxu0 %v6952_v2  ;;  %v4175_v31 = vshll.u32 %v8454_v51, 16  ;;  %v8474_v63 = vsel %vm7413_vm5, %v5848_v40, %v4636_v60  ;;  %v4638_v33 = vrot.slane %v4636_v60, 4  ;;  %v4639_v3 = vrot.slane %v8984_v39, 5  ;;  %v8505_v26 = vld [vmem:[%s7135_s16 + $0xc8] sm:$0x1]  ;;  %v6948_v40 = vld [vmem:[%s7135_s16 + $0x18] sm:$0xff]  }
 0x109   : > { %v8480_v45 = vsel %vm7413_vm5, %v4631_v32, %v4632_v57  ;;  %v5849_v53 = vrot.slane %v5833_v14, 9  ;;  %v4643_v46 = vrot.slane %v8985_v16, 5  ;;  %v4646_v30 = vrot.slane %v8986_v29, 5  ;;  %v6950_v39 = vld [vmem:[%s7135_s16 + $0x24] sm:$0xff]  }
 0x10a   : > { %v5879_v8 = vcombine.low %v8468_v61, %v8480_v45  ;;  %v8491_v20 = vsel %vm7413_vm5, %v4638_v33, %v4639_v3  ;;  %v5850_v7 = vrot.slane %v5834_v28, 9  ;;  %v4653_v0 = vrot.slane %v8988_v4, 5  ;;  %v8990_v28 = vld [vmem:[#allocation11_spill] sm:$0xff]  ;;  %v5540_v61 = vld [vmem:[%s7135_s16 + $0x90] sm:$0xf] }
 0x10b   : > { %6513 = vmatpush3.bf16.msra.mxu0 %v6952_v2  ;;  %v4650_v2 = vrot.slane %v8987_v52, 5  ;;  %v5880_v54 = vcombine.low %v8474_v63, %v8491_v20  ;;  %v8498_v41 = vsel %vm7413_vm5, %v5849_v53, %v4643_v46  ;;  %v4645_v1 = vrot.slane %v4643_v46, 4  ;;  %v8991_v53 = vld [vmem:[#allocation2_spill] sm:$0xff]  ;;  %v6964_v45 = vld [vmem:[%s7135_s16 + $0xa8] sm:$0xff]  }
 0x10c   : > { %6514 = vmatprep.subr.bf16.mxu0 %v6955_v6  ;;  %v8507_v44 = vrot.slane %v4166_v23, 4  ;;  %v8520_v36 = vcombine.low %v4106_v47, %v4116_v34  ;;  %v4148_v62 = vor.u32 %v8441_v19, %v8439_v59  ;;  %v5835_v23 = vld [vmem:[%s7135_s16 + $0x78] sm:$0xe]  ;;  %v8532_v57 = vrot.slane %v4161_v12, 5  ;;  %v5784_v12 = vld [vmem:[%s7135_s16 + $0xcc] sm:$0xf] }
 0x10d   : > { %6483 = vmatmul.mubr.bf16.gmra.mrb[12].mxu0 %v5810_v24  ;;  %v8509_v24 = vrot.slane %v4169_v22, 5  ;;  %v8513_v15 = vsel %vm7413_vm5, %v5850_v7, %v4650_v2  ;;  %v4652_v55 = vrot.slane %v4650_v2, 4  ;;  %v8530_v22 = vcombine.low %v4130_v38, %v4140_v18  ;;  %v5534_v47 = vld [vmem:[%s7135_s16 + $0x78] sm:$0xf]  ;;  %v8989_v18 = vld [vmem:[#allocation8_spill] sm:$0xff] }
 0x10e   : > { %6259 = vmatmul.mubr.bf16.gmra.mrb[28].mxu1 %v5426_v48  ;;  %6486 = vmatprep.mubr.bf16.mxu0 %v5811_v42  ;;  %v4179_v48 = vshrl.u32 %v8454_v51, 16  ;;  %v8527_v42 = vsel %vm7413_vm5, %v4645_v1, %v4646_v30  ;;  %v4158_v34 = vor.u32 %v8464_v5, %v8443_v49  ;;  %v8543_v59 = vrot.slane %v4175_v31, 5  ;;  %v8557_v31 = vld [vmem:[%s7135_s16 + $0xd0] sm:$0xf]  ;;  %v8992_v1 = vld [vmem:[#allocation9_spill] sm:$0xff] }
 0x10f   : > { %6278 = vmatprep.mubr.bf16.mxu1 %v6947_v13  ;;  %6515 = vmatpush3.bf16.msra.mxu0 %v6955_v6  ;;  %v5881_v17 = vcombine.low %v8498_v41, %v8527_v42  ;;  %v8538_v43 = vsel %vm7413_vm5, %v4652_v55, %v4653_v0  ;;  %v4185_v19 = vshll.u32 %v8505_v26, 16  ;;  %v5836_v6 = vld [vmem:[%s7135_s16 + $0x84] sm:$0xe]  ;;  %v4172_v60 = vor.u32 %v8509_v24, %v8507_v44  ;;  %v8993_v24 = vld [vmem:[#allocation12_spill] sm:$0xff]  ;;  %v7028_v63 = vld [vmem:[%s7135_s16 + $0x8c] sm:$0x1] }
 0x110   : > { %6516 = vmatprep.subr.bf16.mxu0 %v6958_v56  ;;  %v5882_v38 = vcombine.low %v8513_v15, %v8538_v43  ;;  %v5851_v14 = vrot.slane %v5835_v23, 9  ;;  %v4657_v32 = vrot.slane %v8989_v18, 5  ;;  %v4660_v33 = vrot.slane %v8990_v28, 5 }
 0x111   : > { %v4181_v5 = vrot.slane %v4179_v48, 4  ;;  %v2404_v3 = vshrl.u32 %v5534_v47, 16  ;;  %v2407_v13 = vshll.u32 %v5534_v47, 16  ;;  %v2426_v16 = vsel %vm7167_vm2, %v8342_v50, %v8991_v53 }
 0x112   : > { %v4190_v46 = vshrl.u32 %v5784_v12, 16  ;;  %v8565_v29 = vsel %vm7413_vm5, %v5851_v14, %v4657_v32  ;;  %v4659_v30 = vrot.slane %v4657_v32, 4  ;;  %v5852_v7 = vrot.slane %v5836_v6, 9  ;;  %v7008_v6 = vld [vmem:[%s8930_s1 + $0x108] sm:$0xff]  }
 0x113   : > { %6517 = vmatpush3.bf16.msra.mxu0 %v6958_v56  ;;  %v4193_v52 = vshll.u32 %v5784_v12, 16  ;;  %v2406_v2 = vrot.slane %v2404_v3, 4  ;;  %v2409_v56 = vrot.slane %v2407_v13, 5  ;;  %v4664_v4 = vrot.slane %v8992_v1, 5  ;;  %v5837_v12 = vld [vmem:[%s7135_s16 + $0x90] sm:$0xe] }
 0x114   : > { %v4199_v50 = vshll.u32 %v8557_v31, 16  ;;  %v4203_v0 = vshrl.u32 %v8557_v31, 16  ;;  %v8574_v44 = vsel %vm7413_vm5, %v4659_v30, %v4660_v33  ;;  %v4667_v55 = vrot.slane %v8993_v24, 5  ;;  %v6951_v3 = vld [vmem:[%s7135_s16 + $0x30] sm:$0xff]  }
 0x115   : > { %6487 = vmatmul.mubr.bf16.gmra.mrb[16].mxu0 %v8412_v58  ;;  %v8994_v58 = vld [vmem:[#allocation15_spill] sm:$0xff]  ;;  %v4182_v48 = vor.u32 %v4181_v5, %v8543_v59  ;;  %v2410_v23 = vor.u32 %v2409_v56, %v2406_v2  ;;  %v4666_v47 = vrot.slane %v4664_v4, 4  ;;  %v4159_v14 = vrot.slane %v4158_v34, 4  ;;  %v8595_v13 = vld [vmem:[%s7135_s16 + $0xd4] sm:$0x1]  ;;  %v8995_v2 = vld [vmem:[#allocation10_spill] sm:$0xff] }
 0x116   : > { %6279 = vmatmul.mubr.bf16.vlgmr.msra.gmra.mrb[0].mxu1 %v6948_v40  ;;  %6490 = vmatprep.mubr.bf16.mxu0 %v8414_v35  ;;  %v5883_v35 = vcombine.low %v8565_v29, %v8574_v44  ;;  %v4149_v40 = vrot.slane %v4148_v62, 4  ;;  %v4187_v18 = vrot.slane %v4185_v19, 5  ;;  %v8587_v32 = vsel %vm7413_vm5, %v5852_v7, %v4664_v4  ;;  %v6953_v19 = vld [vmem:[%s7135_s16 + $0x3c] sm:$0xff]   ;;  %v7009_v1 = vld [vmem:[%s8930_s1 + $0x110] sm:$0xff]  }
 0x117   : > { %6558 = vmatpush3.bf16.msra.mxu1 %v8994_v58  ;;  %6282 = vmatprep.mubr.bf16.mxu1 %v6950_v39  ;;  %v4192_v28 = vrot.slane %v4190_v46, 4  ;;  %v4195_v33 = vrot.slane %v4193_v52, 5  ;;  %v2411_v39 = vrot.slane %v2410_v23, 4  ;;  %v8591_v5 = vsel %vm7413_vm5, %v4666_v47, %v4667_v55  ;;  %v7010_v47 = vld [vmem:[%s7135_s16 + $0x1c] sm:$0xf] }
 0x118   : > { %6551 = vmatprep.subr.bf16.mxu1 %v7008_v6  ;;  %v8597_v53 = vrot.slane %v4199_v50, 5  ;;  %v4205_v30 = vrot.slane %v4203_v0, 4  ;;  %v5884_v62 = vcombine.low %v8587_v32, %v8591_v5  ;;  %v5853_v34 = vrot.slane %v5837_v12, 9 }
 0x119   : > { %v4173_v7 = vrot.slane %v4172_v60, 4  ;;  %v4183_v46 = vrot.slane %v4182_v48, 4  ;;  %v2416_v52 = vsel %vm7167_vm2, %v2411_v39, %v7743_v11  ;;  %v4671_v56 = vrot.slane %v8995_v2, 5  ;;  %v8996_v11 = vld [vmem:[#allocation14_spill] sm:$0xff]  ;;  %v6954_v39 = vld [vmem:[%s7135_s16 + $0x48] sm:$0xff]  }
 0x11a   : > { %v4154_v4 = vsel %vm7167_vm2, %v4149_v40, %v8443_v49  ;;  %v4164_v60 = vsel %vm7167_vm2, %v4159_v14, %v8532_v57  ;;  %v8615_v50 = vcombine.low %v2416_v52, %v2426_v16  ;;  %v4674_v0 = vrot.slane %v8996_v11, 5  ;;  %v5827_v57 = vld [vmem:[%s7135_s16 + $0x18] sm:$0xe]  ;;  %v5838_v16 = vld [vmem:[%s7135_s16 + $0x9c] sm:$0xe] }
 0x11b   : > { %6559 = vmatpush3.bf16.msra.mxu1 %v7008_v6  ;;  %v4196_v24 = vor.u32 %v4195_v33, %v4192_v28  ;;  %v4209_v55 = vshll.u32 %v8595_v13, 16  ;;  %v8622_v58 = vsel %vm7413_vm5, %v5853_v34, %v4671_v56  ;;  %v4673_v48 = vrot.slane %v4671_v56, 4  ;;  %v7011_v40 = vld [vmem:[%s8930_s1 + $0x118] sm:$0xff]   ;;  %v7012_v2 = vld [vmem:[%s7135_s16 + $0x20] sm:$0x1] }
 0x11c   : > { %6552 = vmatprep.subr.bf16.mxu1 %v7009_v1  ;;  %v4206_v49 = vor.u32 %v4205_v30, %v8597_v53  ;;  %v4188_v23 = vsel %vm7167_vm2, %v4183_v46, %v4187_v18  ;;  %v4601_v12 = vrot.slane %v7010_v47, 5  ;;  %v5816_v6 = vcombine.low %v4154_v4, %v4164_v60  ;;  %v8997_v34 = vld [vmem:[#allocation13_spill] sm:$0xff]  ;;  %v5839_v11 = vld [vmem:[%s7135_s16 + $0xa8] sm:$0xe] }
 0x11d   : > { %6491 = vmatmul.mubr.bf16.gmra.mrb[20].mxu0 %v8520_v36  ;;  %v4178_v36 = vsel %vm7167_vm2, %v4173_v7, %v8543_v59  ;;  %v4197_v14 = vrot.slane %v4196_v24, 4  ;;  %v4211_v28 = vrot.slane %v4209_v55, 5  ;;  %v5843_v18 = vrot.slane %v5827_v57, 9  ;;  %v6956_v46 = vld [vmem:[%s7135_s16 + $0x54] sm:$0xff]   ;;  %v5828_v55 = vld [vmem:[%s7135_s16 + $0x24] sm:$0xe] }
 0x11e   : > { %6283 = vmatmul.mubr.bf16.gmra.mrb[4].mxu1 %v6951_v3  ;;  %6494 = vmatprep.mubr.bf16.mxu0 %v8530_v22  ;;  %v8636_v22 = vsel %vm7413_vm5, %v4673_v48, %v4674_v0  ;;  %v5854_v33 = vrot.slane %v5838_v16, 9  ;;  %v5817_v3 = vcombine.low %v4178_v36, %v4188_v23  ;;  %v4207_v30 = vrot.slane %v4206_v49, 4  ;;  %v7014_v48 = vld [vmem:[%s7135_s16 + $0x28] sm:$0xf]  ;;  %v7015_v36 = vld [vmem:[%s7135_s16 + $0x34] sm:$0xf] }
 0x11f   : > { %6286 = vmatprep.mubr.bf16.mxu1 %v6953_v19  ;;  %6560 = vmatpush3.bf16.msra.mxu1 %v7009_v1  ;;  %v5885_v59 = vcombine.low %v8622_v58, %v8636_v22  ;;  %v4678_v19 = vrot.slane %v8997_v34, 5  ;;  %v4681_v7 = vrot.slane %v8325_v25, 5  ;;  %v4603_v52 = vrot.slane %v4601_v12, 4  ;;  %v7013_v1 = vld [vmem:[%s8930_s1 + $0x120] sm:$0xff]  }
 0x120   : > { %6553 = vmatprep.subr.bf16.mxu1 %v7011_v40  ;;  %v4604_v56 = vrot.slane %v7012_v2, 5  ;;  %v4602_v25 = vsel %vm7413_vm5, %v5843_v18, %v4601_v12  ;;  %v4202_v0 = vsel %vm7167_vm2, %v4197_v14, %v8597_v53  ;;  %v4212_v24 = vsel %vm7167_vm2, %v4207_v30, %v4211_v28  ;;  %v5829_v12 = vld [vmem:[%s7135_s16 + $0x30] sm:$0xe]  ;;  %v6957_v30 = vld [vmem:[%s7135_s16 + $0x60] sm:$0xff]  }
 0x121   : > { %v8653_v4 = vsel %vm7413_vm5, %v5854_v33, %v4678_v19  ;;  %v4680_v60 = vrot.slane %v4678_v19, 4  ;;  %v4608_v49 = vrot.slane %v7014_v48, 5  ;;  %v4615_v23 = vrot.slane %v7015_v36, 5  ;;  %v7017_v33 = vld [vmem:[%s7135_s16 + $0x2c] sm:$0x1] }
 0x122   : > { %v4605_v16 = vsel %vm7413_vm5, %v4603_v52, %v4604_v56  ;;  %v5855_v47 = vrot.slane %v5839_v11, 9  ;;  %v5818_v28 = vcombine.low %v4202_v0, %v4212_v24  ;;  %v5844_v18 = vrot.slane %v5828_v55, 9  ;;  %v6959_v52 = vld [vmem:[%s7135_s16 + $0x6c] sm:$0xff]   ;;  %v5840_v11 = vld [vmem:[%s7135_s16 + $0xb4] sm:$0xe] }
 0x123   : > { %6561 = vmatpush3.bf16.msra.mxu1 %v7011_v40  ;;  %v8667_v57 = vsel %vm7413_vm5, %v4680_v60, %v4681_v7  ;;  %v8998_v40 = vld [vmem:[#allocation16_spill] sm:$0xff]  ;;  %v5875_v34 = vcombine.low %v4602_v25, %v4605_v16  ;;  %v4610_v19 = vrot.slane %v4608_v49, 4  ;;  %v5845_v2 = vrot.slane %v5829_v12, 9  ;;  %v5830_v0 = vld [vmem:[%s7135_s16 + $0x3c] sm:$0xe] }
 0x124   : > { %6554 = vmatprep.subr.bf16.mxu1 %v7013_v1  ;;  %v5886_v53 = vcombine.low %v8653_v4, %v8667_v57  ;;  %v4685_v14 = vrot.slane %v8998_v40, 5  ;;  %v4617_v56 = vrot.slane %v4615_v23, 4  ;;  %v7019_v24 = vld [vmem:[%s7135_s16 + $0x40] sm:$0xf]  ;;  %v4609_v48 = vsel %vm7413_vm5, %v5844_v18, %v4608_v49  ;;  %v7021_v18 = vld [vmem:[%s7135_s16 + $0x44] sm:$0x1] }
 0x125   : > { %6495 = vmatmul.mubr.bf16.gmra.mrb[24].mxu0 %v5816_v6  ;;  %v7016_v6 = vld [vmem:[%s8930_s1 + $0x128] sm:$0xff]   ;;  %v4622_v55 = vrot.slane %v7019_v24, 5  ;;  %v4692_v12 = vrot.slane %v8372_v10, 5  ;;  %v4616_v49 = vsel %vm7413_vm5, %v5845_v2, %v4615_v23  ;;  %v7022_v10 = vld [vmem:[%s8930_s1 + $0x138] sm:$0xff]   ;;  %v5841_v23 = vld [vmem:[%s7135_s16 + $0xc0] sm:$0xe] }
 0x126   : > { %6287 = vmatmul.mubr.bf16.gmra.mrb[8].mxu1 %v6954_v39  ;;  %6498 = vmatprep.mubr.bf16.mxu0 %v5817_v3  ;;  %v4611_v39 = vrot.slane %v7017_v33, 5  ;;  %v4688_v3 = vrot.slane %v8360_v21, 5  ;;  %v8684_v7 = vsel %vm7413_vm5, %v5855_v47, %v4685_v14  ;;  %v7020_v21 = vld [vmem:[%s8930_s1 + $0x130] sm:$0xff]   ;;  %v5856_v47 = vrot.slane %v5840_v11, 9 }
 0x127   : > { %6290 = vmatprep.mubr.bf16.mxu1 %v6956_v46  ;;  %6562 = vmatpush3.bf16.msra.mxu1 %v7013_v1  ;;  %v4687_v46 = vrot.slane %v4685_v14, 4  ;;  %v7018_v1 = vld [vmem:[%s7135_s16 + $0x38] sm:$0x1]  ;;  %v5846_v14 = vrot.slane %v5830_v0, 9  ;;  %v4625_v33 = vrot.slane %v7021_v18, 5  ;;  %v4699_v11 = vrot.slane %v8454_v51, 5 }
 0x128   : > { %6555 = vmatprep.subr.bf16.mxu1 %v7016_v6  ;;  %v4618_v60 = vrot.slane %v7018_v1, 5  ;;  %v4612_v36 = vsel %vm7413_vm5, %v4610_v19, %v4611_v39  ;;  %v4694_v39 = vrot.slane %v4692_v12, 4  ;;  %v5531_v19 = vld [vmem:[%s7135_s16 + $0x6c] sm:$0xf]  ;;  %v6962_v18 = vld [vmem:[%s7135_s16 + $0x90] sm:$0xff]   ;;  %v2447_v20 = vshll.u32 %v7028_v63, 16 }
 0x129   : > { %v8696_v25 = vsel %vm7413_vm5, %v4687_v46, %v4688_v3  ;;  %v5876_v3 = vcombine.low %v4609_v48, %v4612_v36  ;;  %v4623_v1 = vsel %vm7413_vm5, %v5846_v14, %v4622_v55  ;;  %v2380_v0 = vshrl.u32 %v5531_v19, 16  ;;  %v5842_v51 = vld [vmem:[%s7135_s16 + $0xcc] sm:$0xe] }
 0x12a   : > { %v5887_v16 = vcombine.low %v8684_v7, %v8696_v25  ;;  %v4619_v40 = vsel %vm7413_vm5, %v4617_v56, %v4618_v60  ;;  %v5857_v56 = vrot.slane %v5841_v23, 9  ;;  %v2383_v24 = vshll.u32 %v5531_v19, 16 }
 0x12b   : > { %6563 = vmatpush3.bf16.msra.mxu1 %v7016_v6  ;;  %v4695_v6 = vrot.slane %v8393_v27, 5  ;;  %v8716_v27 = vsel %vm7413_vm5, %v5856_v47, %v4692_v12  ;;  %v4702_v36 = vrot.slane %v8505_v26, 5  ;;  %v4701_v12 = vrot.slane %v4699_v11, 4 }
 0x12c   : > { %6556 = vmatprep.subr.bf16.mxu1 %v7020_v21  ;;  %v2385_v26 = vrot.slane %v2383_v24, 5  ;;  %v4709_v23 = vrot.slane %v8595_v13, 5 }
 0x12d   : > { %6499 = vmatmul.mubr.bf16.gmra.mrb[28].mxu0 %v5818_v28  ;;  %v4624_v28 = vrot.slane %v4622_v55, 4  ;;  %v8723_v46 = vsel %vm7413_vm5, %v4694_v39, %v4695_v6  ;;  %v8737_v55 = vsel %vm7413_vm5, %v5857_v56, %v4699_v11  ;;  %v4706_v39 = vrot.slane %v8557_v31, 5  ;;  %v7024_v56 = vld [vmem:[%s7135_s16 + $0x74] sm:$0x1] }
 0x12e   : > { %6291 = vmatmul.mubr.bf16.gmra.mrb[12].mxu1 %v6957_v30  ;;  %6518 = vmatprep.mubr.bf16.mxu0 %v5875_v34  ;;  %v6960_v30 = vld [vmem:[%s7135_s16 + $0x78] sm:$0xff]   ;;  %v5877_v34 = vcombine.low %v4616_v49, %v4619_v40  ;;  %v5888_v2 = vcombine.low %v8716_v27, %v8723_v46  ;;  %v8742_v49 = vsel %vm7413_vm5, %v4701_v12, %v4702_v36  ;;  %v2382_v40 = vrot.slane %v2380_v0, 4  ;;  %v7025_v0 = vld [vmem:[%s7135_s16 + $0x88] sm:$0xf] }
 0x12f   : > { %6294 = vmatprep.mubr.bf16.mxu1 %v6959_v52  ;;  %6564 = vmatpush3.bf16.msra.mxu1 %v7020_v21  ;;  %v6961_v52 = vld [vmem:[%s7135_s16 + $0x84] sm:$0xff]   ;;  %v4626_v60 = vsel %vm7413_vm5, %v4624_v28, %v4625_v33  ;;  %v7023_v21 = vld [vmem:[%s7135_s16 + $0x70] sm:$0xf]  ;;  %v5889_v28 = vcombine.low %v8737_v55, %v8742_v49  ;;  %v4708_v19 = vrot.slane %v4706_v39, 4  ;;  %v2437_v24 = vshll.u32 %v7025_v0, 16 }
 0x130   : > { %6557 = vmatprep.subr.bf16.mxu1 %v7022_v10  ;;  %v2389_v48 = vshll.u32 %v7023_v21, 16  ;;  %v2393_v47 = vshrl.u32 %v7023_v21, 16  ;;  %v5878_v6 = vcombine.low %v4623_v1, %v4626_v60  ;;  %v2399_v1 = vshll.u32 %v7024_v56, 16 }
 0x131   : > { %v8764_v11 = vsel %vm7413_vm5, %v4708_v19, %v4709_v23  ;;  %v2441_v21 = vshrl.u32 %v7025_v0, 16  ;;  %v7027_v19 = vld [vmem:[%s7135_s16 + $0xa0] sm:$0xf] }
 0x132   : > { %v8744_v14 = vrot.slane %v2389_v48, 5  ;;  %v2395_v33 = vrot.slane %v2393_v47, 4  ;;  %v2489_v56 = vshrl.u32 %v7027_v19, 16 }
 0x133   : > { %6565 = vmatpush3.bf16.msra.mxu1 %v7022_v10  ;;  %v5858_v10 = vrot.slane %v5842_v51, 9 }
 0x134   : > { %v2396_v31 = vor.u32 %v2395_v33, %v8744_v14  ;;  %v2455_v33 = vshll.u32 %v5540_v61, 16 }
 0x135   : > { %6519 = vmatmul.mubr.bf16.vlgmr.msra.gmra.mrb[0].mxu0 %v5876_v3  ;;  %v6963_v3 = vld [vmem:[%s7135_s16 + $0x9c] sm:$0xff]  }
 0x136   : > { %6295 = vmatmul.mubr.bf16.gmra.mrb[16].mxu1 %v6960_v30  ;;  %6522 = vmatprep.mubr.bf16.mxu0 %v5877_v34  ;;  %v5537_v30 = vld [vmem:[%s7135_s16 + $0x84] sm:$0xf]  ;;  %v8755_v34 = vsel %vm7413_vm5, %v5858_v10, %v4706_v39  ;;  %v2397_v47 = vrot.slane %v2396_v31, 4  ;;  %v7026_v10 = vld [vmem:[%s7135_s16 + $0x94] sm:$0xf]  ;;  %v2457_v0 = vrot.slane %v2455_v33, 5 }
 0x137   : > { %6298 = vmatprep.mubr.bf16.mxu1 %v6961_v52  ;;  %v2386_v52 = vor.u32 %v2385_v26, %v2382_v40  ;;  %v2428_v13 = vshrl.u32 %v5537_v30, 16  ;;  %v2431_v60 = vshll.u32 %v5537_v30, 16  ;;  %v5890_v48 = vcombine.low %v8755_v34, %v8764_v11 }
 0x138   : > { %v8773_v40 = vrot.slane %v2437_v24, 5  ;;  %v2443_v26 = vrot.slane %v2441_v21, 4  ;;  %v2461_v39 = vshll.u32 %v7026_v10, 16  ;;  %v2465_v23 = vshrl.u32 %v7026_v10, 16  ;;  %v7030_v10 = vld [vmem:[%s7135_s16 + $0xa4] sm:$0x1] }
 0x139   : > { %v2387_v36 = vrot.slane %v2386_v52, 4  ;;  %v2430_v12 = vrot.slane %v2428_v13, 4  ;;  %v2433_v51 = vrot.slane %v2431_v60, 5  ;;  %v2485_v52 = vshll.u32 %v7027_v19, 16  ;;  %v7031_v19 = vld [vmem:[%s7135_s16 + $0xac] sm:$0xf] }
 0x13a   : > { %v2444_v13 = vor.u32 %v2443_v26, %v8773_v40  ;;  %v8790_v41 = vrot.slane %v2461_v39, 5  ;;  %v2467_v42 = vrot.slane %v2465_v23, 4  ;;  %v2491_v21 = vrot.slane %v2489_v56, 4  ;;  %v5549_v23 = vld [vmem:[%s7135_s16 + $0xb4] sm:$0xf] }
 0x13b   : > { %v2495_v39 = vshll.u32 %v7030_v10, 16  ;;  %v2513_v15 = vshrl.u32 %v7031_v19, 16  ;;  %v2527_v63 = vshll.u32 %v5549_v23, 16 }
 0x13c   : > { %v2468_v26 = vor.u32 %v2467_v42, %v8790_v41 }
 0x13d   : > { %6523 = vmatmul.mubr.bf16.gmra.mrb[4].mxu0 %v5878_v6  ;;  %v5543_v6 = vld [vmem:[%s7135_s16 + $0x9c] sm:$0xf] }
 0x13e   : > { %6299 = vmatmul.mubr.bf16.gmra.mrb[20].mxu1 %v6962_v18  ;;  %6526 = vmatprep.mubr.bf16.mxu0 %v5879_v8  ;;  %v2401_v8 = vrot.slane %v2399_v1, 5  ;;  %v2452_v18 = vshrl.u32 %v5540_v61, 16  ;;  %v2479_v30 = vshll.u32 %v5543_v6, 16  ;;  %v2392_v1 = vsel %vm7167_vm2, %v2387_v36, %v8744_v14  ;;  %v6966_v61 = vld [vmem:[%s7135_s16 + $0xc0] sm:$0xff]  }
 0x13f   : > { %6302 = vmatprep.mubr.bf16.mxu1 %v6963_v3  ;;  %v2476_v3 = vshrl.u32 %v5543_v6, 16  ;;  %v8792_v14 = vrot.slane %v2485_v52, 5  ;;  %v2509_v52 = vshll.u32 %v7031_v19, 16 }
 0x140   : > { %v2402_v31 = vsel %vm7167_vm2, %v2397_v47, %v2401_v8  ;;  %v2454_v60 = vrot.slane %v2452_v18, 4  ;;  %v2481_v24 = vrot.slane %v2479_v30, 5  ;;  %v2449_v8 = vrot.slane %v2447_v20, 5  ;;  %v7032_v20 = vld [vmem:[%s7135_s16 + $0xb8] sm:$0xf] }
 0x141   : > { %v2445_v47 = vrot.slane %v2444_v13, 4  ;;  %v2492_v33 = vor.u32 %v2491_v21, %v8792_v14  ;;  %v2533_v29 = vshll.u32 %v7032_v20, 16  ;;  %v2537_v44 = vshrl.u32 %v7032_v20, 16 }
 0x143   : > { %v2493_v13 = vrot.slane %v2492_v33, 4 }
 0x145   : > { %6527 = vmatmul.mubr.bf16.gmra.mrb[8].mxu0 %v5880_v54  ;;  %v2434_v54 = vor.u32 %v2433_v51, %v2430_v12  ;;  %v2458_v12 = vor.u32 %v2457_v0, %v2454_v60  ;;  %v7029_v51 = vld [vmem:[%s7135_s16 + $0x98] sm:$0x1]  ;;  %v2497_v60 = vrot.slane %v2495_v39, 5 }
 0x146   : > { %6303 = vmatmul.mubr.bf16.gmra.mrb[24].mxu1 %v6964_v45  ;;  %6530 = vmatprep.mubr.bf16.mxu0 %v5881_v17  ;;  %v2478_v17 = vrot.slane %v2476_v3, 4  ;;  %v5579_v45 = vcombine.low %v2392_v1, %v2402_v31  ;;  %v2471_v6 = vshll.u32 %v7029_v51, 16  ;;  %v2524_v31 = vshrl.u32 %v5549_v23, 16 }
 0x147   : > { %6306 = vmatprep.mubr.bf16.mxu1 %v6965_v9  ;;  %v2435_v36 = vrot.slane %v2434_v54, 4  ;;  %v5546_v9 = vld [vmem:[%s7135_s16 + $0xa8] sm:$0xf]  ;;  %v2459_v56 = vrot.slane %v2458_v12, 4  ;;  %v2498_v32 = vsel %vm7167_vm2, %v2493_v13, %v2497_v60 }
 0x148   : > { %v2482_v18 = vor.u32 %v2481_v24, %v2478_v17  ;;  %v2500_v3 = vshrl.u32 %v5546_v9, 16  ;;  %v2503_v30 = vshll.u32 %v5546_v9, 16  ;;  %v2473_v1 = vrot.slane %v2471_v6, 5 }
 0x149   : > { %v2440_v43 = vsel %vm7167_vm2, %v2435_v36, %v8773_v40  ;;  %v2511_v17 = vrot.slane %v2509_v52, 5  ;;  %v2515_v24 = vrot.slane %v2513_v15, 4  ;;  %v2526_v21 = vrot.slane %v2524_v31, 4  ;;  %v5552_v36 = vld [vmem:[%s7135_s16 + $0xc0] sm:$0xf] }
 0x14a   : > { %v2483_v54 = vrot.slane %v2482_v18, 4  ;;  %v2502_v0 = vrot.slane %v2500_v3, 4  ;;  %v2505_v42 = vrot.slane %v2503_v30, 5  ;;  %v2548_v9 = vshrl.u32 %v5552_v36, 16  ;;  %v7034_v18 = vld [vmem:[%s7135_s16 + $0xc4] sm:$0xf] }
 0x14b   : > { %v2557_v33 = vshll.u32 %v7034_v18, 16 }
 0x14c   : > { %v2488_v51 = vsel %vm7167_vm2, %v2483_v54, %v8792_v14  ;;  %v2506_v5 = vor.u32 %v2505_v42, %v2502_v0  ;;  %v2561_v14 = vshrl.u32 %v7034_v18, 16  ;;  %v2550_v19 = vrot.slane %v2548_v9, 4 }
 0x14d   : > { %6531 = vmatmul.mubr.bf16.gmra.mrb[12].mxu0 %v5882_v38  ;;  %v2450_v38 = vsel %vm7167_vm2, %v2445_v47, %v2449_v8  ;;  %v2539_v8 = vrot.slane %v2537_v44, 4  ;;  %v2464_v47 = vsel %vm7167_vm2, %v2459_v56, %v8790_v41  ;;  %v7033_v41 = vld [vmem:[%s7135_s16 + $0xb0] sm:$0x1]  ;;  %v5583_v58 = vcombine.low %v2488_v51, %v2498_v32  ;;  %v7036_v44 = vld [vmem:[%s7135_s16 + $0xc8] sm:$0x1] }
 0x14e   : > { %6307 = vmatmul.mubr.bf16.gmra.mrb[28].mxu1 %v6966_v61  ;;  %6534 = vmatprep.mubr.bf16.mxu0 %v5883_v35  ;;  %v2469_v35 = vrot.slane %v2468_v26, 4  ;;  %v5581_v40 = vcombine.low %v2440_v43, %v2450_v38  ;;  %v2529_v61 = vrot.slane %v2527_v63, 5  ;;  %v2519_v6 = vshll.u32 %v7033_v41, 16 }
 0x14f   : > { %6342 = vmatprep.mubr.bf16.mxu1 %v5579_v45  ;;  %v2535_v45 = vrot.slane %v2533_v29, 5  ;;  %v2551_v26 = vshll.u32 %v5552_v36, 16  ;;  %v2507_v22 = vrot.slane %v2506_v5, 4  ;;  %v2559_v15 = vrot.slane %v2557_v33, 5 }
 0x150   : > { %v2474_v12 = vsel %vm7167_vm2, %v2469_v35, %v2473_v1  ;;  %v2530_v10 = vor.u32 %v2529_v61, %v2526_v21  ;;  %v2521_v30 = vrot.slane %v2519_v6, 5  ;;  %v2563_v43 = vrot.slane %v2561_v14, 4 }
 0x151   : > { %v2540_v39 = vor.u32 %v2539_v8, %v2535_v45  ;;  %v5582_v3 = vcombine.low %v2464_v47, %v2474_v12  ;;  %v2553_v52 = vrot.slane %v2551_v26, 5  ;;  %v2512_v31 = vsel %vm7167_vm2, %v2507_v22, %v2511_v17 }
 0x152   : > { %v2531_v38 = vrot.slane %v2530_v10, 4  ;;  %v2564_v29 = vor.u32 %v2563_v43, %v2559_v15  ;;  %v2567_v35 = vshll.u32 %v7036_v44, 16 }
 0x153   : > { %v2541_v56 = vrot.slane %v2540_v39, 4  ;;  %v2554_v20 = vor.u32 %v2553_v52, %v2550_v19 }
 0x154   : > { %v2536_v4 = vsel %vm7167_vm2, %v2531_v38, %v2535_v45  ;;  %v2569_v54 = vrot.slane %v2567_v35, 5 }
 0x155   : > { %6535 = vmatmul.mubr.bf16.gmra.mrb[16].mxu0 %v5884_v62  ;;  %v2516_v62 = vor.u32 %v2515_v24, %v2511_v17  ;;  %v2555_v25 = vrot.slane %v2554_v20, 4 }
 0x156   : > { %6343 = vmatmul.mubr.bf16.vlgmr.msra.gmra.mrb[16].mxu1 %v8615_v50  ;;  %6538 = vmatprep.mubr.bf16.mxu0 %v5885_v59  ;;  %v7035_v50 = vld [vmem:[%s7135_s16 + $0xbc] sm:$0x1]  ;;  %s5901_s16 = sshll.u32 %s9004_s12, 8 }
 0x157   : > { %6346 = vmatprep.mubr.bf16.mxu1 %v5581_v40  ;;  %v2543_v23 = vshll.u32 %v7035_v50, 16  ;;  %v2517_v59 = vrot.slane %v2516_v62, 4  ;;  %v2560_v13 = vsel %vm7167_vm2, %v2555_v25, %v2559_v15  ;;  %s8877_s27 = scalar_lea.vmem %s8931_s2, %s5901_s16 }
 0x159   : > { %v2545_v1 = vrot.slane %v2543_v23, 5  ;;  %v2522_v63 = vsel %vm7167_vm2, %v2517_v59, %v2521_v30 }
 0x15b   : > { %v2546_v57 = vsel %vm7167_vm2, %v2541_v56, %v2545_v1 }
 0x15c   : > { %v5585_v7 = vcombine.low %v2536_v4, %v2546_v57 }
 0x15d   : > { %6539 = vmatmul.mubr.bf16.gmra.mrb[20].mxu0 %v5886_v53  ;;  %v5584_v53 = vcombine.low %v2512_v31, %v2522_v63 }
 0x15e   : > { %6347 = vmatmul.mubr.bf16.gmra.mrb[20].mxu1 %v5582_v3  ;;  %6542 = vmatprep.mubr.bf16.mxu0 %v5887_v16  ;;  %v2565_v16 = vrot.slane %v2564_v29, 4 }
 0x15f   : > { %6350 = vmatprep.mubr.bf16.mxu1 %v5583_v58 }
 0x160   : > { %v2570_v60 = vsel %vm7167_vm2, %v2565_v16, %v2569_v54 }
 0x161   : > { %v5586_v0 = vcombine.low %v2560_v13, %v2570_v60 }
 0x165   : > { %6543 = vmatmul.mubr.bf16.gmra.mrb[24].mxu0 %v5888_v2 }
 0x166   : > { %6351 = vmatmul.mubr.bf16.gmra.mrb[24].mxu1 %v5584_v53  ;;  %6546 = vmatprep.mubr.bf16.mxu0 %v5889_v28 }
 0x167   : > { %6354 = vmatprep.mubr.bf16.mxu1 %v5585_v7 }
 0x16d   : > { %6547 = vmatmul.mubr.bf16.gmra.mrb[28].mxu0 %v5890_v48 }
 0x16e   : > { %6355 = vmatmul.mubr.bf16.gmra.mrb[28].mxu1 %v5586_v0 }
 0x1e9   : > { %v6280_v27 = vpop.f32.mrb[0].mxu1 }
 0x1ea   : > { %v1980_v46 = vpop.f32.mrb[1].mxu1 }
 0x1eb   : > { %v6281_v2 = vpop.f32.mrb[2].mxu1 }
 0x1ec   : > { %v1983_v42 = vpop.f32.mrb[3].mxu1 }
 0x1f1   : > { %v6284_v55 = vpop.f32.mrb[4].mxu1 }
 0x1f2   : > { %v1996_v49 = vpop.f32.mrb[5].mxu1 }
 0x1f3   : > { %v6285_v28 = vpop.f32.mrb[6].mxu1 }
 0x1f4   : > { %v1999_v17 = vpop.f32.mrb[7].mxu1 }
 0x1f9   : > { %v6288_v24 = vpop.f32.mrb[8].mxu1 }
 0x1fa   : > { %v2012_v40 = vpop.f32.mrb[9].mxu1 }
 0x1fb   : > { %v6289_v21 = vpop.f32.mrb[10].mxu1 }
 0x1fc   : > { %v8863_v37 = vpop.f32.mrb[11].mxu1 }
 0x201   : > { %v8865_v61 = vpop.f32.mrb[12].mxu1 }
 0x202   : > { %v8867_v45 = vpop.f32.mrb[13].mxu1 }
 0x203   : > { %v8869_v34 = vpop.f32.mrb[14].mxu1 }
 0x204   : > { %v8871_v11 = vpop.f32.mrb[15].mxu1 }
 0x208   : > { %v6520_v48 = vpop.f32.mrb[0].mxu0 }
 0x209   : > { %v6566_v8 = vadd.f32 %v6520_v48, %v6280_v27  ;;  %v4874_v36 = vpop.f32.mrb[1].mxu0 }
 0x20a   : > { %v6567_v47 = vadd.f32 %v4874_v36, %v1980_v46  ;;  %v6521_v12 = vpop.f32.mrb[2].mxu0 }
 0x20b   : > { %5035 = vst [vmem:[%s8877_s27 + $0x10] sm:$0xff] %v6566_v8  ;;  %v6568_v51 = vadd.f32 %v6521_v12, %v6281_v2  ;;  %v4877_v32 = vpop.f32.mrb[3].mxu0  ;;  %v5104_v9 = vmul.f32 %v6566_v8, %v6566_v8 }
 0x20c   : > { %5033 = vst [vmem:[%s8877_s27] sm:$0xff] %v6567_v47  ;;  %v6569_v5 = vadd.f32 %v4877_v32, %v1983_v42  ;;  %v5102_v62 = vmul.f32 %v6567_v47, %v6567_v47 }
 0x20d   : > { %5036 = vst [vmem:[%s8877_s27 + $0x18] sm:$0xff] %v6568_v51  ;;  %v5105_v39 = vmul.f32 %v6568_v51, %v6568_v51 }
 0x20e   : > { %5034 = vst [vmem:[%s8877_s27 + $0x8] sm:$0xff] %v6569_v5  ;;  %v5065_v41 = vadd.f32 %v6569_v5, %v6567_v47  ;;  %v5103_v6 = vmul.f32 %v6569_v5, %v6569_v5 }
 0x210   : > { %v5066_v26 = vadd.f32 %v6566_v8, %v5065_v41  ;;  %v5134_v18 = vadd.f32 %v5103_v6, %v5102_v62  ;;  %v6524_v33 = vpop.f32.mrb[4].mxu0 }
 0x211   : > { %v6570_v14 = vadd.f32 %v6524_v33, %v6284_v55  ;;  %v4890_v10 = vpop.f32.mrb[5].mxu0 }
 0x212   : > { %v5135_v50 = vadd.f32 %v5134_v18, %v5104_v9  ;;  %v6571_v23 = vadd.f32 %v4890_v10, %v1996_v49  ;;  %v5067_v3 = vadd.f32 %v6568_v51, %v5066_v26  ;;  %v6525_v58 = vpop.f32.mrb[6].mxu0 }
 0x213   : > { %5039 = vst [vmem:[%s8877_s27 + $0x30] sm:$0xff] %v6570_v14  ;;  %v6572_v22 = vadd.f32 %v6525_v58, %v6285_v28  ;;  %v4893_v59 = vpop.f32.mrb[7].mxu0  ;;  %v5108_v1 = vmul.f32 %v6570_v14, %v6570_v14 }
 0x214   : > { %5037 = vst [vmem:[%s8877_s27 + $0x20] sm:$0xff] %v6571_v23  ;;  %v5068_v30 = vadd.f32 %v6571_v23, %v5067_v3  ;;  %v5106_v19 = vmul.f32 %v6571_v23, %v6571_v23  ;;  %v5136_v52 = vadd.f32 %v5135_v50, %v5105_v39  ;;  %v6573_v15 = vadd.f32 %v4893_v59, %v1999_v17 }
 0x215   : > { %5040 = vst [vmem:[%s8877_s27 + $0x38] sm:$0xff] %v6572_v22  ;;  %v5109_v35 = vmul.f32 %v6572_v22, %v6572_v22 }
 0x216   : > { %v5137_v43 = vadd.f32 %v5136_v52, %v5106_v19  ;;  %5038 = vst [vmem:[%s8877_s27 + $0x28] sm:$0xff] %v6573_v15  ;;  %v5069_v38 = vadd.f32 %v6573_v15, %v5068_v30  ;;  %v5107_v56 = vmul.f32 %v6573_v15, %v6573_v15 }
 0x218   : > { %v5070_v31 = vadd.f32 %v6570_v14, %v5069_v38  ;;  %v5138_v63 = vadd.f32 %v5137_v43, %v5107_v56  ;;  %v6528_v20 = vpop.f32.mrb[8].mxu0 }
 0x219   : > { %v6574_v29 = vadd.f32 %v6528_v20, %v6288_v24  ;;  %v4906_v44 = vpop.f32.mrb[9].mxu0 }
 0x21a   : > { %v5139_v4 = vadd.f32 %v5138_v63, %v5108_v1  ;;  %v6575_v57 = vadd.f32 %v4906_v44, %v2012_v40  ;;  %v5071_v53 = vadd.f32 %v6572_v22, %v5070_v31  ;;  %v6529_v7 = vpop.f32.mrb[10].mxu0 }
 0x21b   : > { %5043 = vst [vmem:[%s8877_s27 + $0x50] sm:$0xff] %v6574_v29  ;;  %v6576_v25 = vadd.f32 %v6529_v7, %v6289_v21  ;;  %v4909_v16 = vpop.f32.mrb[11].mxu0  ;;  %v5112_v42 = vmul.f32 %v6574_v29, %v6574_v29 }
 0x21c   : > { %5041 = vst [vmem:[%s8877_s27 + $0x40] sm:$0xff] %v6575_v57  ;;  %v5072_v54 = vadd.f32 %v6575_v57, %v5071_v53  ;;  %v5110_v13 = vmul.f32 %v6575_v57, %v6575_v57  ;;  %v5140_v60 = vadd.f32 %v5139_v4, %v5109_v35  ;;  %v6577_v0 = vadd.f32 %v4909_v16, %v8863_v37 }
 0x21d   : > { %5044 = vst [vmem:[%s8877_s27 + $0x58] sm:$0xff] %v6576_v25  ;;  %v5113_v40 = vmul.f32 %v6576_v25, %v6576_v25 }
 0x21e   : > { %v5141_v27 = vadd.f32 %v5140_v60, %v5110_v13  ;;  %5042 = vst [vmem:[%s8877_s27 + $0x48] sm:$0xff] %v6577_v0  ;;  %v5073_v46 = vadd.f32 %v6577_v0, %v5072_v54  ;;  %v5111_v2 = vmul.f32 %v6577_v0, %v6577_v0 }
 0x220   : > { %v5074_v55 = vadd.f32 %v6574_v29, %v5073_v46  ;;  %v5142_v49 = vadd.f32 %v5141_v27, %v5111_v2  ;;  %v6532_v28 = vpop.f32.mrb[12].mxu0 }
 0x221   : > { %v6578_v17 = vadd.f32 %v6532_v28, %v8865_v61  ;;  %v4922_v24 = vpop.f32.mrb[13].mxu0 }
 0x222   : > { %v5143_v21 = vadd.f32 %v5142_v49, %v5112_v42  ;;  %v6579_v37 = vadd.f32 %v4922_v24, %v8867_v45  ;;  %v5075_v48 = vadd.f32 %v6576_v25, %v5074_v55  ;;  %v6533_v8 = vpop.f32.mrb[14].mxu0 }
 0x223   : > { %5047 = vst [vmem:[%s8877_s27 + $0x70] sm:$0xff] %v6578_v17  ;;  %v6580_v36 = vadd.f32 %v6533_v8, %v8869_v34  ;;  %v4925_v47 = vpop.f32.mrb[15].mxu0  ;;  %v5116_v6 = vmul.f32 %v6578_v17, %v6578_v17 }
 0x224   : > { %5045 = vst [vmem:[%s8877_s27 + $0x60] sm:$0xff] %v6579_v37  ;;  %v5076_v12 = vadd.f32 %v6579_v37, %v5075_v48  ;;  %v5114_v51 = vmul.f32 %v6579_v37, %v6579_v37  ;;  %v5144_v32 = vadd.f32 %v5143_v21, %v5113_v40  ;;  %v6581_v5 = vadd.f32 %v4925_v47, %v8871_v11 }
 0x225   : > { %5048 = vst [vmem:[%s8877_s27 + $0x78] sm:$0xff] %v6580_v36  ;;  %v5117_v33 = vmul.f32 %v6580_v36, %v6580_v36 }
 0x226   : > { %v5145_v61 = vadd.f32 %v5144_v32, %v5114_v51  ;;  %5046 = vst [vmem:[%s8877_s27 + $0x68] sm:$0xff] %v6581_v5  ;;  %v5077_v62 = vadd.f32 %v6581_v5, %v5076_v12  ;;  %v5115_v41 = vmul.f32 %v6581_v5, %v6581_v5 }
 0x228   : > { %v5078_v45 = vadd.f32 %v6578_v17, %v5077_v62  ;;  %v5146_v9 = vadd.f32 %v5145_v61, %v5115_v41  ;;  %v6536_v26 = vpop.f32.mrb[16].mxu0 }
 0x229   : > { %v6344_v18 = vpop.f32.mrb[16].mxu1  ;;  %v4938_v34 = vpop.f32.mrb[17].mxu0 }
 0x22a   : > { %v5147_v14 = vadd.f32 %v5146_v9, %v5116_v6  ;;  %v6582_v10 = vadd.f32 %v6536_v26, %v6344_v18  ;;  %v2798_v39 = vpop.f32.mrb[17].mxu1  ;;  %v5079_v11 = vadd.f32 %v6580_v36, %v5078_v45  ;;  %v6537_v50 = vpop.f32.mrb[18].mxu0 }
 0x22b   : > { %v6583_v23 = vadd.f32 %v4938_v34, %v2798_v39  ;;  %v6345_v3 = vpop.f32.mrb[18].mxu1  ;;  %v4941_v58 = vpop.f32.mrb[19].mxu0 }
 0x22c   : > { %5051 = vst [vmem:[%s8877_s27 + $0x90] sm:$0xff] %v6582_v10  ;;  %v5148_v22 = vadd.f32 %v5147_v14, %v5117_v33  ;;  %v6584_v59 = vadd.f32 %v6537_v50, %v6345_v3  ;;  %v2801_v30 = vpop.f32.mrb[19].mxu1  ;;  %v5120_v31 = vmul.f32 %v6582_v10, %v6582_v10 }
 0x22d   : > { %5049 = vst [vmem:[%s8877_s27 + $0x80] sm:$0xff] %v6583_v23  ;;  %v5080_v19 = vadd.f32 %v6583_v23, %v5079_v11  ;;  %v5118_v52 = vmul.f32 %v6583_v23, %v6583_v23  ;;  %v6585_v15 = vadd.f32 %v4941_v58, %v2801_v30 }
 0x22e   : > { %5052 = vst [vmem:[%s8877_s27 + $0x98] sm:$0xff] %v6584_v59  ;;  %v5121_v53 = vmul.f32 %v6584_v59, %v6584_v59 }
 0x22f   : > { %v5149_v43 = vadd.f32 %v5148_v22, %v5118_v52  ;;  %5050 = vst [vmem:[%s8877_s27 + $0x88] sm:$0xff] %v6585_v15  ;;  %v5081_v38 = vadd.f32 %v6585_v15, %v5080_v19  ;;  %v5119_v56 = vmul.f32 %v6585_v15, %v6585_v15 }
 0x230   : > { %v6540_v1 = vpop.f32.mrb[20].mxu0 }
 0x231   : > { %v5082_v63 = vadd.f32 %v6582_v10, %v5081_v38  ;;  %v5150_v20 = vadd.f32 %v5149_v43, %v5119_v56  ;;  %v6348_v29 = vpop.f32.mrb[20].mxu1  ;;  %v4954_v44 = vpop.f32.mrb[21].mxu0 }
 0x232   : > { %v6586_v35 = vadd.f32 %v6540_v1, %v6348_v29  ;;  %v2814_v4 = vpop.f32.mrb[21].mxu1  ;;  %v6541_v57 = vpop.f32.mrb[22].mxu0 }
 0x233   : > { %v5151_v7 = vadd.f32 %v5150_v20, %v5120_v31  ;;  %v6587_v25 = vadd.f32 %v4954_v44, %v2814_v4  ;;  %v5083_v16 = vadd.f32 %v6584_v59, %v5082_v63  ;;  %v6349_v54 = vpop.f32.mrb[22].mxu1  ;;  %v4957_v13 = vpop.f32.mrb[23].mxu0 }
 0x234   : > { %5055 = vst [vmem:[%s8877_s27 + $0xb0] sm:$0xff] %v6586_v35  ;;  %v6588_v60 = vadd.f32 %v6541_v57, %v6349_v54  ;;  %v2817_v0 = vpop.f32.mrb[23].mxu1  ;;  %v5124_v24 = vmul.f32 %v6586_v35, %v6586_v35 }
 0x235   : > { %5053 = vst [vmem:[%s8877_s27 + $0xa0] sm:$0xff] %v6587_v25  ;;  %v5084_v27 = vadd.f32 %v6587_v25, %v5083_v16  ;;  %v5122_v46 = vmul.f32 %v6587_v25, %v6587_v25  ;;  %v5152_v2 = vadd.f32 %v5151_v7, %v5121_v53  ;;  %v6589_v42 = vadd.f32 %v4957_v13, %v2817_v0 }
 0x236   : > { %5056 = vst [vmem:[%s8877_s27 + $0xb8] sm:$0xff] %v6588_v60  ;;  %v5125_v12 = vmul.f32 %v6588_v60, %v6588_v60 }
 0x237   : > { %v5153_v55 = vadd.f32 %v5152_v2, %v5122_v46  ;;  %5054 = vst [vmem:[%s8877_s27 + $0xa8] sm:$0xff] %v6589_v42  ;;  %v5085_v49 = vadd.f32 %v6589_v42, %v5084_v27  ;;  %v5123_v28 = vmul.f32 %v6589_v42, %v6589_v42 }
 0x238   : > { %v6544_v17 = vpop.f32.mrb[24].mxu0 }
 0x239   : > { %v5086_v40 = vadd.f32 %v6586_v35, %v5085_v49  ;;  %v5154_v21 = vadd.f32 %v5153_v55, %v5123_v28  ;;  %v6352_v37 = vpop.f32.mrb[24].mxu1  ;;  %v4970_v48 = vpop.f32.mrb[25].mxu0 }
 0x23a   : > { %v6590_v8 = vadd.f32 %v6544_v17, %v6352_v37  ;;  %v2830_v36 = vpop.f32.mrb[25].mxu1  ;;  %v6545_v47 = vpop.f32.mrb[26].mxu0 }
 0x23b   : > { %v5155_v51 = vadd.f32 %v5154_v21, %v5124_v24  ;;  %v6591_v32 = vadd.f32 %v4970_v48, %v2830_v36  ;;  %v5087_v5 = vadd.f32 %v6588_v60, %v5086_v40  ;;  %v6353_v61 = vpop.f32.mrb[26].mxu1  ;;  %v4973_v62 = vpop.f32.mrb[27].mxu0 }
 0x23c   : > { %5059 = vst [vmem:[%s8877_s27 + $0xd0] sm:$0xff] %v6590_v8  ;;  %v6592_v41 = vadd.f32 %v6545_v47, %v6353_v61  ;;  %v2833_v6 = vpop.f32.mrb[27].mxu1  ;;  %v5128_v39 = vmul.f32 %v6590_v8, %v6590_v8 }
 0x23d   : > { %5057 = vst [vmem:[%s8877_s27 + $0xc0] sm:$0xff] %v6591_v32  ;;  %v5088_v45 = vadd.f32 %v6591_v32, %v5087_v5  ;;  %v5126_v9 = vmul.f32 %v6591_v32, %v6591_v32  ;;  %v5156_v26 = vadd.f32 %v5155_v51, %v5125_v12  ;;  %v6593_v18 = vadd.f32 %v4973_v62, %v2833_v6 }
 0x23e   : > { %5060 = vst [vmem:[%s8877_s27 + $0xd8] sm:$0xff] %v6592_v41  ;;  %v5129_v30 = vmul.f32 %v6592_v41, %v6592_v41 }
 0x23f   : > { %v5157_v34 = vadd.f32 %v5156_v26, %v5126_v9  ;;  %5058 = vst [vmem:[%s8877_s27 + $0xc8] sm:$0xff] %v6593_v18  ;;  %v5089_v33 = vadd.f32 %v6593_v18, %v5088_v45  ;;  %v5127_v14 = vmul.f32 %v6593_v18, %v6593_v18 }
 0x240   : > { %v6548_v10 = vpop.f32.mrb[28].mxu0 }
 0x241   : > { %v5090_v11 = vadd.f32 %v6590_v8, %v5089_v33  ;;  %v5158_v50 = vadd.f32 %v5157_v34, %v5127_v14  ;;  %v6356_v23 = vpop.f32.mrb[28].mxu1  ;;  %v4986_v3 = vpop.f32.mrb[29].mxu0 }
 0x242   : > { %v6594_v58 = vadd.f32 %v6548_v10, %v6356_v23  ;;  %v2846_v22 = vpop.f32.mrb[29].mxu1  ;;  %v6549_v59 = vpop.f32.mrb[30].mxu0 }
 0x243   : > { %v5159_v19 = vadd.f32 %v5158_v50, %v5128_v39  ;;  %v6595_v52 = vadd.f32 %v4986_v3, %v2846_v22  ;;  %v5091_v15 = vadd.f32 %v6592_v41, %v5090_v11  ;;  %v6357_v43 = vpop.f32.mrb[30].mxu1  ;;  %v4989_v38 = vpop.f32.mrb[31].mxu0 }
 0x244   : > { %5063 = vst [vmem:[%s8877_s27 + $0xf0] sm:$0xff] %v6594_v58  ;;  %v6596_v56 = vadd.f32 %v6549_v59, %v6357_v43  ;;  %v2849_v1 = vpop.f32.mrb[31].mxu1  ;;  %v5132_v57 = vmul.f32 %v6594_v58, %v6594_v58 }
 0x245   : > { %5061 = vst [vmem:[%s8877_s27 + $0xe0] sm:$0xff] %v6595_v52  ;;  %v5092_v31 = vadd.f32 %v6595_v52, %v5091_v15  ;;  %v5130_v63 = vmul.f32 %v6595_v52, %v6595_v52  ;;  %v5160_v20 = vadd.f32 %v5159_v19, %v5129_v30  ;;  %v6597_v29 = vadd.f32 %v4989_v38, %v2849_v1 }
 0x246   : > { %5064 = vst [vmem:[%s8877_s27 + $0xf8] sm:$0xff] %v6596_v56  ;;  %v5133_v25 = vmul.f32 %v6596_v56, %v6596_v56 }
 0x247   : > { %v5161_v44 = vadd.f32 %v5160_v20, %v5130_v63  ;;  %5062 = vst [vmem:[%s8877_s27 + $0xe8] sm:$0xff] %v6597_v29  ;;  %v5093_v35 = vadd.f32 %v6597_v29, %v5092_v31  ;;  %v5131_v4 = vmul.f32 %v6597_v29, %v6597_v29 }
 0x249   : > { %v5094_v53 = vadd.f32 %v6594_v58, %v5093_v35  ;;  %v5162_v7 = vadd.f32 %v5161_v44, %v5131_v4 }
 0x24b   : > { %v5095_v16 = vadd.f32 %v6596_v56, %v5094_v53  ;;  %v5163_v54 = vadd.f32 %v5162_v7, %v5132_v57 }
 0x24d   : > { %v5096_v13 = vrot.slane %v5095_v16, 4  ;;  %v5164_v60 = vadd.f32 %v5163_v54, %v5133_v25 }
 0x24f   : > { %v5097_v0 = vadd.f32 %v5096_v13, %v5095_v16  ;;  %v5165_v27 = vrot.slane %v5164_v60, 4 }
 0x251   : > { %v5098_v46 = vrot.slane %v5097_v0, 2  ;;  %v5166_v2 = vadd.f32 %v5165_v27, %v5164_v60 }
 0x253   : > { %v5099_v42 = vadd.f32 %v5098_v46, %v5097_v0  ;;  %v5167_v55 = vrot.slane %v5166_v2, 2 }
 0x255   : > { %v5100_v49 = vrot.slane %v5099_v42, 1  ;;  %v5168_v28 = vadd.f32 %v5167_v55, %v5166_v2 }
 0x257   : > { %v5169_v17 = vrot.slane %v5168_v28, 1  ;;  %v5101_v24 = vadd.f32 %v5100_v49, %v5099_v42 }
 0x259   : > { %v5170_v40 = vadd.f32 %v5169_v17, %v5168_v28 }
 0x25b   : > { %v5172_v21 = vsel %vm5171_vm6, %v5101_v24, %v5170_v40 }
 0x25c   : > { %5173 = vst [vmem:[%s212_s4] sm:$0x3] %v5172_v21 }
 0x25d PF: > { %s14_s14 = sadd.s32 1, %s7059_s14   ;;  %s8999_s12 = smov %s7055_s13 }
 0x25e   : > { %p11_p5 = scmp.ge.s32.totalorder %s14_s14, 4   ;;  %s9000_s13 = smov %s9002_s15 }
 0x260   :  { %13 = sbr.rel (!%p11_p5) target bundleno = 2 (0x2), region = 81 }

</bundles_post_ra>
